<compile_context>
chip_gen: v7x
topology: tpu7x:2x2x1
jax: 0.10.0
libtpu: 0.0.40
codegen_flags: <defaults>
</compile_context>

<pallas_src>
import functools

import jax
import jax.numpy as jnp
from jax import lax
from jax.experimental import pallas as pl
from jax.experimental.pallas import tpu as pltpu


NOISE = 16
NUM_LABELS = 10
EMBEDDING = 32
GEN_CHN = (32, 16, 8, 8)
HIDDEN = 4096  # fixed inside the PyTorch module
_EPS = 1e-5


# ----------------------------------------------------------------------------
# Pallas kernels
# ----------------------------------------------------------------------------
def _bn_cols(x, gamma, beta, eps):
    """Training-mode batch norm over rows (per column), biased variance (PyTorch)."""
    mean = jnp.mean(x, axis=0, keepdims=True)
    var = jnp.mean(jnp.square(x - mean), axis=0, keepdims=True)
    return (x - mean) * lax.rsqrt(var + eps) * gamma + beta


def _fc_block_kernel(x_ref, w1_ref, g1_ref, b1_ref, w2_ref, g2_ref, b2_ref, o_ref, *, eps):
    """Fused fc_01: relu(BN(x @ W1)) -> relu(BN(. @ W2)). Linear biases cancel under BN."""
    h = jnp.dot(x_ref[...].astype(jnp.bfloat16), w1_ref[...],
                preferred_element_type=jnp.float32)
    h = jnp.maximum(_bn_cols(h, g1_ref[...], b1_ref[...], eps), 0.0)
    h2 = jnp.dot(h.astype(jnp.bfloat16), w2_ref[...],
                 preferred_element_type=jnp.float32)
    h2 = jnp.maximum(_bn_cols(h2, g2_ref[...], b2_ref[...], eps), 0.0)
    o_ref[...] = h2


def _tap_matmul_kernel(x_ref, w_ref, o_ref):
    """taps = x_flat @ Wtaps  (bf16 operands, f32 MXU accumulation, lane-dense N)."""
    o_ref[...] = jnp.dot(x_ref[...].astype(jnp.bfloat16), w_ref[...],
                         preferred_element_type=jnp.float32)


def _bn_relu_tap_matmul_kernel(x_ref, g_ref, b_ref, w_ref, o_ref, *, eps):
    """BatchNorm2d(prev layer, batch stats) + ReLU prologue fused into the tap matmul."""
    x = jnp.maximum(_bn_cols(x_ref[...], g_ref[...], b_ref[...], eps), 0.0)
    o_ref[...] = jnp.dot(x.astype(jnp.bfloat16), w_ref[...],
                         preferred_element_type=jnp.float32)


def _bias_tanh_kernel(x_ref, b_ref, o_ref):
    """Final ConvT bias + Tanh on an NCHW-flattened (B*3, H*W) lane-dense layout."""
    o_ref[...] = jnp.tanh(x_ref[...] + b_ref[...])


# ----------------------------------------------------------------------------
# Pallas wrappers (full-array VMEM blocks; everything here is tiny)
# ----------------------------------------------------------------------------
def _vmem():
    return pl.BlockSpec(memory_space=pltpu.MemorySpace.VMEM)


def fc_block(x, w1, g1, b1, w2, g2, b2):
    B = x.shape[0]
    N = w2.shape[1]
    kernel = functools.partial(_fc_block_kernel, eps=_EPS)
    return pl.pallas_call(
        kernel,
        out_shape=jax.ShapeDtypeStruct((B, N), jnp.float32),
        in_specs=[_vmem() for _ in range(7)],
        out_specs=_vmem(),
        compiler_params=pltpu.CompilerParams(vmem_limit_bytes=64 << 20),
    )(x, w1, g1, b1, w2, g2, b2)


def tap_matmul(x, w):
    M = x.shape[0]
    N = w.shape[1]
    return pl.pallas_call(
        _tap_matmul_kernel,
        out_shape=jax.ShapeDtypeStruct((M, N), jnp.float32),
        in_specs=[_vmem(), _vmem()],
        out_specs=_vmem(),
    )(x, w)


def bn_relu_tap_matmul(x, g, b, w):
    M = x.shape[0]
    N = w.shape[1]
    kernel = functools.partial(_bn_relu_tap_matmul_kernel, eps=_EPS)
    return pl.pallas_call(
        kernel,
        out_shape=jax.ShapeDtypeStruct((M, N), jnp.float32),
        in_specs=[_vmem() for _ in range(4)],
        out_specs=_vmem(),
    )(x, g, b, w)


def bias_tanh(x, b_rows):
    return pl.pallas_call(
        _bias_tanh_kernel,
        out_shape=jax.ShapeDtypeStruct(x.shape, jnp.float32),
        in_specs=[_vmem(), _vmem()],
        out_specs=_vmem(),
    )(x, b_rows)


# ----------------------------------------------------------------------------
# col2im for ConvTranspose2d(k=4, s=2, p=1): parity decomposition (JAX glue)
#
#   out[b, 2*ih + kh - 1, 2*iw + kw - 1, co] += taps[b, ih, iw, kh, kw, co]
#   kh odd  -> even output rows,  kh even -> odd output rows  (same for kw / cols)
# ----------------------------------------------------------------------------
# kh -> (output parity, shift s such that out_parity[m] += y[m - s, kh])
_KTAP = {0: (1, -1), 1: (0, 0), 2: (1, 0), 3: (0, 1)}


def _shift(a, s, axis):
    """out[m] = a[m - s] along `axis` with zero fill; s in {-1, 0, +1}."""
    if s == 0:
        return a
    n = a.shape[axis]
    idx = [slice(None)] * a.ndim
    pad = [(0, 0)] * a.ndim
    if s == 1:
        idx[axis] = slice(0, n - 1)
        pad[axis] = (1, 0)
    else:
        idx[axis] = slice(1, n)
        pad[axis] = (0, 1)
    return jnp.pad(a[tuple(idx)], pad)


def col2im_stride2(taps, B, H, W, cout):
    """taps: (B*H*W, 16*cout) tap-matmul output -> (B, 2H, 2W, cout) transposed conv."""
    y = taps.reshape(B, H, W, 4, 4, cout)
    par = [[None, None], [None, None]]
    for kh in range(4):
        ph, sh = _KTAP[kh]
        for kw in range(4):
            pw, sw = _KTAP[kw]
            t = _shift(_shift(y[:, :, :, kh, kw, :], sh, 1), sw, 2)
            par[ph][pw] = t if par[ph][pw] is None else par[ph][pw] + t
    rows = [jnp.stack([par[ph][0], par[ph][1]], axis=3) for ph in (0, 1)]  # (B,H,W,2,C)
    full = jnp.stack(rows, axis=2)                                         # (B,H,2,W,2,C)
    return full.reshape(B, 2 * H, 2 * W, cout)


# ----------------------------------------------------------------------------
# Parameter preparation: PyTorch layouts -> kernel-ready layouts
# ----------------------------------------------------------------------------
def prepare_params(p):
    kp = {
        "embed": p["embed"].astype(jnp.float32),
        "fc1_w": p["fc1_w"].astype(jnp.bfloat16),
        "bn1_g": p["bn1_g"].reshape(1, -1).astype(jnp.float32),
        "bn1_b": p["bn1_b"].reshape(1, -1).astype(jnp.float32),
        "fc2_w": p["fc2_w"].astype(jnp.bfloat16),
        "bn2_g": p["bn2_g"].reshape(1, -1).astype(jnp.float32),
        "bn2_b": p["bn2_b"].reshape(1, -1).astype(jnp.float32),
    }
    # fc / ConvT biases feeding a batch-statistics BatchNorm are dropped: a per-feature
    # constant shifts the batch mean by exactly itself and cancels in normalization.
    chans = list(GEN_CHN) + [3]
    for i in range(4):
        cin, cout = chans[i], chans[i + 1]
        w = p[f"ct{i}_w"]                          # (Cin, Cout, 4, 4) PyTorch ConvT layout
        wt = jnp.transpose(w, (0, 2, 3, 1))        # (Cin, 4, 4, Cout): tap-major columns
        if i == 3:
            wt = jnp.pad(wt, ((0, 0), (0, 0), (0, 0), (0, 8 - cout)))  # lane-dense N=128
            cout = 8
        kp[f"ct{i}_w"] = wt.reshape(cin, 16 * cout).astype(jnp.bfloat16)
        if i < 3:
            kp[f"cbn{i}_g"] = p[f"cbn{i}_g"].reshape(1, -1).astype(jnp.float32)
            kp[f"cbn{i}_b"] = p[f"cbn{i}_b"].reshape(1, -1).astype(jnp.float32)
    kp["ct3_b"] = p["ct3_b"].astype(jnp.float32)   # (3,), used after col2im, before tanh
    return kp


# ----------------------------------------------------------------------------
# Generator forward
# ----------------------------------------------------------------------------
def generator_forward(kp, z, y):
    B = z.shape[0]

    # nn.Embedding lookup + concat (thin glue; a (B,10)@(10,32) kernel is pure launch cost)
    emb = jnp.take(kp["embed"], y, axis=0)
    h = jnp.concatenate([z.astype(jnp.float32), emb], axis=1)

    # fc_01: Linear -> BN1d -> ReLU -> Linear -> BN1d -> ReLU (one fused Pallas kernel)
    h = fc_block(h, kp["fc1_w"], kp["bn1_g"], kp["bn1_b"],
                 kp["fc2_w"], kp["bn2_g"], kp["bn2_b"])

    # view(-1, C0, 2, 2) in NCHW, then NHWC for the conv stack
    x = h.reshape(B, GEN_CHN[0], 2, 2).transpose(0, 2, 3, 1)    # (B, 2, 2, C0)
    H = W = 2

    chans = list(GEN_CHN) + [3]
    for i in range(4):
        cin = chans[i]
        cout = 8 if i == 3 else chans[i + 1]                    # last Cout padded 3 -> 8
        x_flat = x.reshape(B * H * W, cin)
        if i == 0:
            taps = tap_matmul(x_flat, kp["ct0_w"])
        else:
            # BatchNorm2d + ReLU of the previous layer fused into this layer's tap matmul
            taps = bn_relu_tap_matmul(x_flat, kp[f"cbn{i-1}_g"], kp[f"cbn{i-1}_b"],
                                      kp[f"ct{i}_w"])
        x = col2im_stride2(taps, B, H, W, cout)                 # (B, 2H, 2W, Cout)
        H, W = 2 * H, 2 * W

    # last layer: drop padded channels, go NCHW, fused bias + tanh on (B*3, 1024)
    x = x[..., :3].transpose(0, 3, 1, 2)                        # (B, 3, 32, 32)
    x2 = x.reshape(B * 3, H * W)
    b_rows = jnp.tile(kp["ct3_b"], B).reshape(B * 3, 1)
    out = bias_tanh(x2, b_rows)
    return out.reshape(B, 3, H, W)


# ----------------------------------------------------------------------------
# Deterministic parameter init (synthetic — matches module shapes, not a checkpoint)
# ----------------------------------------------------------------------------
def init_params(key):
    def nrm(k, shape, scale=0.05):
        return scale * jax.random.normal(k, shape, jnp.float32)

    keys = jax.random.split(key, 16)
    p = {
        "embed": nrm(keys[0], (NUM_LABELS, EMBEDDING), 1.0),
        "fc1_w": nrm(keys[1], (NOISE + EMBEDDING, HIDDEN)),
        "fc1_b": nrm(keys[7], (HIDDEN,)),
        "bn1_g": jnp.ones((HIDDEN,), jnp.float32),
        "bn1_b": jnp.zeros((HIDDEN,), jnp.float32),
        "fc2_w": nrm(keys[2], (HIDDEN, GEN_CHN[0] * 2 * 2)),
        "fc2_b": nrm(keys[8], (GEN_CHN[0] * 2 * 2,)),
        "bn2_g": jnp.ones((GEN_CHN[0] * 2 * 2,), jnp.float32),
        "bn2_b": jnp.zeros((GEN_CHN[0] * 2 * 2,), jnp.float32),
    }
    chans = list(GEN_CHN) + [3]
    for i in range(4):
        cin, cout = chans[i], chans[i + 1]
        p[f"ct{i}_w"] = nrm(keys[3 + i], (cin, cout, 4, 4))     # PyTorch ConvT layout
        p[f"ct{i}_b"] = nrm(keys[9 + i], (cout,))
        if i < 3:
            p[f"cbn{i}_g"] = jnp.ones((cout,), jnp.float32)
            p[f"cbn{i}_b"] = jnp.zeros((cout,), jnp.float32)
    return p


if __name__ == "__main__":
    key = jax.random.PRNGKey(0)
    pkey, zkey, ykey = jax.random.split(key, 3)

    params = init_params(pkey)
    kparams = prepare_params(params)

    B = 2
    z = jax.random.normal(zkey, (B, NOISE), jnp.float32)
    y = jax.random.randint(ykey, (B,), 0, NUM_LABELS, jnp.int32)

    fwd = jax.jit(generator_forward)
    out = fwd(kparams, z, y)
    out = jax.block_until_ready(out)

    assert out.shape == (B, 3, 32, 32), out.shape
    assert out.dtype == jnp.float32
    assert bool(jnp.all(jnp.isfinite(out)))
    assert bool(jnp.all(jnp.abs(out) <= 1.0 + 1e-6))  # tanh output range

    print("KERNEL_OK")
</pallas_src>

<mosaic_0001>
module attributes {stable_mosaic.version = 11 : i64} {
  func.func @_tap_matmul_kernel(%arg0: memref<8x32xf32, #tpu.memory_space<vmem>>, %arg1: memref<32x256xbf16, #tpu.memory_space<vmem>>, %arg2: memref<8x256xf32, #tpu.memory_space<vmem>>) attributes {dimension_semantics = [], scalar_prefetch = 0 : i64, scratch_operands = 0 : i64, tpu.core_type = #tpu.core_type<tc>} {
    %c0 = arith.constant 0 : index
    %c0_0 = arith.constant 0 : index
    %0 = vector.load %arg0[%c0, %c0_0] : memref<8x32xf32, #tpu.memory_space<vmem>>, vector<8x32xf32>
    %1 = arith.truncf %0 : vector<8x32xf32> to vector<8x32xbf16>
    %c0_1 = arith.constant 0 : index
    %c0_2 = arith.constant 0 : index
    %2 = vector.load %arg1[%c0_1, %c0_2] : memref<32x256xbf16, #tpu.memory_space<vmem>>, vector<32x256xbf16>
    %cst = arith.constant dense<0.000000e+00> : vector<8x256xf32>
    %3 = tpu.matmul %1, %2, %cst {dimension_numbers = #tpu.dot_dimension_numbers<[1], [0], [0], [1], [0, 0, 1, 1], [], []>} : vector<8x32xbf16>, vector<32x256xbf16>, vector<8x256xf32> -> vector<8x256xf32>
    %c0_3 = arith.constant 0 : index
    %c0_4 = arith.constant 0 : index
    %4 = vector.load %arg2[%c0_3, %c0_4] : memref<8x256xf32, #tpu.memory_space<vmem>>, vector<8x256xf32>
    tpu.vector_store %arg2[%c0_3, %c0_4], %3 {strides = array<i32>} : memref<8x256xf32, #tpu.memory_space<vmem>>, vector<8x256xf32>,
    return
  }
}

module attributes {stable_mosaic.version = 11 : i64} {
  func.func @_fc_block_kernel(%arg0: memref<2x48xf32, #tpu.memory_space<vmem>>, %arg1: memref<48x4096xbf16, #tpu.memory_space<vmem>>, %arg2: memref<1x4096xf32, #tpu.memory_space<vmem>>, %arg3: memref<1x4096xf32, #tpu.memory_space<vmem>>, %arg4: memref<4096x128xbf16, #tpu.memory_space<vmem>>, %arg5: memref<1x128xf32, #tpu.memory_space<vmem>>, %arg6: memref<1x128xf32, #tpu.memory_space<vmem>>, %arg7: memref<2x128xf32, #tpu.memory_space<vmem>>) attributes {dimension_semantics = [], scalar_prefetch = 0 : i64, scratch_operands = 0 : i64, tpu.core_type = #tpu.core_type<tc>} {
    %c0 = arith.constant 0 : index
    %c0_0 = arith.constant 0 : index
    %0 = vector.load %arg0[%c0, %c0_0] : memref<2x48xf32, #tpu.memory_space<vmem>>, vector<2x48xf32>
    %1 = arith.truncf %0 : vector<2x48xf32> to vector<2x48xbf16>
    %c0_1 = arith.constant 0 : index
    %c0_2 = arith.constant 0 : index
    %2 = vector.load %arg1[%c0_1, %c0_2] : memref<48x4096xbf16, #tpu.memory_space<vmem>>, vector<48x4096xbf16>
    %cst = arith.constant dense<0.000000e+00> : vector<2x4096xf32>
    %3 = tpu.matmul %1, %2, %cst {dimension_numbers = #tpu.dot_dimension_numbers<[1], [0], [0], [1], [0, 0, 1, 1], [], []>} : vector<2x48xbf16>, vector<48x4096xbf16>, vector<2x4096xf32> -> vector<2x4096xf32>
    %c0_3 = arith.constant 0 : index
    %c0_4 = arith.constant 0 : index
    %4 = vector.load %arg2[%c0_3, %c0_4] : memref<1x4096xf32, #tpu.memory_space<vmem>>, vector<1x4096xf32>
    %c0_5 = arith.constant 0 : index
    %c0_6 = arith.constant 0 : index
    %5 = vector.load %arg3[%c0_5, %c0_6] : memref<1x4096xf32, #tpu.memory_space<vmem>>, vector<1x4096xf32>
    %cst_7 = arith.constant dense<0.000000e+00> : vector<4096xf32>
    %6 = vector.multi_reduction <add>, %3, %cst_7 [0] : vector<2x4096xf32> to vector<4096xf32>
    %7 = vector.shape_cast %6 : vector<4096xf32> to vector<1x4096xf32>
    %cst_8 = arith.constant 2.000000e+00 : f32
    %8 = vector.broadcast %cst_8 : f32 to vector<1x4096xf32>
    %9 = arith.divf %7, %8 : vector<1x4096xf32>
    %10 = vector.broadcast %9 : vector<1x4096xf32> to vector<2x4096xf32>
    %11 = arith.subf %3, %10 : vector<2x4096xf32>
    %12 = arith.mulf %11, %11 : vector<2x4096xf32>
    %cst_9 = arith.constant dense<0.000000e+00> : vector<4096xf32>
    %13 = vector.multi_reduction <add>, %12, %cst_9 [0] : vector<2x4096xf32> to vector<4096xf32>
    %14 = vector.shape_cast %13 : vector<4096xf32> to vector<1x4096xf32>
    %cst_10 = arith.constant 2.000000e+00 : f32
    %15 = vector.broadcast %cst_10 : f32 to vector<1x4096xf32>
    %16 = arith.divf %14, %15 : vector<1x4096xf32>
    %17 = vector.broadcast %9 : vector<1x4096xf32> to vector<2x4096xf32>
    %18 = arith.subf %3, %17 : vector<2x4096xf32>
    %cst_11 = arith.constant 9.99999974E-6 : f32
    %19 = vector.broadcast %cst_11 : f32 to vector<1x4096xf32>
    %20 = arith.addf %16, %19 : vector<1x4096xf32>
    %21 = math.rsqrt %20 : vector<1x4096xf32>
    %22 = vector.broadcast %21 : vector<1x4096xf32> to vector<2x4096xf32>
    %23 = arith.mulf %18, %22 : vector<2x4096xf32>
    %24 = vector.broadcast %4 : vector<1x4096xf32> to vector<2x4096xf32>
    %25 = arith.mulf %23, %24 : vector<2x4096xf32>
    %26 = vector.broadcast %5 : vector<1x4096xf32> to vector<2x4096xf32>
    %27 = arith.addf %25, %26 : vector<2x4096xf32>
    %cst_12 = arith.constant 0.000000e+00 : f32
    %28 = vector.broadcast %cst_12 : f32 to vector<2x4096xf32>
    %29 = arith.maximumf %27, %28 : vector<2x4096xf32>
    %30 = arith.truncf %29 : vector<2x4096xf32> to vector<2x4096xbf16>
    %c0_13 = arith.constant 0 : index
    %c0_14 = arith.constant 0 : index
    %31 = vector.load %arg4[%c0_13, %c0_14] : memref<4096x128xbf16, #tpu.memory_space<vmem>>, vector<4096x128xbf16>
    %cst_15 = arith.constant dense<0.000000e+00> : vector<2x128xf32>
    %32 = tpu.matmul %30, %31, %cst_15 {dimension_numbers = #tpu.dot_dimension_numbers<[1], [0], [0], [1], [0, 0, 1, 1], [], []>} : vector<2x4096xbf16>, vector<4096x128xbf16>, vector<2x128xf32> -> vector<2x128xf32>
    %c0_16 = arith.constant 0 : index
    %c0_17 = arith.constant 0 : index
    %33 = vector.load %arg5[%c0_16, %c0_17] : memref<1x128xf32, #tpu.memory_space<vmem>>, vector<1x128xf32>
    %c0_18 = arith.constant 0 : index
    %c0_19 = arith.constant 0 : index
    %34 = vector.load %arg6[%c0_18, %c0_19] : memref<1x128xf32, #tpu.memory_space<vmem>>, vector<1x128xf32>
    %cst_20 = arith.constant dense<0.000000e+00> : vector<128xf32>
    %35 = vector.multi_reduction <add>, %32, %cst_20 [0] : vector<2x128xf32> to vector<128xf32>
    %36 = vector.shape_cast %35 : vector<128xf32> to vector<1x128xf32>
    %cst_21 = arith.constant 2.000000e+00 : f32
    %37 = vector.broadcast %cst_21 : f32 to vector<1x128xf32>
    %38 = arith.divf %36, %37 : vector<1x128xf32>
    %39 = vector.broadcast %38 : vector<1x128xf32> to vector<2x128xf32>
    %40 = arith.subf %32, %39 : vector<2x128xf32>
    %41 = arith.mulf %40, %40 : vector<2x128xf32>
    %cst_22 = arith.constant dense<0.000000e+00> : vector<128xf32>
    %42 = vector.multi_reduction <add>, %41, %cst_22 [0] : vector<2x128xf32> to vector<128xf32>
    %43 = vector.shape_cast %42 : vector<128xf32> to vector<1x128xf32>
    %cst_23 = arith.constant 2.000000e+00 : f32
    %44 = vector.broadcast %cst_23 : f32 to vector<1x128xf32>
    %45 = arith.divf %43, %44 : vector<1x128xf32>
    %46 = vector.broadcast %38 : vector<1x128xf32> to vector<2x128xf32>
    %47 = arith.subf %32, %46 : vector<2x128xf32>
    %cst_24 = arith.constant 9.99999974E-6 : f32
    %48 = vector.broadcast %cst_24 : f32 to vector<1x128xf32>
    %49 = arith.addf %45, %48 : vector<1x128xf32>
    %50 = math.rsqrt %49 : vector<1x128xf32>
    %51 = vector.broadcast %50 : vector<1x128xf32> to vector<2x128xf32>
    %52 = arith.mulf %47, %51 : vector<2x128xf32>
    %53 = vector.broadcast %33 : vector<1x128xf32> to vector<2x128xf32>
    %54 = arith.mulf %52, %53 : vector<2x128xf32>
    %55 = vector.broadcast %34 : vector<1x128xf32> to vector<2x128xf32>
    %56 = arith.addf %54, %55 : vector<2x128xf32>
    %cst_25 = arith.constant 0.000000e+00 : f32
    %57 = vector.broadcast %cst_25 : f32 to vector<2x128xf32>
    %58 = arith.maximumf %56, %57 : vector<2x128xf32>
    %c0_26 = arith.constant 0 : index
    %c0_27 = arith.constant 0 : index
    %59 = vector.load %arg7[%c0_26, %c0_27] : memref<2x128xf32, #tpu.memory_space<vmem>>, vector<2x128xf32>
    tpu.vector_store %arg7[%c0_26, %c0_27], %58 {strides = array<i32>} : memref<2x128xf32, #tpu.memory_space<vmem>>, vector<2x128xf32>,
    return
  }
}

module attributes {stable_mosaic.version = 11 : i64} {
  func.func @_bn_relu_tap_matmul_kernel(%arg0: memref<32x16xf32, #tpu.memory_space<vmem>>, %arg1: memref<1x16xf32, #tpu.memory_space<vmem>>, %arg2: memref<1x16xf32, #tpu.memory_space<vmem>>, %arg3: memref<16x128xbf16, #tpu.memory_space<vmem>>, %arg4: memref<32x128xf32, #tpu.memory_space<vmem>>) attributes {dimension_semantics = [], scalar_prefetch = 0 : i64, scratch_operands = 0 : i64, tpu.core_type = #tpu.core_type<tc>} {
    %c0 = arith.constant 0 : index
    %c0_0 = arith.constant 0 : index
    %0 = vector.load %arg0[%c0, %c0_0] : memref<32x16xf32, #tpu.memory_space<vmem>>, vector<32x16xf32>
    %c0_1 = arith.constant 0 : index
    %c0_2 = arith.constant 0 : index
    %1 = vector.load %arg1[%c0_1, %c0_2] : memref<1x16xf32, #tpu.memory_space<vmem>>, vector<1x16xf32>
    %c0_3 = arith.constant 0 : index
    %c0_4 = arith.constant 0 : index
    %2 = vector.load %arg2[%c0_3, %c0_4] : memref<1x16xf32, #tpu.memory_space<vmem>>, vector<1x16xf32>
    %cst = arith.constant dense<0.000000e+00> : vector<16xf32>
    %3 = vector.multi_reduction <add>, %0, %cst [0] : vector<32x16xf32> to vector<16xf32>
    %4 = vector.shape_cast %3 : vector<16xf32> to vector<1x16xf32>
    %cst_5 = arith.constant 3.200000e+01 : f32
    %5 = vector.broadcast %cst_5 : f32 to vector<1x16xf32>
    %6 = arith.divf %4, %5 : vector<1x16xf32>
    %7 = vector.broadcast %6 : vector<1x16xf32> to vector<32x16xf32>
    %8 = arith.subf %0, %7 : vector<32x16xf32>
    %9 = arith.mulf %8, %8 : vector<32x16xf32>
    %cst_6 = arith.constant dense<0.000000e+00> : vector<16xf32>
    %10 = vector.multi_reduction <add>, %9, %cst_6 [0] : vector<32x16xf32> to vector<16xf32>
    %11 = vector.shape_cast %10 : vector<16xf32> to vector<1x16xf32>
    %cst_7 = arith.constant 3.200000e+01 : f32
    %12 = vector.broadcast %cst_7 : f32 to vector<1x16xf32>
    %13 = arith.divf %11, %12 : vector<1x16xf32>
    %14 = vector.broadcast %6 : vector<1x16xf32> to vector<32x16xf32>
    %15 = arith.subf %0, %14 : vector<32x16xf32>
    %cst_8 = arith.constant 9.99999974E-6 : f32
    %16 = vector.broadcast %cst_8 : f32 to vector<1x16xf32>
    %17 = arith.addf %13, %16 : vector<1x16xf32>
    %18 = math.rsqrt %17 : vector<1x16xf32>
    %19 = vector.broadcast %18 : vector<1x16xf32> to vector<32x16xf32>
    %20 = arith.mulf %15, %19 : vector<32x16xf32>
    %21 = vector.broadcast %1 : vector<1x16xf32> to vector<32x16xf32>
    %22 = arith.mulf %20, %21 : vector<32x16xf32>
    %23 = vector.broadcast %2 : vector<1x16xf32> to vector<32x16xf32>
    %24 = arith.addf %22, %23 : vector<32x16xf32>
    %cst_9 = arith.constant 0.000000e+00 : f32
    %25 = vector.broadcast %cst_9 : f32 to vector<32x16xf32>
    %26 = arith.maximumf %24, %25 : vector<32x16xf32>
    %27 = arith.truncf %26 : vector<32x16xf32> to vector<32x16xbf16>
    %c0_10 = arith.constant 0 : index
    %c0_11 = arith.constant 0 : index
    %28 = vector.load %arg3[%c0_10, %c0_11] : memref<16x128xbf16, #tpu.memory_space<vmem>>, vector<16x128xbf16>
    %cst_12 = arith.constant dense<0.000000e+00> : vector<32x128xf32>
    %29 = tpu.matmul %27, %28, %cst_12 {dimension_numbers = #tpu.dot_dimension_numbers<[1], [0], [0], [1], [0, 0, 1, 1], [], []>} : vector<32x16xbf16>, vector<16x128xbf16>, vector<32x128xf32> -> vector<32x128xf32>
    %c0_13 = arith.constant 0 : index
    %c0_14 = arith.constant 0 : index
    %30 = vector.load %arg4[%c0_13, %c0_14] : memref<32x128xf32, #tpu.memory_space<vmem>>, vector<32x128xf32>
    tpu.vector_store %arg4[%c0_13, %c0_14], %29 {strides = array<i32>} : memref<32x128xf32, #tpu.memory_space<vmem>>, vector<32x128xf32>,
    return
  }
}

module attributes {stable_mosaic.version = 11 : i64} {
  func.func @_bn_relu_tap_matmul_kernel(%arg0: memref<128x8xf32, #tpu.memory_space<vmem>>, %arg1: memref<1x8xf32, #tpu.memory_space<vmem>>, %arg2: memref<1x8xf32, #tpu.memory_space<vmem>>, %arg3: memref<8x128xbf16, #tpu.memory_space<vmem>>, %arg4: memref<128x128xf32, #tpu.memory_space<vmem>>) attributes {dimension_semantics = [], scalar_prefetch = 0 : i64, scratch_operands = 0 : i64, tpu.core_type = #tpu.core_type<tc>} {
    %c0 = arith.constant 0 : index
    %c0_0 = arith.constant 0 : index
    %0 = vector.load %arg0[%c0, %c0_0] : memref<128x8xf32, #tpu.memory_space<vmem>>, vector<128x8xf32>
    %c0_1 = arith.constant 0 : index
    %c0_2 = arith.constant 0 : index
    %1 = vector.load %arg1[%c0_1, %c0_2] : memref<1x8xf32, #tpu.memory_space<vmem>>, vector<1x8xf32>
    %c0_3 = arith.constant 0 : index
    %c0_4 = arith.constant 0 : index
    %2 = vector.load %arg2[%c0_3, %c0_4] : memref<1x8xf32, #tpu.memory_space<vmem>>, vector<1x8xf32>
    %cst = arith.constant dense<0.000000e+00> : vector<8xf32>
    %3 = vector.multi_reduction <add>, %0, %cst [0] : vector<128x8xf32> to vector<8xf32>
    %4 = vector.shape_cast %3 : vector<8xf32> to vector<1x8xf32>
    %cst_5 = arith.constant 1.280000e+02 : f32
    %5 = vector.broadcast %cst_5 : f32 to vector<1x8xf32>
    %6 = arith.divf %4, %5 : vector<1x8xf32>
    %7 = vector.broadcast %6 : vector<1x8xf32> to vector<128x8xf32>
    %8 = arith.subf %0, %7 : vector<128x8xf32>
    %9 = arith.mulf %8, %8 : vector<128x8xf32>
    %cst_6 = arith.constant dense<0.000000e+00> : vector<8xf32>
    %10 = vector.multi_reduction <add>, %9, %cst_6 [0] : vector<128x8xf32> to vector<8xf32>
    %11 = vector.shape_cast %10 : vector<8xf32> to vector<1x8xf32>
    %cst_7 = arith.constant 1.280000e+02 : f32
    %12 = vector.broadcast %cst_7 : f32 to vector<1x8xf32>
    %13 = arith.divf %11, %12 : vector<1x8xf32>
    %14 = vector.broadcast %6 : vector<1x8xf32> to vector<128x8xf32>
    %15 = arith.subf %0, %14 : vector<128x8xf32>
    %cst_8 = arith.constant 9.99999974E-6 : f32
    %16 = vector.broadcast %cst_8 : f32 to vector<1x8xf32>
    %17 = arith.addf %13, %16 : vector<1x8xf32>
    %18 = math.rsqrt %17 : vector<1x8xf32>
    %19 = vector.broadcast %18 : vector<1x8xf32> to vector<128x8xf32>
    %20 = arith.mulf %15, %19 : vector<128x8xf32>
    %21 = vector.broadcast %1 : vector<1x8xf32> to vector<128x8xf32>
    %22 = arith.mulf %20, %21 : vector<128x8xf32>
    %23 = vector.broadcast %2 : vector<1x8xf32> to vector<128x8xf32>
    %24 = arith.addf %22, %23 : vector<128x8xf32>
    %cst_9 = arith.constant 0.000000e+00 : f32
    %25 = vector.broadcast %cst_9 : f32 to vector<128x8xf32>
    %26 = arith.maximumf %24, %25 : vector<128x8xf32>
    %27 = arith.truncf %26 : vector<128x8xf32> to vector<128x8xbf16>
    %c0_10 = arith.constant 0 : index
    %c0_11 = arith.constant 0 : index
    %28 = vector.load %arg3[%c0_10, %c0_11] : memref<8x128xbf16, #tpu.memory_space<vmem>>, vector<8x128xbf16>
    %cst_12 = arith.constant dense<0.000000e+00> : vector<128x128xf32>
    %29 = tpu.matmul %27, %28, %cst_12 {dimension_numbers = #tpu.dot_dimension_numbers<[1], [0], [0], [1], [0, 0, 1, 1], [], []>} : vector<128x8xbf16>, vector<8x128xbf16>, vector<128x128xf32> -> vector<128x128xf32>
    %c0_13 = arith.constant 0 : index
    %c0_14 = arith.constant 0 : index
    %30 = vector.load %arg4[%c0_13, %c0_14] : memref<128x128xf32, #tpu.memory_space<vmem>>, vector<128x128xf32>
    tpu.vector_store %arg4[%c0_13, %c0_14], %29 {strides = array<i32>} : memref<128x128xf32, #tpu.memory_space<vmem>>, vector<128x128xf32>,
    return
  }
}

module attributes {stable_mosaic.version = 11 : i64} {
  func.func @_bn_relu_tap_matmul_kernel(%arg0: memref<512x8xf32, #tpu.memory_space<vmem>>, %arg1: memref<1x8xf32, #tpu.memory_space<vmem>>, %arg2: memref<1x8xf32, #tpu.memory_space<vmem>>, %arg3: memref<8x128xbf16, #tpu.memory_space<vmem>>, %arg4: memref<512x128xf32, #tpu.memory_space<vmem>>) attributes {dimension_semantics = [], scalar_prefetch = 0 : i64, scratch_operands = 0 : i64, tpu.core_type = #tpu.core_type<tc>} {
    %c0 = arith.constant 0 : index
    %c0_0 = arith.constant 0 : index
    %0 = vector.load %arg0[%c0, %c0_0] : memref<512x8xf32, #tpu.memory_space<vmem>>, vector<512x8xf32>
    %c0_1 = arith.constant 0 : index
    %c0_2 = arith.constant 0 : index
    %1 = vector.load %arg1[%c0_1, %c0_2] : memref<1x8xf32, #tpu.memory_space<vmem>>, vector<1x8xf32>
    %c0_3 = arith.constant 0 : index
    %c0_4 = arith.constant 0 : index
    %2 = vector.load %arg2[%c0_3, %c0_4] : memref<1x8xf32, #tpu.memory_space<vmem>>, vector<1x8xf32>
    %cst = arith.constant dense<0.000000e+00> : vector<8xf32>
    %3 = vector.multi_reduction <add>, %0, %cst [0] : vector<512x8xf32> to vector<8xf32>
    %4 = vector.shape_cast %3 : vector<8xf32> to vector<1x8xf32>
    %cst_5 = arith.constant 5.120000e+02 : f32
    %5 = vector.broadcast %cst_5 : f32 to vector<1x8xf32>
    %6 = arith.divf %4, %5 : vector<1x8xf32>
    %7 = vector.broadcast %6 : vector<1x8xf32> to vector<512x8xf32>
    %8 = arith.subf %0, %7 : vector<512x8xf32>
    %9 = arith.mulf %8, %8 : vector<512x8xf32>
    %cst_6 = arith.constant dense<0.000000e+00> : vector<8xf32>
    %10 = vector.multi_reduction <add>, %9, %cst_6 [0] : vector<512x8xf32> to vector<8xf32>
    %11 = vector.shape_cast %10 : vector<8xf32> to vector<1x8xf32>
    %cst_7 = arith.constant 5.120000e+02 : f32
    %12 = vector.broadcast %cst_7 : f32 to vector<1x8xf32>
    %13 = arith.divf %11, %12 : vector<1x8xf32>
    %14 = vector.broadcast %6 : vector<1x8xf32> to vector<512x8xf32>
    %15 = arith.subf %0, %14 : vector<512x8xf32>
    %cst_8 = arith.constant 9.99999974E-6 : f32
    %16 = vector.broadcast %cst_8 : f32 to vector<1x8xf32>
    %17 = arith.addf %13, %16 : vector<1x8xf32>
    %18 = math.rsqrt %17 : vector<1x8xf32>
    %19 = vector.broadcast %18 : vector<1x8xf32> to vector<512x8xf32>
    %20 = arith.mulf %15, %19 : vector<512x8xf32>
    %21 = vector.broadcast %1 : vector<1x8xf32> to vector<512x8xf32>
    %22 = arith.mulf %20, %21 : vector<512x8xf32>
    %23 = vector.broadcast %2 : vector<1x8xf32> to vector<512x8xf32>
    %24 = arith.addf %22, %23 : vector<512x8xf32>
    %cst_9 = arith.constant 0.000000e+00 : f32
    %25 = vector.broadcast %cst_9 : f32 to vector<512x8xf32>
    %26 = arith.maximumf %24, %25 : vector<512x8xf32>
    %27 = arith.truncf %26 : vector<512x8xf32> to vector<512x8xbf16>
    %c0_10 = arith.constant 0 : index
    %c0_11 = arith.constant 0 : index
    %28 = vector.load %arg3[%c0_10, %c0_11] : memref<8x128xbf16, #tpu.memory_space<vmem>>, vector<8x128xbf16>
    %cst_12 = arith.constant dense<0.000000e+00> : vector<512x128xf32>
    %29 = tpu.matmul %27, %28, %cst_12 {dimension_numbers = #tpu.dot_dimension_numbers<[1], [0], [0], [1], [0, 0, 1, 1], [], []>} : vector<512x8xbf16>, vector<8x128xbf16>, vector<512x128xf32> -> vector<512x128xf32>
    %c0_13 = arith.constant 0 : index
    %c0_14 = arith.constant 0 : index
    %30 = vector.load %arg4[%c0_13, %c0_14] : memref<512x128xf32, #tpu.memory_space<vmem>>, vector<512x128xf32>
    tpu.vector_store %arg4[%c0_13, %c0_14], %29 {strides = array<i32>} : memref<512x128xf32, #tpu.memory_space<vmem>>, vector<512x128xf32>,
    return
  }
}

module attributes {stable_mosaic.version = 11 : i64} {
  func.func @_bias_tanh_kernel(%arg0: memref<6x1024xf32, #tpu.memory_space<vmem>>, %arg1: memref<6x1xf32, #tpu.memory_space<vmem>>, %arg2: memref<6x1024xf32, #tpu.memory_space<vmem>>) attributes {dimension_semantics = [], scalar_prefetch = 0 : i64, scratch_operands = 0 : i64, tpu.core_type = #tpu.core_type<tc>} {
    %c0 = arith.constant 0 : index
    %c0_0 = arith.constant 0 : index
    %0 = vector.load %arg0[%c0, %c0_0] : memref<6x1024xf32, #tpu.memory_space<vmem>>, vector<6x1024xf32>
    %c0_1 = arith.constant 0 : index
    %c0_2 = arith.constant 0 : index
    %1 = vector.load %arg1[%c0_1, %c0_2] : memref<6x1xf32, #tpu.memory_space<vmem>>, vector<6x1xf32>
    %2 = vector.broadcast %1 : vector<6x1xf32> to vector<6x1024xf32>
    %3 = arith.addf %0, %2 : vector<6x1024xf32>
    %4 = math.tanh %3 : vector<6x1024xf32>
    %c0_3 = arith.constant 0 : index
    %c0_4 = arith.constant 0 : index
    %5 = vector.load %arg2[%c0_3, %c0_4] : memref<6x1024xf32, #tpu.memory_space<vmem>>, vector<6x1024xf32>
    tpu.vector_store %arg2[%c0_3, %c0_4], %4 {strides = array<i32>} : memref<6x1024xf32, #tpu.memory_space<vmem>>, vector<6x1024xf32>,
    return
  }
}

</mosaic_0001>

<bundles_post_ra>
// kernel: generator_forward.7
= control target key start
LH: loop header
LB: loop body
LE: loop exit
PB: predicated region body
PF: predicated region fallthrough
CT: control target
= control target key end

     0   :  { %7 = vsyncpa [#allocation3], 0  ;;  %s143_s9 = smov [#allocation2]   ;;  %s183_s0 = inlined_call_operand.vmem [shape: f32[8,32], index: 0, kind: input, shape index: {}]   ;;  %s184_s1 = inlined_call_operand.hbm [shape: bf16[32,256], index: 1, kind: input, shape index: {}]   ;;  %s185_s2 = inlined_call_operand.vmem [shape: f32[8,256], index: 2, kind: output, shape index: {}]  }
   0x1   :  { %s15_s10 = sshll.u32 %s143_s9, 4  ;;  %s119_s13 = scalar_lea.hbm %s184_s1, 512  ;;  %s16_s10 = int_to_ptr.vmem [resolvable:$true] %s15_s10 }
   0x2   :  { %p120_p0 = scmp.ne.s32.totalorder %s184_s1, %s119_s13  ;;  %p123_p1 = scmp.lt.u32.totalorder %s119_s13, %s184_s1 }
   0x4   :  { %p125_p2 = pnand %p123_p1, %p120_p0 }
   0x6   :  { %128 = shalt.err (!%p125_p2)
}
   0x7   :  { %s129_s18 = scalar_lea.vmem %s16_s10, 512  ;;  %p134_p4 = scmp.lt.s32.totalorder %s16_s10, %s16_s10 }
   0x8   :  { %p130_p3 = scmp.ne.s32.totalorder %s16_s10, %s129_s18  ;;  %p135_p5 = scmp.lt.s32.totalorder %s129_s18, %s129_s18 }
   0xa   :  { %p136_p6 = por %p135_p5, %p134_p4 }
   0xc   :  { %p137_p7 = pnand %p136_p6, %p130_p3 }
   0xe   :  { %140 = shalt.err (!%p137_p7)
}
   0xf   :  { %s144_s19 = smov 128   ;;  %s145_s20 = smov 8  }
  0x10   :  { %21 = dma.hbm_to_vmem [thread:$0]  %s184_s1, 512, %s16_s10, [#allocation3], %s144_s19, %s144_s19, %s145_s20  }
  0x11   :  { %141 = dma.done.wait [#allocation3], 512  }
  0x12   :  { %142 = vsyncadd [#allocation3], 4294966784  ;;  %v146_v0 = vmov 0   ;;  %v113_v1 = vld [vmem:[#allocation2 + $0x4] ss:$8 sps:$4 sm:$0xff]   ;;  %vm52_vm0 = vcmask 261120  }
  0x13   :  { %88 = vmatprep.mubr.bf16.mxu0 %v146_v0  ;;  %v115_v2 = vld [vmem:[#allocation2] ss:$8 sps:$4 sm:$0xff]   ;;  %56 = vmatprep.subr.bf16.mxu0 %v113_v1  ;;  %v116_v3 = vld [vmem:[#allocation2 + $0x14] ss:$8 sps:$4 sm:$0xff]   ;;  %v118_v4 = vld [vmem:[#allocation2 + $0x10] ss:$8 sps:$4 sm:$0xff]  }
  0x14   :  { %57 = vmatpush1.bf16.msra.mxu0 %v115_v2  ;;  %v26_v5 = vld [vmem:[%s183_s0] sm:$0xff] }
  0x15   :  { %58 = vmatprep.subr.bf16.mxu0 %v116_v3  ;;  %v27_v6 = vpack.c.bf16 %v26_v5, %v26_v5 }
  0x18   :  { %59 = vmatpush1.bf16.msra.mxu0 %v118_v4 }
  0x1b   :  { %108 = vmatmul.mubr.msk.bf16.vlgmr.msra.gmra.mrb[0].mxu0 %vm52_vm0, %v27_v6 }
  0xee   :  { %v90_v7 = vpop.f32.mrb[0].mxu0 }
  0xef   :  { %97 = vst [vmem:[%s185_s2] sm:$0xff] %v90_v7  ;;  %v92_v8 = vpop.f32.mrb[1].mxu0 }
  0xf0   :  { %98 = vst [vmem:[%s185_s2 + $0x8] sm:$0xff] %v92_v8  ;;  %v94_v9 = vpop.f32.mrb[2].mxu0 }
  0xf1   :  { %v95_v10 = vpop.f32.mrb[3].mxu0 }
  0xf2   :  { %103 = vsyncpa [#allocation3], 1 }

// kernel: generator_forward.8
= control target key start
LH: loop header
LB: loop body
LE: loop exit
PB: predicated region body
PF: predicated region fallthrough
CT: control target
= control target key end

     0   :  { %9 = vsyncpa [#allocation3], 0  ;;  %s396_s0 = inlined_call_operand.vmem [shape: f32[32,16], index: 0, kind: input, shape index: {}]   ;;  %s397_s1 = inlined_call_operand.hbm [shape: f32[1,16], index: 1, kind: input, shape index: {}]   ;;  %s398_s2 = inlined_call_operand.hbm [shape: f32[1,16], index: 2, kind: input, shape index: {}]   ;;  %s399_s3 = inlined_call_operand.hbm [shape: bf16[16,128], index: 3, kind: input, shape index: {}]   ;;  %s400_s4 = inlined_call_operand.vmem [shape: f32[32,128], index: 4, kind: output, shape index: {}]  }
   0x1   :  { %10 = vsyncpa [#allocation5], 0  ;;  %s296_s15 = smov [#allocation4]   ;;  %s297_s17 = smov [#allocation2]  }
   0x2   :  { %s29_s16 = sshll.u32 %s296_s15, 4  ;;  %s19_s18 = sshll.u32 %s297_s17, 4  ;;  %s30_s16 = int_to_ptr.vmem [resolvable:$true] %s29_s16  ;;  %s20_s18 = int_to_ptr.vmem [resolvable:$true] %s19_s18 }
   0x3   :  { %s226_s21 = scalar_lea.hbm %s398_s2, 16 }
   0x4   :  { %p227_p0 = scmp.ne.s32.totalorder %s398_s2, %s226_s21  ;;  %p230_p1 = scmp.lt.u32.totalorder %s226_s21, %s398_s2 }
   0x6   :  { %p232_p2 = pnand %p230_p1, %p227_p0 }
   0x8   :  { %235 = shalt.err (!%p232_p2)
}
   0x9   :  { %s236_s26 = scalar_lea.vmem %s30_s16, 16  ;;  %s240_s27 = scalar_lea.vmem %s30_s16, 32 }
   0xa   :  { %p237_p3 = scmp.ne.s32.totalorder %s30_s16, %s236_s26  ;;  %p241_p4 = scmp.lt.s32.totalorder %s30_s16, %s30_s16 }
   0xb   :  { %p242_p5 = scmp.lt.s32.totalorder %s240_s27, %s236_s26 }
   0xd   :  { %p243_p6 = por %p242_p5, %p241_p4 }
   0xf   :  { %p244_p7 = pnand %p243_p6, %p237_p3 }
  0x11   :  { %247 = shalt.err (!%p244_p7)
}
  0x12   :  { %32 = dma.hbm_to_vmem [thread:$0]  %s398_s2, 16, %s30_s16, [#allocation5]  }
  0x13   :  { %s248_s6 = scalar_lea.hbm %s397_s1, 16 }
  0x14   :  { %p249_p8 = scmp.ne.s32.totalorder %s397_s1, %s248_s6  ;;  %p252_p9 = scmp.lt.u32.totalorder %s248_s6, %s397_s1 }
  0x16   :  { %p254_p10 = pnand %p252_p9, %p249_p8 }
  0x18   :  { %257 = shalt.err (!%p254_p10)
}
  0x19   :  { %s258_s11 = scalar_lea.vmem %s20_s18, 16  ;;  %s262_s12 = scalar_lea.vmem %s20_s18, 32 }
  0x1a   :  { %p259_p11 = scmp.ne.s32.totalorder %s20_s18, %s258_s11  ;;  %p263_p12 = scmp.lt.s32.totalorder %s20_s18, %s20_s18 }
  0x1b   :  { %p264_p13 = scmp.lt.s32.totalorder %s262_s12, %s258_s11 }
  0x1d   :  { %p265_p0 = por %p264_p13, %p263_p12 }
  0x1f   :  { %p266_p1 = pnand %p265_p0, %p259_p11 }
  0x21   :  { %269 = shalt.err (!%p266_p1)
}
  0x22   :  { %22 = dma.hbm_to_vmem [thread:$0]  %s397_s1, 16, %s20_s18, [#allocation3]  }
  0x23   :  { %s298_s14 = smov [#allocation6]   ;;  %s270_s19 = scalar_lea.hbm %s399_s3, 128 }
  0x24   :  { %s38_s15 = sshll.u32 %s298_s14, 4  ;;  %p271_p2 = scmp.ne.s32.totalorder %s399_s3, %s270_s19  ;;  %s39_s15 = int_to_ptr.vmem [resolvable:$true] %s38_s15 }
  0x25   :  { %p274_p3 = scmp.lt.u32.totalorder %s270_s19, %s399_s3 }
  0x27   :  { %p276_p4 = pnand %p274_p3, %p271_p2 }
  0x29   :  { %279 = shalt.err (!%p276_p4)
}
  0x2a   :  { %s280_s24 = scalar_lea.vmem %s39_s15, 128  ;;  %p285_p6 = scmp.lt.s32.totalorder %s39_s15, %s39_s15 }
  0x2b   :  { %p281_p5 = scmp.ne.s32.totalorder %s39_s15, %s280_s24  ;;  %p286_p7 = scmp.lt.s32.totalorder %s280_s24, %s280_s24 }
  0x2d   :  { %p287_p8 = por %p286_p7, %p285_p6 }
  0x2f   :  { %p288_p9 = pnand %p287_p8, %p281_p5 }
  0x31   :  { %291 = shalt.err (!%p288_p9)
}
  0x32   :  { %s299_s1 = smov 64   ;;  %s300_s18 = smov 4  }
  0x33   :  { %44 = dma.hbm_to_vmem [thread:$0]  %s399_s3, 128, %s39_s15, [#allocation5], %s299_s1, %s299_s1, %s300_s18  }
  0x34   :  { %292 = dma.done.wait [#allocation3], 16  }
  0x35   :  { %293 = vsyncadd [#allocation3], 4294967280 }
  0x36   :  { %294 = dma.done.wait [#allocation5], 144  }
  0x37   :  { %295 = vsyncadd [#allocation5], 4294967152  ;;  %vm61_vm0 = vcmask 130048   ;;  %v223_v0 = vld [vmem:[#allocation6] sm:$0xff]   ;;  %v57_v3 = vld [vmem:[%s396_s0 + $0x10] sm:$0xff] }
  0x38   :  { %v55_v1 = vld [vmem:[%s396_s0] sm:$0xff]  ;;  %v56_v2 = vld [vmem:[%s396_s0 + $0x8] sm:$0xff]  ;;  %212 = vmatprep.subr.bf16.mxu0 %v223_v0  ;;  %v58_v4 = vld [vmem:[%s396_s0 + $0x18] sm:$0xff]  ;;  %v65_v7 = vsel %vm61_vm0, %v57_v3, 0.0 }
  0x39   :  { %v62_v5 = vsel %vm61_vm0, %v55_v1, 0.0  ;;  %213 = vmatpush3.bf16.msra.mxu0 %v223_v0  ;;  %v63_v6 = vsel %vm61_vm0, %v56_v2, 0.0  ;;  %v67_v9 = vsel %vm61_vm0, %v58_v4, 0.0  ;;  %v204_v43 = vld [vmem:[#allocation2] ss:$0 sm:$0xff] }
  0x3a   :  { %v64_v8 = vadd.f32 %v63_v6, %v62_v5  ;;  %v205_v48 = vld [vmem:[#allocation4] ss:$0 sm:$0xff] }
  0x3c   :  { %v66_v10 = vadd.f32 %v65_v7, %v64_v8 }
  0x3e   :  { %v68_v11 = vadd.f32 %v67_v9, %v66_v10 }
  0x40   :  { %v69_v12 = vrot.slane %v68_v11, 4 }
  0x42   :  { %v70_v13 = vadd.f32 %v69_v12, %v68_v11 }
  0x44   :  { %v71_v14 = vrot.slane %v70_v13, 2 }
  0x46   :  { %v72_v15 = vadd.f32 %v71_v14, %v70_v13 }
  0x48   :  { %v73_v16 = vrot.slane %v72_v15, 1 }
  0x4a   :  { %v74_v17 = vadd.f32 %v73_v16, %v72_v15 }
  0x4c   :  { %v76_v18 = vmul.f32 0.03125, %v74_v17 }
  0x4e   :  { %v77_v19 = vsub.f32 %v55_v1, %v76_v18  ;;  %v78_v20 = vsub.f32 %v56_v2, %v76_v18  ;;  %v79_v21 = vsub.f32 %v57_v3, %v76_v18  ;;  %v80_v22 = vsub.f32 %v58_v4, %v76_v18 }
  0x50   :  { %v81_v23 = vmul.f32 %v77_v19, %v77_v19  ;;  %v82_v24 = vmul.f32 %v78_v20, %v78_v20  ;;  %v83_v25 = vmul.f32 %v79_v21, %v79_v21  ;;  %v84_v26 = vmul.f32 %v80_v22, %v80_v22 }
  0x52   :  { %v85_v27 = vsel %vm61_vm0, %v81_v23, 0.0  ;;  %v86_v28 = vsel %vm61_vm0, %v82_v24, 0.0  ;;  %v88_v29 = vsel %vm61_vm0, %v83_v25, 0.0  ;;  %v90_v31 = vsel %vm61_vm0, %v84_v26, 0.0 }
  0x53   :  { %v87_v30 = vadd.f32 %v86_v28, %v85_v27 }
  0x55   :  { %v89_v32 = vadd.f32 %v88_v29, %v87_v30 }
  0x57   :  { %v91_v33 = vadd.f32 %v90_v31, %v89_v32 }
  0x59   :  { %v92_v34 = vrot.slane %v91_v33, 4 }
  0x5b   :  { %v93_v35 = vadd.f32 %v92_v34, %v91_v33 }
  0x5d   :  { %v94_v36 = vrot.slane %v93_v35, 2 }
  0x5f   :  { %v95_v37 = vadd.f32 %v94_v36, %v93_v35 }
  0x61   :  { %v96_v38 = vrot.slane %v95_v37, 1 }
  0x63   :  { %v97_v39 = vadd.f32 %v96_v38, %v95_v37 }
  0x65   :  { %v98_v40 = vmul.f32 0.03125, %v97_v39 }
  0x67   :  { %v99_v41 = vadd.f32 1e-05, %v98_v40 }
  0x69   :  { %224 = vrsqrt.f32 %v99_v41 }
  0x73   :  { %v225_v42 = vpop.eup %224 }
  0x74   :  { %v101_v44 = vmul.f32 %v225_v42, %v77_v19  ;;  %v102_v45 = vmul.f32 %v225_v42, %v78_v20  ;;  %v103_v46 = vmul.f32 %v225_v42, %v79_v21  ;;  %v104_v47 = vmul.f32 %v225_v42, %v80_v22 }
  0x76   :  { %v111_v49 = vmul.f32 %v204_v43, %v101_v44  ;;  %v112_v50 = vmul.f32 %v204_v43, %v102_v45  ;;  %v113_v51 = vmul.f32 %v204_v43, %v103_v46  ;;  %v114_v52 = vmul.f32 %v204_v43, %v104_v47 }
  0x78   :  { %v121_v53 = vadd.f32 %v205_v48, %v111_v49  ;;  %v122_v54 = vadd.f32 %v205_v48, %v112_v50  ;;  %v123_v55 = vadd.f32 %v205_v48, %v113_v51  ;;  %v124_v56 = vadd.f32 %v205_v48, %v114_v52 }
  0x7a   :  { %v125_v57 = vmax.f32 %v121_v53, 0.0  ;;  %v126_v58 = vmax.f32 %v122_v54, 0.0  ;;  %v127_v59 = vmax.f32 %v123_v55, 0.0  ;;  %v128_v60 = vmax.f32 %v124_v56, 0.0 }
  0x7c   :  { %v129_v61 = vpack.c.bf16 %v126_v58, %v125_v57  ;;  %v130_v62 = vpack.c.bf16 %v128_v60, %v127_v59 }
  0x7e   :  { %214 = vmatprep.mubr.msk.bf16.mxu0 %vm61_vm0, %v129_v61 }
  0x7f   :  { %215 = vmatmul.mubr.msk.bf16.vlgmr.msra.gmra.mrb[0].mxu0 %vm61_vm0, %v130_v62 }
 0x152   :  { %v216_v63 = vpop.f32.mrb[0].mxu0 }
 0x153   :  { %196 = vst [vmem:[%s400_s4 + $0x10] sm:$0xff] %v216_v63  ;;  %v179_v0 = vpop.f32.mrb[1].mxu0 }
 0x154   :  { %194 = vst [vmem:[%s400_s4] sm:$0xff] %v179_v0  ;;  %v217_v1 = vpop.f32.mrb[2].mxu0 }
 0x155   :  { %197 = vst [vmem:[%s400_s4 + $0x18] sm:$0xff] %v217_v1  ;;  %v182_v2 = vpop.f32.mrb[3].mxu0 }
 0x156   :  { %195 = vst [vmem:[%s400_s4 + $0x8] sm:$0xff] %v182_v2 }
 0x157   :  { %202 = vsyncpa [#allocation3], 1 }
 0x158   :  { %203 = vsyncpa [#allocation5], 1 }

// kernel: generator_forward.9
= control target key start
LH: loop header
LB: loop body
LE: loop exit
PB: predicated region body
PF: predicated region fallthrough
CT: control target
= control target key end

     0   :  { %vm257_vm0 = vcmask 1043456   ;;  %vm36_vm1 = vcmask 64512   ;;  %s687_s3 = inlined_call_operand.vmem [shape: bf16[8,128], index: 3, kind: input, shape index: {}]   ;;  %s688_s0 = inlined_call_operand.vmem [shape: f32[128,8], index: 0, kind: input, shape index: {}]   ;;  %s689_s1 = inlined_call_operand.vmem [shape: f32[1,8], index: 1, kind: input, shape index: {}]   ;;  %s690_s2 = inlined_call_operand.vmem [shape: f32[1,8], index: 2, kind: input, shape index: {}]   ;;  %s691_s4 = inlined_call_operand.vmem [shape: f32[128,128], index: 4, kind: output, shape index: {}]  }
   0x1   :  { %v232_v0 = vld [vmem:[%s687_s3] sm:$0xf]  ;;  %v19_v2 = vld [vmem:[%s688_s0 + $0x8] sm:$0xff]  ;;  %v20_v4 = vld [vmem:[%s688_s0 + $0x10] sm:$0xff] }
   0x2   :  { %v18_v1 = vld [vmem:[%s688_s0] sm:$0xff]  ;;  %417 = vmatprep.subr.msk.bf16.mxu0 %vm257_vm0, %v232_v0  ;;  %418 = vmatprep.subr.msk.bf16.mxu1 %vm257_vm0, %v232_v0  ;;  %v259_v3 = vsel %vm257_vm0, %v232_v0, 0  ;;  %v21_v5 = vld [vmem:[%s688_s0 + $0x18] sm:$0xff]  ;;  %v38_v7 = vsel %vm36_vm1, %v19_v2, 0.0  ;;  %v40_v10 = vsel %vm36_vm1, %v20_v4, 0.0  ;;  %v23_v12 = vld [vmem:[%s688_s0 + $0x28] sm:$0xff] }
   0x3   :  { %v37_v6 = vsel %vm36_vm1, %v18_v1, 0.0  ;;  %398 = vmatpush3.bf16.msra.mxu0 %v259_v3  ;;  %416 = vmatpush3.bf16.msra.mxu1 %v259_v3  ;;  %v22_v8 = vld [vmem:[%s688_s0 + $0x20] sm:$0xff]  ;;  %v42_v11 = vsel %vm36_vm1, %v21_v5, 0.0  ;;  %v24_v15 = vld [vmem:[%s688_s0 + $0x30] sm:$0xff]  ;;  %v46_v17 = vsel %vm36_vm1, %v23_v12, 0.0  ;;  %v25_v18 = vld [vmem:[%s688_s0 + $0x38] sm:$0xff] }
   0x4   :  { %v39_v9 = vadd.f32 %v38_v7, %v37_v6  ;;  %v44_v14 = vsel %vm36_vm1, %v22_v8, 0.0  ;;  %v48_v20 = vsel %vm36_vm1, %v24_v15, 0.0  ;;  %v26_v21 = vld [vmem:[%s688_s0 + $0x40] sm:$0xff]  ;;  %v50_v23 = vsel %vm36_vm1, %v25_v18, 0.0  ;;  %v27_v24 = vld [vmem:[%s688_s0 + $0x48] sm:$0xff]  ;;  %v28_v27 = vld [vmem:[%s688_s0 + $0x50] sm:$0xff] }
   0x5   :  { %v52_v26 = vsel %vm36_vm1, %v26_v21, 0.0  ;;  %v54_v29 = vsel %vm36_vm1, %v27_v24, 0.0  ;;  %v29_v30 = vld [vmem:[%s688_s0 + $0x58] sm:$0xff]  ;;  %v56_v32 = vsel %vm36_vm1, %v28_v27, 0.0  ;;  %v30_v33 = vld [vmem:[%s688_s0 + $0x60] sm:$0xff]  ;;  %v31_v36 = vld [vmem:[%s688_s0 + $0x68] sm:$0xff] }
   0x6   :  { %v41_v13 = vadd.f32 %v40_v10, %v39_v9  ;;  %v58_v35 = vsel %vm36_vm1, %v29_v30, 0.0  ;;  %v60_v38 = vsel %vm36_vm1, %v30_v33, 0.0  ;;  %v32_v39 = vld [vmem:[%s688_s0 + $0x70] sm:$0xff]  ;;  %v62_v41 = vsel %vm36_vm1, %v31_v36, 0.0  ;;  %v33_v42 = vld [vmem:[%s688_s0 + $0x78] sm:$0xff] }
   0x7   :  { %v64_v44 = vsel %vm36_vm1, %v32_v39, 0.0  ;;  %v66_v46 = vsel %vm36_vm1, %v33_v42, 0.0 }
   0x8   :  { %v43_v16 = vadd.f32 %v42_v11, %v41_v13 }
   0xa   :  { %v45_v19 = vadd.f32 %v44_v14, %v43_v16 }
   0xc   :  { %v47_v22 = vadd.f32 %v46_v17, %v45_v19 }
   0xe   :  { %v49_v25 = vadd.f32 %v48_v20, %v47_v22 }
  0x10   :  { %v51_v28 = vadd.f32 %v50_v23, %v49_v25 }
  0x12   :  { %v53_v31 = vadd.f32 %v52_v26, %v51_v28 }
  0x14   :  { %v55_v34 = vadd.f32 %v54_v29, %v53_v31 }
  0x16   :  { %v57_v37 = vadd.f32 %v56_v32, %v55_v34 }
  0x18   :  { %v59_v40 = vadd.f32 %v58_v35, %v57_v37 }
  0x1a   :  { %v61_v43 = vadd.f32 %v60_v38, %v59_v40 }
  0x1c   :  { %v63_v45 = vadd.f32 %v62_v41, %v61_v43 }
  0x1e   :  { %v65_v47 = vadd.f32 %v64_v44, %v63_v45 }
  0x20   :  { %v67_v48 = vadd.f32 %v66_v46, %v65_v47 }
  0x22   :  { %v68_v49 = vrot.slane %v67_v48, 4 }
  0x24   :  { %v69_v50 = vadd.f32 %v68_v49, %v67_v48 }
  0x26   :  { %v70_v51 = vrot.slane %v69_v50, 2 }
  0x28   :  { %v71_v52 = vadd.f32 %v70_v51, %v69_v50 }
  0x2a   :  { %v72_v53 = vrot.slane %v71_v52, 1 }
  0x2c   :  { %v73_v54 = vadd.f32 %v72_v53, %v71_v52 }
  0x2e   :  { %v75_v55 = vmul.f32 0.0078125, %v73_v54 }
  0x30   :  { %v513_v56 = vsub.f32 %v18_v1, %v75_v55  ;;  %v515_v57 = vsub.f32 %v19_v2, %v75_v55  ;;  %v517_v58 = vsub.f32 %v20_v4, %v75_v55  ;;  %v519_v59 = vsub.f32 %v21_v5, %v75_v55 }
  0x31   :  { %v521_v60 = vsub.f32 %v22_v8, %v75_v55  ;;  %v529_v0 = vsub.f32 %v23_v12, %v75_v55  ;;  %v533_v2 = vsub.f32 %v24_v15, %v75_v55  ;;  %v540_v8 = vsub.f32 %v25_v18, %v75_v55 }
  0x32   :  { %v92_v61 = vmul.f32 %v513_v56, %v513_v56  ;;  %v93_v62 = vmul.f32 %v515_v57, %v515_v57  ;;  %v94_v63 = vmul.f32 %v517_v58, %v517_v58  ;;  %v95_v1 = vmul.f32 %v519_v59, %v519_v59 }
  0x33   :  { %v96_v3 = vmul.f32 %v521_v60, %v521_v60  ;;  %v97_v9 = vmul.f32 %v529_v0, %v529_v0  ;;  %v84_v12 = vsub.f32 %v26_v21, %v75_v55  ;;  %v98_v13 = vmul.f32 %v533_v2, %v533_v2 }
  0x34   :  { %v108_v4 = vsel %vm36_vm1, %v92_v61, 0.0  ;;  %v109_v5 = vsel %vm36_vm1, %v93_v62, 0.0  ;;  %v111_v6 = vsel %vm36_vm1, %v94_v63, 0.0  ;;  %v113_v10 = vsel %vm36_vm1, %v95_v1, 0.0 }
  0x35   :  { %v110_v7 = vadd.f32 %v109_v5, %v108_v4  ;;  %v115_v14 = vsel %vm36_vm1, %v96_v3, 0.0  ;;  %v85_v16 = vsub.f32 %v27_v24, %v75_v55  ;;  %v99_v17 = vmul.f32 %v540_v8, %v540_v8 }
  0x36   :  { %v117_v18 = vsel %vm36_vm1, %v97_v9, 0.0  ;;  %v86_v20 = vsub.f32 %v28_v27, %v75_v55  ;;  %v100_v22 = vmul.f32 %v84_v12, %v84_v12  ;;  %v119_v23 = vsel %vm36_vm1, %v98_v13, 0.0 }
  0x37   :  { %v112_v11 = vadd.f32 %v111_v6, %v110_v7  ;;  %v87_v26 = vsub.f32 %v29_v30, %v75_v55  ;;  %v101_v21 = vmul.f32 %v85_v16, %v85_v16  ;;  %v121_v28 = vsel %vm36_vm1, %v99_v17, 0.0  ;;  %v580_v7 = vld [vmem:[%s689_s1] ss:$0 sm:$0xff] }
  0x38   :  { %v553_v31 = vsub.f32 %v30_v33, %v75_v55  ;;  %v102_v32 = vmul.f32 %v86_v20, %v86_v20  ;;  %v123_v24 = vsel %vm36_vm1, %v100_v22, 0.0  ;;  %v556_v35 = vsub.f32 %v31_v36, %v75_v55 }
  0x39   :  { %v114_v15 = vadd.f32 %v113_v10, %v112_v11  ;;  %v103_v37 = vmul.f32 %v87_v26, %v87_v26  ;;  %v125_v27 = vsel %vm36_vm1, %v101_v21, 0.0  ;;  %v559_v40 = vsub.f32 %v32_v39, %v75_v55 }
  0x3a   :  { %v104_v30 = vmul.f32 %v553_v31, %v553_v31  ;;  %v127_v41 = vsel %vm36_vm1, %v102_v32, 0.0  ;;  %v564_v33 = vsub.f32 %v33_v42, %v75_v55  ;;  %v105_v44 = vmul.f32 %v556_v35, %v556_v35 }
  0x3b   :  { %v116_v19 = vadd.f32 %v115_v14, %v114_v15  ;;  %v129_v36 = vsel %vm36_vm1, %v103_v37, 0.0  ;;  %v106_v46 = vmul.f32 %v559_v40, %v559_v40  ;;  %v587_v14 = vld [vmem:[%s690_s2] ss:$0 sm:$0xff] }
  0x3c   :  { %v131_v39 = vsel %vm36_vm1, %v104_v30, 0.0  ;;  %v107_v48 = vmul.f32 %v564_v33, %v564_v33  ;;  %v133_v49 = vsel %vm36_vm1, %v105_v44, 0.0 }
  0x3d   :  { %v118_v25 = vadd.f32 %v117_v18, %v116_v19  ;;  %v135_v42 = vsel %vm36_vm1, %v106_v46, 0.0 }
  0x3e   :  { %v137_v52 = vsel %vm36_vm1, %v107_v48, 0.0 }
  0x3f   :  { %v120_v29 = vadd.f32 %v119_v23, %v118_v25 }
  0x41   :  { %v122_v34 = vadd.f32 %v121_v28, %v120_v29 }
  0x43   :  { %v124_v38 = vadd.f32 %v123_v24, %v122_v34 }
  0x45   :  { %v126_v43 = vadd.f32 %v125_v27, %v124_v38 }
  0x47   :  { %v128_v45 = vadd.f32 %v127_v41, %v126_v43 }
  0x49   :  { %v130_v47 = vadd.f32 %v129_v36, %v128_v45 }
  0x4b   :  { %v132_v50 = vadd.f32 %v131_v39, %v130_v47 }
  0x4d   :  { %v134_v51 = vadd.f32 %v133_v49, %v132_v50 }
  0x4f   :  { %v136_v53 = vadd.f32 %v135_v42, %v134_v51 }
  0x51   :  { %v138_v54 = vadd.f32 %v137_v52, %v136_v53 }
  0x53   :  { %v139_v55 = vrot.slane %v138_v54, 4 }
  0x55   :  { %v140_v61 = vadd.f32 %v139_v55, %v138_v54 }
  0x57   :  { %v141_v62 = vrot.slane %v140_v61, 2 }
  0x59   :  { %v142_v63 = vadd.f32 %v141_v62, %v140_v61 }
  0x5b   :  { %v143_v1 = vrot.slane %v142_v63, 1 }
  0x5d   :  { %v144_v3 = vadd.f32 %v143_v1, %v142_v63 }
  0x5f   :  { %v145_v4 = vmul.f32 0.0078125, %v144_v3 }
  0x61   :  { %v146_v5 = vadd.f32 1e-05, %v145_v4 }
  0x63   :  { %419 = vrsqrt.f32 %v146_v5 }
  0x6d   :  { %v420_v6 = vpop.eup %419 }
  0x6e   :  { %v148_v9 = vmul.f32 %v420_v6, %v513_v56  ;;  %v149_v10 = vmul.f32 %v420_v6, %v515_v57  ;;  %v156_v11 = vmul.f32 %v420_v6, %v84_v12  ;;  %v157_v13 = vmul.f32 %v420_v6, %v85_v16 }
  0x6f   :  { %v150_v15 = vmul.f32 %v420_v6, %v517_v58  ;;  %v151_v17 = vmul.f32 %v420_v6, %v519_v59  ;;  %v158_v18 = vmul.f32 %v420_v6, %v86_v20  ;;  %v159_v19 = vmul.f32 %v420_v6, %v87_v26 }
  0x70   :  { %v170_v22 = vmul.f32 %v580_v7, %v148_v9  ;;  %v171_v23 = vmul.f32 %v580_v7, %v149_v10  ;;  %v178_v56 = vmul.f32 %v580_v7, %v156_v11  ;;  %v179_v57 = vmul.f32 %v580_v7, %v157_v13 }
  0x71   :  { %v172_v12 = vmul.f32 %v580_v7, %v150_v15  ;;  %v173_v16 = vmul.f32 %v580_v7, %v151_v17  ;;  %v180_v25 = vmul.f32 %v580_v7, %v158_v18  ;;  %v181_v58 = vmul.f32 %v580_v7, %v159_v19 }
  0x72   :  { %v192_v59 = vadd.f32 %v587_v14, %v170_v22  ;;  %v193_v20 = vadd.f32 %v587_v14, %v171_v23  ;;  %v200_v26 = vadd.f32 %v587_v14, %v178_v56  ;;  %v201_v21 = vadd.f32 %v587_v14, %v179_v57 }
  0x73   :  { %v194_v28 = vadd.f32 %v587_v14, %v172_v12  ;;  %v195_v29 = vadd.f32 %v587_v14, %v173_v16  ;;  %v202_v32 = vadd.f32 %v587_v14, %v180_v25  ;;  %v203_v24 = vadd.f32 %v587_v14, %v181_v58 }
  0x74   :  { %v208_v34 = vmax.f32 %v192_v59, 0.0  ;;  %v209_v37 = vmax.f32 %v193_v20, 0.0  ;;  %v216_v27 = vmax.f32 %v200_v26, 0.0  ;;  %v217_v38 = vmax.f32 %v201_v21, 0.0 }
  0x75   :  { %v210_v30 = vmax.f32 %v194_v28, 0.0  ;;  %v211_v41 = vmax.f32 %v195_v29, 0.0  ;;  %v218_v43 = vmax.f32 %v202_v32, 0.0  ;;  %v219_v44 = vmax.f32 %v203_v24, 0.0 }
  0x76   :  { %v224_v36 = vpack.c.bf16 %v209_v37, %v208_v34  ;;  %v228_v45 = vpack.c.bf16 %v217_v38, %v216_v27  ;;  %v152_v46 = vmul.f32 %v420_v6, %v521_v60  ;;  %v153_v39 = vmul.f32 %v420_v6, %v529_v0 }
  0x77   :  { %v225_v47 = vpack.c.bf16 %v211_v41, %v210_v30  ;;  %v229_v48 = vpack.c.bf16 %v219_v44, %v218_v43  ;;  %v160_v49 = vmul.f32 %v420_v6, %v553_v31  ;;  %v161_v50 = vmul.f32 %v420_v6, %v556_v35 }
  0x78   :  { %399 = vmatprep.mubr.msk.bf16.mxu0 %vm36_vm1, %v224_v36  ;;  %407 = vmatprep.mubr.msk.bf16.mxu1 %vm36_vm1, %v228_v45  ;;  %v174_v42 = vmul.f32 %v580_v7, %v152_v46  ;;  %v175_v51 = vmul.f32 %v580_v7, %v153_v39  ;;  %v154_v52 = vmul.f32 %v420_v6, %v533_v2 }
  0x79   :  { %400 = vmatmul.mubr.msk.bf16.vlgmr.msra.gmra.mrb[0].mxu0 %vm36_vm1, %v225_v47  ;;  %408 = vmatmul.mubr.msk.bf16.vlgmr.msra.gmra.mrb[0].mxu1 %vm36_vm1, %v229_v48  ;;  %v182_v60 = vmul.f32 %v580_v7, %v160_v49  ;;  %v183_v0 = vmul.f32 %v580_v7, %v161_v50  ;;  %v155_v31 = vmul.f32 %v420_v6, %v540_v8 }
  0x7a   :  { %v196_v35 = vadd.f32 %v587_v14, %v174_v42  ;;  %v197_v53 = vadd.f32 %v587_v14, %v175_v51  ;;  %v176_v54 = vmul.f32 %v580_v7, %v154_v52  ;;  %v162_v55 = vmul.f32 %v420_v6, %v559_v40 }
  0x7b   :  { %v204_v2 = vadd.f32 %v587_v14, %v182_v60  ;;  %v205_v61 = vadd.f32 %v587_v14, %v183_v0  ;;  %v177_v62 = vmul.f32 %v580_v7, %v155_v31  ;;  %v163_v63 = vmul.f32 %v420_v6, %v564_v33 }
  0x7c   :  { %v212_v1 = vmax.f32 %v196_v35, 0.0  ;;  %v213_v3 = vmax.f32 %v197_v53, 0.0  ;;  %v198_v8 = vadd.f32 %v587_v14, %v176_v54  ;;  %v184_v4 = vmul.f32 %v580_v7, %v162_v55 }
  0x7d   :  { %v220_v5 = vmax.f32 %v204_v2, 0.0  ;;  %v221_v9 = vmax.f32 %v205_v61, 0.0  ;;  %v199_v10 = vadd.f32 %v587_v14, %v177_v62  ;;  %v185_v40 = vmul.f32 %v580_v7, %v163_v63 }
  0x7e   :  { %v226_v11 = vpack.c.bf16 %v213_v3, %v212_v1  ;;  %v214_v13 = vmax.f32 %v198_v8, 0.0  ;;  %v206_v15 = vadd.f32 %v587_v14, %v184_v4 }
  0x7f   :  { %v230_v17 = vpack.c.bf16 %v221_v9, %v220_v5  ;;  %v215_v18 = vmax.f32 %v199_v10, 0.0  ;;  %v207_v33 = vadd.f32 %v587_v14, %v185_v40 }
  0x80   :  { %403 = vmatprep.mubr.msk.bf16.mxu0 %vm36_vm1, %v226_v11  ;;  %v222_v6 = vmax.f32 %v206_v15, 0.0 }
  0x81   :  { %411 = vmatprep.mubr.msk.bf16.mxu1 %vm36_vm1, %v230_v17  ;;  %v227_v19 = vpack.c.bf16 %v215_v18, %v214_v13  ;;  %v223_v22 = vmax.f32 %v207_v33, 0.0 }
  0x83   :  { %404 = vmatmul.mubr.msk.bf16.gmra.mrb[4].mxu0 %vm36_vm1, %v227_v19  ;;  %v231_v23 = vpack.c.bf16 %v223_v22, %v222_v6 }
  0x85   :  { %412 = vmatmul.mubr.msk.bf16.gmra.mrb[4].mxu1 %vm36_vm1, %v231_v23 }
 0x14c   :  { %v401_v7 = vpop.f32.mrb[0].mxu0  ;;  %v409_v56 = vpop.f32.mrb[0].mxu1 }
 0x14d   :  { %360 = vst [vmem:[%s691_s4 + $0x10] sm:$0xff] %v401_v7  ;;  %368 = vst [vmem:[%s691_s4 + $0x50] sm:$0xff] %v409_v56  ;;  %v295_v14 = vpop.f32.mrb[1].mxu0  ;;  %v327_v57 = vpop.f32.mrb[1].mxu1 }
 0x14e   :  { %358 = vst [vmem:[%s691_s4] sm:$0xff] %v295_v14  ;;  %366 = vst [vmem:[%s691_s4 + $0x40] sm:$0xff] %v327_v57  ;;  %v402_v12 = vpop.f32.mrb[2].mxu0  ;;  %v410_v16 = vpop.f32.mrb[2].mxu1 }
 0x14f   :  { %361 = vst [vmem:[%s691_s4 + $0x18] sm:$0xff] %v402_v12  ;;  %369 = vst [vmem:[%s691_s4 + $0x58] sm:$0xff] %v410_v16  ;;  %v298_v25 = vpop.f32.mrb[3].mxu0  ;;  %v330_v58 = vpop.f32.mrb[3].mxu1 }
 0x150   :  { %359 = vst [vmem:[%s691_s4 + $0x8] sm:$0xff] %v298_v25  ;;  %367 = vst [vmem:[%s691_s4 + $0x48] sm:$0xff] %v330_v58 }
 0x156   :  { %v405_v59 = vpop.f32.mrb[4].mxu0 }
 0x157   :  { %364 = vst [vmem:[%s691_s4 + $0x30] sm:$0xff] %v405_v59  ;;  %v311_v20 = vpop.f32.mrb[5].mxu0 }
 0x158   :  { %v413_v26 = vpop.f32.mrb[4].mxu1  ;;  %362 = vst [vmem:[%s691_s4 + $0x20] sm:$0xff] %v311_v20  ;;  %v406_v21 = vpop.f32.mrb[6].mxu0 }
 0x159   :  { %372 = vst [vmem:[%s691_s4 + $0x70] sm:$0xff] %v413_v26  ;;  %v343_v28 = vpop.f32.mrb[5].mxu1  ;;  %365 = vst [vmem:[%s691_s4 + $0x38] sm:$0xff] %v406_v21  ;;  %v314_v29 = vpop.f32.mrb[7].mxu0 }
 0x15a   :  { %370 = vst [vmem:[%s691_s4 + $0x60] sm:$0xff] %v343_v28  ;;  %v414_v32 = vpop.f32.mrb[6].mxu1  ;;  %363 = vst [vmem:[%s691_s4 + $0x28] sm:$0xff] %v314_v29 }
 0x15b   :  { %373 = vst [vmem:[%s691_s4 + $0x78] sm:$0xff] %v414_v32  ;;  %v346_v24 = vpop.f32.mrb[7].mxu1 }
 0x15c   :  { %371 = vst [vmem:[%s691_s4 + $0x68] sm:$0xff] %v346_v24 }

// kernel: generator_forward.6
= control target key start
LH: loop header
LB: loop body
LE: loop exit
PB: predicated region body
PF: predicated region fallthrough
CT: control target
= control target key end

     0   :  { %12 = vsyncpa [#allocation3], 0  ;;  %s7248_s0 = inlined_call_operand.hbm [shape: f32[2,48], index: 0, kind: input, shape index: {}]   ;;  %s7249_s1 = inlined_call_operand.hbm [shape: bf16[48,4096], index: 1, kind: input, shape index: {}]   ;;  %s7250_s2 = inlined_call_operand.hbm [shape: f32[1,4096], index: 2, kind: input, shape index: {}]   ;;  %s7251_s3 = inlined_call_operand.hbm [shape: f32[1,4096], index: 3, kind: input, shape index: {}]   ;;  %s7252_s4 = inlined_call_operand.hbm [shape: bf16[4096,128], index: 4, kind: input, shape index: {}]   ;;  %s7253_s5 = inlined_call_operand.hbm [shape: f32[1,128], index: 5, kind: input, shape index: {}]   ;;  %s7254_s6 = inlined_call_operand.hbm [shape: f32[1,128], index: 6, kind: input, shape index: {}]   ;;  %s7255_s7 = inlined_call_operand.hbm [shape: f32[2,128], index: 7, kind: output, shape index: {}]  }
   0x1   :  { %13 = vsyncpa [#allocation6], 0 }
   0x2   :  { %14 = vsyncpa [#allocation9], 0 }
   0x3   :  { %15 = vsyncpa [#allocation12], 0 }
   0x4   :  { %16 = vsyncpa [#allocation4], 0  ;;  %s6477_s24 = smov [#allocation5]   ;;  %s6291_s28 = scalar_lea.hbm %s7249_s1, 12288 }
   0x5   :  { %s32_s25 = sshll.u32 %s6477_s24, 4  ;;  %p6292_p0 = scmp.ne.s32.totalorder %s7249_s1, %s6291_s28  ;;  %s33_s25 = int_to_ptr.vmem [resolvable:$true] %s32_s25 }
   0x6   :  { %p6295_p1 = scmp.lt.u32.totalorder %s6291_s28, %s7249_s1 }
   0x8   :  { %p6297_p2 = pnand %p6295_p1, %p6292_p0 }
   0xa   :  { %6300 = shalt.err (!%p6297_p2)
}
   0xb   :  { %s6301_s10 = scalar_lea.vmem %s33_s25, 12288  ;;  %p6306_p4 = scmp.lt.s32.totalorder %s33_s25, %s33_s25 }
   0xc   :  { %p6302_p3 = scmp.ne.s32.totalorder %s33_s25, %s6301_s10  ;;  %p6307_p5 = scmp.lt.s32.totalorder %s6301_s10, %s6301_s10 }
   0xe   :  { %p6308_p6 = por %p6307_p5, %p6306_p4 }
  0x10   :  { %p6309_p7 = pnand %p6308_p6, %p6302_p3 }
  0x12   :  { %6312 = shalt.err (!%p6309_p7)
}
  0x13   :  { %s6478_s11 = smov 2048   ;;  %s6479_s12 = smov 128  }
  0x14   :  { %38 = dma.hbm_to_vmem [thread:$0]  %s7249_s1, 12288, %s33_s25, [#allocation6], %s6478_s11, %s6478_s11, %s6479_s12  }
  0x15   :  { %s6480_s15 = smov [#allocation8]   ;;  %s6481_s17 = smov [#allocation11]  }
  0x16   :  { %s55_s16 = sshll.u32 %s6480_s15, 4  ;;  %s77_s18 = sshll.u32 %s6481_s17, 4  ;;  %s56_s16 = int_to_ptr.vmem [resolvable:$true] %s55_s16  ;;  %s78_s18 = int_to_ptr.vmem [resolvable:$true] %s77_s18 }
  0x17   :  { %s6313_s21 = scalar_lea.hbm %s7251_s3, 512 }
  0x18   :  { %p6314_p8 = scmp.ne.s32.totalorder %s7251_s3, %s6313_s21  ;;  %p6317_p9 = scmp.lt.u32.totalorder %s6313_s21, %s7251_s3 }
  0x1a   :  { %p6319_p10 = pnand %p6317_p9, %p6314_p8 }
  0x1c   :  { %6322 = shalt.err (!%p6319_p10)
}
  0x1d   :  { %s6323_s1 = scalar_lea.vmem %s56_s16, 512  ;;  %p6328_p12 = scmp.lt.s32.totalorder %s56_s16, %s56_s16 }
  0x1e   :  { %p6324_p11 = scmp.ne.s32.totalorder %s56_s16, %s6323_s1  ;;  %p6329_p13 = scmp.lt.s32.totalorder %s6323_s1, %s6323_s1 }
  0x20   :  { %p6330_p0 = por %p6329_p13, %p6328_p12 }
  0x22   :  { %p6331_p1 = pnand %p6330_p0, %p6324_p11 }
  0x24   :  { %6334 = shalt.err (!%p6331_p1)
}
  0x25   :  { %58 = dma.hbm_to_vmem [thread:$0]  %s7251_s3, 512, %s56_s16, [#allocation9]  }
  0x26   :  { %s6335_s30 = scalar_lea.hbm %s7253_s5, 16 }
  0x27   :  { %p6336_p2 = scmp.ne.s32.totalorder %s7253_s5, %s6335_s30  ;;  %p6339_p3 = scmp.lt.u32.totalorder %s6335_s30, %s7253_s5 }
  0x29   :  { %p6341_p4 = pnand %p6339_p3, %p6336_p2 }
  0x2b   :  { %6344 = shalt.err (!%p6341_p4)
}
  0x2c   :  { %s6345_s12 = scalar_lea.vmem %s78_s18, 16  ;;  %s6349_s13 = scalar_lea.vmem %s78_s18, 32 }
  0x2d   :  { %p6346_p5 = scmp.ne.s32.totalorder %s78_s18, %s6345_s12  ;;  %p6350_p6 = scmp.lt.s32.totalorder %s78_s18, %s78_s18 }
  0x2e   :  { %p6351_p7 = scmp.lt.s32.totalorder %s6349_s13, %s6345_s12 }
  0x30   :  { %p6352_p8 = por %p6351_p7, %p6350_p6 }
  0x32   :  { %p6353_p9 = pnand %p6352_p8, %p6346_p5 }
  0x34   :  { %6356 = shalt.err (!%p6353_p9)
}
  0x35   :  { %80 = dma.hbm_to_vmem [thread:$0]  %s7253_s5, 16, %s78_s18, [#allocation12]  }
  0x36   :  { %s6482_s15 = smov [#allocation2]   ;;  %s6483_s17 = smov [#allocation7]  }
  0x37   :  { %s23_s16 = sshll.u32 %s6482_s15, 4  ;;  %s45_s19 = sshll.u32 %s6483_s17, 4  ;;  %s24_s16 = int_to_ptr.vmem [resolvable:$true] %s23_s16  ;;  %s46_s19 = int_to_ptr.vmem [resolvable:$true] %s45_s19 }
  0x38   :  { %s6357_s22 = scalar_lea.hbm %s7248_s0, 32 }
  0x39   :  { %p6358_p10 = scmp.ne.s32.totalorder %s7248_s0, %s6357_s22  ;;  %p6361_p11 = scmp.lt.u32.totalorder %s6357_s22, %s7248_s0 }
  0x3b   :  { %p6363_p12 = pnand %p6361_p11, %p6358_p10 }
  0x3d   :  { %6366 = shalt.err (!%p6363_p12)
}
  0x3e   :  { %s6367_s5 = scalar_lea.vmem %s24_s16, 32  ;;  %p6372_p0 = scmp.lt.s32.totalorder %s24_s16, %s24_s16 }
  0x3f   :  { %p6368_p13 = scmp.ne.s32.totalorder %s24_s16, %s6367_s5  ;;  %p6373_p1 = scmp.lt.s32.totalorder %s6367_s5, %s6367_s5 }
  0x41   :  { %p6374_p2 = por %p6373_p1, %p6372_p0 }
  0x43   :  { %p6375_p3 = pnand %p6374_p2, %p6368_p13 }
  0x45   :  { %6378 = shalt.err (!%p6375_p3)
}
  0x46   :  { %26 = dma.hbm_to_vmem [thread:$0]  %s7248_s0, 32, %s24_s16, [#allocation3]  }
  0x47   :  { %s6379_s29 = scalar_lea.hbm %s7250_s2, 512 }
  0x48   :  { %p6380_p4 = scmp.ne.s32.totalorder %s7250_s2, %s6379_s29  ;;  %p6383_p5 = scmp.lt.u32.totalorder %s6379_s29, %s7250_s2 }
  0x4a   :  { %p6385_p6 = pnand %p6383_p5, %p6380_p4 }
  0x4c   :  { %6388 = shalt.err (!%p6385_p6)
}
  0x4d   :  { %s6389_s11 = scalar_lea.vmem %s46_s19, 512  ;;  %p6394_p8 = scmp.lt.s32.totalorder %s46_s19, %s46_s19 }
  0x4e   :  { %p6390_p7 = scmp.ne.s32.totalorder %s46_s19, %s6389_s11  ;;  %p6395_p9 = scmp.lt.s32.totalorder %s6389_s11, %s6389_s11 }
  0x50   :  { %p6396_p10 = por %p6395_p9, %p6394_p8 }
  0x52   :  { %p6397_p11 = pnand %p6396_p10, %p6390_p7 }
  0x54   :  { %6400 = shalt.err (!%p6397_p11)
}
  0x55   :  { %48 = dma.hbm_to_vmem [thread:$0]  %s7250_s2, 512, %s46_s19, [#allocation6]  }
  0x56   :  { %s6484_s13 = smov [#allocation10]   ;;  %s6401_s16 = scalar_lea.hbm %s7252_s4, 32768 }
  0x57   :  { %s64_s3 = sshll.u32 %s6484_s13, 4  ;;  %p6402_p12 = scmp.ne.s32.totalorder %s7252_s4, %s6401_s16  ;;  %s65_s3 = int_to_ptr.vmem [resolvable:$true] %s64_s3 }
  0x58   :  { %p6405_p13 = scmp.lt.u32.totalorder %s6401_s16, %s7252_s4 }
  0x5a   :  { %p6407_p0 = pnand %p6405_p13, %p6402_p12 }
  0x5c   :  { %6410 = shalt.err (!%p6407_p0)
}
  0x5d   :  { %s6411_s23 = scalar_lea.vmem %s65_s3, 32768  ;;  %p6416_p2 = scmp.lt.s32.totalorder %s65_s3, %s65_s3 }
  0x5e   :  { %p6412_p1 = scmp.ne.s32.totalorder %s65_s3, %s6411_s23  ;;  %p6417_p3 = scmp.lt.s32.totalorder %s6411_s23, %s6411_s23 }
  0x60   :  { %p6418_p4 = por %p6417_p3, %p6416_p2 }
  0x62   :  { %p6419_p5 = pnand %p6418_p4, %p6412_p1 }
  0x64   :  { %6422 = shalt.err (!%p6419_p5)
}
  0x65   :  { %s6485_s2 = smov 64   ;;  %s6486_s19 = smov 4  }
  0x66   :  { %70 = dma.hbm_to_vmem [thread:$0]  %s7252_s4, 32768, %s65_s3, [#allocation9], %s6485_s2, %s6485_s2, %s6486_s19  }
  0x67   :  { %s6487_s1 = smov [#allocation13]   ;;  %s6423_s27 = scalar_lea.hbm %s7254_s6, 16 }
  0x68   :  { %s87_s5 = sshll.u32 %s6487_s1, 4  ;;  %p6424_p6 = scmp.ne.s32.totalorder %s7254_s6, %s6423_s27  ;;  %s88_s5 = int_to_ptr.vmem [resolvable:$true] %s87_s5 }
  0x69   :  { %p6427_p7 = scmp.lt.u32.totalorder %s6423_s27, %s7254_s6 }
  0x6b   :  { %p6429_p8 = pnand %p6427_p7, %p6424_p6 }
  0x6d   :  { %6432 = shalt.err (!%p6429_p8)
}
  0x6e   :  { %s6433_s9 = scalar_lea.vmem %s88_s5, 16  ;;  %s6437_s4 = scalar_lea.vmem %s88_s5, 32 }
  0x6f   :  { %p6434_p9 = scmp.ne.s32.totalorder %s88_s5, %s6433_s9  ;;  %p6438_p10 = scmp.lt.s32.totalorder %s88_s5, %s88_s5 }
  0x70   :  { %p6439_p11 = scmp.lt.s32.totalorder %s6437_s4, %s6433_s9 }
  0x72   :  { %p6440_p12 = por %p6439_p11, %p6438_p10 }
  0x74   :  { %p6441_p13 = pnand %p6440_p12, %p6434_p9 }
  0x76   :  { %6444 = shalt.err (!%p6441_p13)
}
  0x77   :  { %90 = dma.hbm_to_vmem [thread:$0]  %s7254_s6, 16, %s88_s5, [#allocation12]  }
  0x78   :  { %6467 = dma.done.wait [#allocation3], 32  }
  0x79   :  { %6468 = vsyncadd [#allocation3], 4294967264 }
  0x7a   :  { %6469 = dma.done.wait [#allocation6], 12800  }
  0x7b   :  { %6470 = vsyncadd [#allocation6], 4294954496 }
  0x7c   :  { %6471 = dma.done.wait [#allocation9], 33280  }
  0x7d   :  { %6472 = vsyncadd [#allocation9], 4294934016 }
  0x7e   :  { %6473 = dma.done.wait [#allocation12], 32  }
  0x7f   :  { %6474 = vsyncadd [#allocation12], 4294967264  ;;  %v6488_v0 = vmov 0   ;;  %v115_v1 = vld [vmem:[#allocation5] sm:$0xff]  ;;  %v116_v3 = vld [vmem:[#allocation5 + $0x8] sm:$0xff]  ;;  %vm691_vm0 = vcmask 392192  }
  0x80   :  { %727 = vmatprep.mubr.bf16.mxu0 %v6488_v0  ;;  %768 = vmatprep.mubr.bf16.mxu1 %v6488_v0  ;;  %v131_v2 = vld [vmem:[#allocation5 + $0x80] sm:$0xff]  ;;  %v132_v5 = vld [vmem:[#allocation5 + $0x88] sm:$0xff]  ;;  %v117_v23 = vld [vmem:[#allocation5 + $0x10] sm:$0xff]  ;;  %vm1359_vm1 = vcmask 1041408   ;;  %s6489_s6 = smov [#allocation14]  }
  0x81   :  { %v5235_v4 = vcombine.high %v115_v1, %v131_v2  ;;  %v5234_v6 = vcombine.low %v115_v1, %v131_v2  ;;  %v147_v7 = vld [vmem:[#allocation5 + $0x100] sm:$0xff]  ;;  %v5237_v9 = vcombine.high %v116_v3, %v132_v5  ;;  %v5236_v10 = vcombine.low %v116_v3, %v132_v5  ;;  %v148_v12 = vld [vmem:[#allocation5 + $0x108] sm:$0xff]  ;;  %v133_v24 = vld [vmem:[#allocation5 + $0x90] sm:$0xff]  ;;  %s5222_s0 = sshll.u32 %s6489_s6, 4  ;;  %s5223_s0 = int_to_ptr.vmem [resolvable:$true] %s5222_s0 }
  0x82   :  { %v163_v8 = vld [vmem:[#allocation5 + $0x180] sm:$0xff]  ;;  %v164_v13 = vld [vmem:[#allocation5 + $0x188] sm:$0xff]  ;;  %v118_v25 = vld [vmem:[#allocation5 + $0x18] sm:$0xff]  ;;  %v5239_v30 = vcombine.high %v117_v23, %v133_v24  ;;  %v5238_v37 = vcombine.low %v117_v23, %v133_v24  ;;  %s6445_s12 = scalar_lea.vmem %s5223_s0, 32  ;;  %p6450_p1 = scmp.lt.s32.totalorder %s5223_s0, %s5223_s0 }
  0x83   :  { %v5267_v11 = vcombine.high %v147_v7, %v163_v8  ;;  %v179_v14 = vld [vmem:[#allocation5 + $0x200] sm:$0xff]  ;;  %695 = vmatprep.subr.bf16.mxu0 %v5235_v4  ;;  %v5269_v15 = vcombine.high %v148_v12, %v164_v13  ;;  %v180_v17 = vld [vmem:[#allocation5 + $0x208] sm:$0xff]  ;;  %736 = vmatprep.subr.bf16.mxu1 %v5237_v9  ;;  %v5266_v19 = vcombine.low %v147_v7, %v163_v8  ;;  %v134_v26 = vld [vmem:[#allocation5 + $0x98] sm:$0xff]  ;;  %p6446_p0 = scmp.ne.s32.totalorder %s5223_s0, %s6445_s12  ;;  %p6451_p2 = scmp.lt.s32.totalorder %s6445_s12, %s6445_s12 }
  0x84   :  { %v195_v16 = vld [vmem:[#allocation5 + $0x280] sm:$0xff]  ;;  %v196_v18 = vld [vmem:[#allocation5 + $0x288] sm:$0xff]  ;;  %696 = vmatpush1.bf16.msra.mxu0 %v5234_v6  ;;  %737 = vmatpush1.bf16.msra.mxu1 %v5236_v10  ;;  %v5268_v20 = vcombine.low %v148_v12, %v164_v13  ;;  %v113_v28 = vld [vmem:[#allocation2] sm:$0x3]  ;;  %v5241_v31 = vcombine.high %v118_v25, %v134_v26  ;;  %v5240_v38 = vcombine.low %v118_v25, %v134_v26 }
  0x85   :  { %697 = vmatprep.subr.bf16.mxu0 %v5267_v11  ;;  %v5299_v21 = vcombine.high %v179_v14, %v195_v16  ;;  %738 = vmatprep.subr.bf16.mxu1 %v5269_v15  ;;  %v5301_v22 = vcombine.high %v180_v17, %v196_v18  ;;  %v5298_v27 = vcombine.low %v179_v14, %v195_v16  ;;  %v149_v32 = vld [vmem:[#allocation5 + $0x110] sm:$0xff]  ;;  %v150_v35 = vld [vmem:[#allocation5 + $0x118] sm:$0xff]  ;;  %v119_v49 = vld [vmem:[#allocation5 + $0x20] sm:$0xff]  ;;  %p6452_p3 = por %p6451_p2, %p6450_p1 }
  0x86   :  { %v5300_v29 = vcombine.low %v180_v17, %v196_v18  ;;  %v165_v33 = vld [vmem:[#allocation5 + $0x190] sm:$0xff]  ;;  %v6616_v34 = vpack.c.bf16 %v113_v28, %v113_v28  ;;  %v166_v36 = vld [vmem:[#allocation5 + $0x198] sm:$0xff]  ;;  %v135_v50 = vld [vmem:[#allocation5 + $0xa0] sm:$0xff] }
  0x87   :  { %v5271_v39 = vcombine.high %v149_v32, %v165_v33  ;;  %v5273_v40 = vcombine.high %v150_v35, %v166_v36  ;;  %v181_v41 = vld [vmem:[#allocation5 + $0x210] sm:$0xff]  ;;  %v182_v43 = vld [vmem:[#allocation5 + $0x218] sm:$0xff]  ;;  %v5270_v45 = vcombine.low %v149_v32, %v165_v33  ;;  %v5272_v46 = vcombine.low %v150_v35, %v166_v36  ;;  %v120_v51 = vld [vmem:[#allocation5 + $0x28] sm:$0xff]  ;;  %p6453_p4 = pnand %p6452_p3, %p6446_p0 }
  0x88   :  { %698 = vmatpush1.bf16.msra.mxu0 %v5266_v19  ;;  %739 = vmatpush1.bf16.msra.mxu1 %v5268_v20  ;;  %v197_v42 = vld [vmem:[#allocation5 + $0x290] sm:$0xff]  ;;  %v198_v44 = vld [vmem:[#allocation5 + $0x298] sm:$0xff]  ;;  %v136_v52 = vld [vmem:[#allocation5 + $0xa8] sm:$0xff]  ;;  %v5243_v55 = vcombine.high %v119_v49, %v135_v50  ;;  %v5242_v61 = vcombine.low %v119_v49, %v135_v50 }
  0x89   :  { %699 = vmatprep.subr.bf16.mxu0 %v5299_v21  ;;  %740 = vmatprep.subr.bf16.mxu1 %v5301_v22  ;;  %v5303_v47 = vcombine.high %v181_v41, %v197_v42  ;;  %v5305_v48 = vcombine.high %v182_v43, %v198_v44  ;;  %v5302_v53 = vcombine.low %v181_v41, %v197_v42  ;;  %v151_v57 = vld [vmem:[#allocation5 + $0x120] sm:$0xff]  ;;  %v152_v59 = vld [vmem:[#allocation5 + $0x128] sm:$0xff]  ;;  %v121_v10 = vld [vmem:[#allocation5 + $0x30] sm:$0xff] }
  0x8a   :  { %v5304_v54 = vcombine.low %v182_v43, %v198_v44  ;;  %v5245_v56 = vcombine.high %v120_v51, %v136_v52  ;;  %v167_v58 = vld [vmem:[#allocation5 + $0x1a0] sm:$0xff]  ;;  %v168_v60 = vld [vmem:[#allocation5 + $0x1a8] sm:$0xff]  ;;  %v5244_v62 = vcombine.low %v120_v51, %v136_v52  ;;  %v137_v11 = vld [vmem:[#allocation5 + $0xb0] sm:$0xff] }
  0x8b   :  { %v5275_v63 = vcombine.high %v151_v57, %v167_v58  ;;  %v5277_v1 = vcombine.high %v152_v59, %v168_v60  ;;  %v183_v2 = vld [vmem:[#allocation5 + $0x220] sm:$0xff]  ;;  %v184_v4 = vld [vmem:[#allocation5 + $0x228] sm:$0xff]  ;;  %v5274_v6 = vcombine.low %v151_v57, %v167_v58  ;;  %v5276_v7 = vcombine.low %v152_v59, %v168_v60  ;;  %v122_v12 = vld [vmem:[#allocation5 + $0x38] sm:$0xff] }
  0x8c   :  { %700 = vmatpush1.bf16.msra.mxu0 %v5298_v27  ;;  %741 = vmatpush1.bf16.msra.mxu1 %v5300_v29  ;;  %v199_v3 = vld [vmem:[#allocation5 + $0x2a0] sm:$0xff]  ;;  %v200_v5 = vld [vmem:[#allocation5 + $0x2a8] sm:$0xff]  ;;  %v138_v13 = vld [vmem:[#allocation5 + $0xb8] sm:$0xff]  ;;  %v5247_v18 = vcombine.high %v121_v10, %v137_v11  ;;  %v5246_v22 = vcombine.low %v121_v10, %v137_v11 }
  0x8d   :  { %777 = vmatprep.subr.bf16.mxu0 %v5239_v30  ;;  %818 = vmatprep.subr.bf16.mxu1 %v5241_v31  ;;  %v5307_v8 = vcombine.high %v183_v2, %v199_v3  ;;  %v5309_v9 = vcombine.high %v184_v4, %v200_v5  ;;  %v5306_v14 = vcombine.low %v183_v2, %v199_v3  ;;  %v153_v15 = vld [vmem:[#allocation5 + $0x130] sm:$0xff]  ;;  %v154_v19 = vld [vmem:[#allocation5 + $0x138] sm:$0xff]  ;;  %v123_v31 = vld [vmem:[#allocation5 + $0x40] sm:$0xff] }
  0x8e   :  { %v169_v16 = vld [vmem:[#allocation5 + $0x1b0] sm:$0xff]  ;;  %v5308_v17 = vcombine.low %v184_v4, %v200_v5  ;;  %v170_v20 = vld [vmem:[#allocation5 + $0x1b8] sm:$0xff]  ;;  %v5249_v21 = vcombine.high %v122_v12, %v138_v13  ;;  %v5248_v25 = vcombine.low %v122_v12, %v138_v13  ;;  %v139_v32 = vld [vmem:[#allocation5 + $0xc0] sm:$0xff] }
  0x8f   :  { %5330 = vmatmul.mubr.msk.bf16.vlgmr.msra.gmra.mrb[0].mxu0 %vm691_vm0, %v6616_v34  ;;  %5331 = vmatmul.mubr.msk.bf16.vlgmr.msra.gmra.mrb[0].mxu1 %vm691_vm0, %v6616_v34  ;;  %v185_v23 = vld [vmem:[#allocation5 + $0x230] sm:$0xff]  ;;  %v5279_v26 = vcombine.high %v153_v15, %v169_v16  ;;  %v186_v27 = vld [vmem:[#allocation5 + $0x238] sm:$0xff]  ;;  %v5281_v29 = vcombine.high %v154_v19, %v170_v20  ;;  %v5278_v30 = vcombine.low %v153_v15, %v169_v16  ;;  %v124_v36 = vld [vmem:[#allocation5 + $0x48] sm:$0xff] }
  0x90   :  { %778 = vmatpush1.bf16.msra.mxu0 %v5238_v37  ;;  %819 = vmatpush1.bf16.msra.mxu1 %v5240_v38  ;;  %v201_v24 = vld [vmem:[#allocation5 + $0x2b0] sm:$0xff]  ;;  %v202_v28 = vld [vmem:[#allocation5 + $0x2b8] sm:$0xff]  ;;  %v5280_v33 = vcombine.low %v154_v19, %v170_v20  ;;  %v140_v37 = vld [vmem:[#allocation5 + $0xc8] sm:$0xff]  ;;  %v5251_v43 = vcombine.high %v123_v31, %v139_v32 }
  0x91   :  { %779 = vmatprep.subr.bf16.mxu0 %v5271_v39  ;;  %820 = vmatprep.subr.bf16.mxu1 %v5273_v40  ;;  %v5311_v35 = vcombine.high %v185_v23, %v201_v24  ;;  %v5313_v38 = vcombine.high %v186_v27, %v202_v28  ;;  %v5310_v39 = vcombine.low %v185_v23, %v201_v24  ;;  %v155_v40 = vld [vmem:[#allocation5 + $0x140] sm:$0xff]  ;;  %v156_v44 = vld [vmem:[#allocation5 + $0x148] sm:$0xff]  ;;  %v141_v57 = vld [vmem:[#allocation5 + $0xd0] sm:$0xff] }
  0x92   :  { %809 = vmatprep.mubr.bf16.mxu0 %v6488_v0  ;;  %850 = vmatprep.mubr.bf16.mxu1 %v6488_v0  ;;  %v171_v41 = vld [vmem:[#allocation5 + $0x1c0] sm:$0xff]  ;;  %v5312_v42 = vcombine.low %v186_v27, %v202_v28  ;;  %v5252_v50 = vcombine.low %v124_v36, %v140_v37  ;;  %v188_v52 = vld [vmem:[#allocation5 + $0x248] sm:$0xff]  ;;  %v126_v60 = vld [vmem:[#allocation5 + $0x58] sm:$0xff] }
  0x93   :  { %v203_v49 = vld [vmem:[#allocation5 + $0x2c0] sm:$0xff]  ;;  %v5283_v51 = vcombine.high %v155_v40, %v171_v41  ;;  %v173_v2 = vld [vmem:[#allocation5 + $0x1d0] sm:$0xff]  ;;  %v158_v5 = vld [vmem:[#allocation5 + $0x158] sm:$0xff] }
  0x94   :  { %780 = vmatpush1.bf16.msra.mxu0 %v5270_v45  ;;  %821 = vmatpush1.bf16.msra.mxu1 %v5272_v46  ;;  %v172_v45 = vld [vmem:[#allocation5 + $0x1c8] sm:$0xff]  ;;  %v5253_v46 = vcombine.high %v124_v36, %v140_v37  ;;  %v205_v10 = vld [vmem:[#allocation5 + $0x2d0] sm:$0xff]  ;;  %v190_v13 = vld [vmem:[#allocation5 + $0x258] sm:$0xff] }
  0x95   :  { %781 = vmatprep.subr.bf16.mxu0 %v5303_v47  ;;  %822 = vmatprep.subr.bf16.mxu1 %v5305_v48  ;;  %v5250_v47 = vcombine.low %v123_v31, %v139_v32  ;;  %v187_v48 = vld [vmem:[#allocation5 + $0x240] sm:$0xff]  ;;  %v5284_v58 = vcombine.low %v156_v44, %v172_v45 }
  0x96   :  { %v5315_v59 = vcombine.high %v187_v48, %v203_v49 }
  0x98   :  { %782 = vmatpush1.bf16.msra.mxu0 %v5302_v53  ;;  %823 = vmatpush1.bf16.msra.mxu1 %v5304_v54  ;;  %v204_v53 = vld [vmem:[#allocation5 + $0x2c8] sm:$0xff]  ;;  %v5285_v54 = vcombine.high %v156_v44, %v172_v45 }
  0x99   :  { %859 = vmatprep.subr.bf16.mxu0 %v5243_v55  ;;  %900 = vmatprep.subr.bf16.mxu1 %v5245_v56  ;;  %v5282_v55 = vcombine.low %v155_v40, %v171_v41  ;;  %v125_v56 = vld [vmem:[#allocation5 + $0x50] sm:$0xff]  ;;  %v5316_v3 = vcombine.low %v188_v52, %v204_v53 }
  0x9a   :  { %v5255_v4 = vcombine.high %v125_v56, %v141_v57 }
  0x9b   :  { %5332 = vmatmul.mubr.msk.bf16.vlgmr.msra.gmra.mrb[4].mxu0 %vm691_vm0, %v6616_v34  ;;  %5333 = vmatmul.mubr.msk.bf16.vlgmr.msra.gmra.mrb[4].mxu1 %vm691_vm0, %v6616_v34 }
  0x9c   :  { %860 = vmatpush1.bf16.msra.mxu0 %v5242_v61  ;;  %901 = vmatpush1.bf16.msra.mxu1 %v5244_v62  ;;  %v142_v61 = vld [vmem:[#allocation5 + $0xd8] sm:$0xff]  ;;  %v5317_v62 = vcombine.high %v188_v52, %v204_v53 }
  0x9d   :  { %861 = vmatprep.subr.bf16.mxu0 %v5275_v63  ;;  %902 = vmatprep.subr.bf16.mxu1 %v5277_v1  ;;  %v5314_v63 = vcombine.low %v187_v48, %v203_v49  ;;  %v157_v1 = vld [vmem:[#allocation5 + $0x150] sm:$0xff]  ;;  %v5256_v11 = vcombine.low %v126_v60, %v142_v61 }
  0x9e   :  { %891 = vmatprep.mubr.bf16.mxu0 %v6488_v0  ;;  %932 = vmatprep.mubr.bf16.mxu1 %v6488_v0  ;;  %v5287_v12 = vcombine.high %v157_v1, %v173_v2  ;;  %v5286_v16 = vcombine.low %v157_v1, %v173_v2 }
  0xa0   :  { %862 = vmatpush1.bf16.msra.mxu0 %v5274_v6  ;;  %903 = vmatpush1.bf16.msra.mxu1 %v5276_v7  ;;  %v174_v6 = vld [vmem:[#allocation5 + $0x1d8] sm:$0xff]  ;;  %v5257_v7 = vcombine.high %v126_v60, %v142_v61 }
  0xa1   :  { %863 = vmatprep.subr.bf16.mxu0 %v5307_v8  ;;  %904 = vmatprep.subr.bf16.mxu1 %v5309_v9  ;;  %v5254_v8 = vcombine.low %v125_v56, %v141_v57  ;;  %v189_v9 = vld [vmem:[#allocation5 + $0x250] sm:$0xff]  ;;  %v5289_v15 = vcombine.high %v158_v5, %v174_v6  ;;  %v5288_v19 = vcombine.low %v158_v5, %v174_v6 }
  0xa2   :  { %v5319_v20 = vcombine.high %v189_v9, %v205_v10  ;;  %v5318_v24 = vcombine.low %v189_v9, %v205_v10  ;;  %v5970_v9 = vld [vmem:[#allocation10 + $0xc0] sm:$0xff]  }
  0xa3   :  { %v5971_v10 = vld [vmem:[#allocation10] sm:$0xff]  }
  0xa4   :  { %864 = vmatpush1.bf16.msra.mxu0 %v5306_v14  ;;  %905 = vmatpush1.bf16.msra.mxu1 %v5308_v17  ;;  %v206_v14 = vld [vmem:[#allocation5 + $0x2d8] sm:$0xff]  ;;  %v127_v17 = vld [vmem:[#allocation5 + $0x60] sm:$0xff] }
  0xa5   :  { %941 = vmatprep.subr.bf16.mxu0 %v5247_v18  ;;  %982 = vmatprep.subr.bf16.mxu1 %v5249_v21  ;;  %v143_v18 = vld [vmem:[#allocation5 + $0xe0] sm:$0xff]  ;;  %v128_v21 = vld [vmem:[#allocation5 + $0x68] sm:$0xff]  ;;  %v5321_v23 = vcombine.high %v190_v13, %v206_v14  ;;  %v5320_v27 = vcombine.low %v190_v13, %v206_v14 }
  0xa6   :  { %v5259_v28 = vcombine.high %v127_v17, %v143_v18  ;;  %v5258_v32 = vcombine.low %v127_v17, %v143_v18  ;;  %v5975_v13 = vld [vmem:[#allocation10 + $0x8] sm:$0xff]   ;;  %v5979_v17 = vld [vmem:[#allocation10 + $0x10] sm:$0xff]   ;;  %v5981_v18 = vld [vmem:[#allocation10 + $0x58] sm:$0xff]  }
  0xa7   :  { %5334 = vmatmul.mubr.msk.bf16.vlgmr.msra.gmra.mrb[8].mxu0 %vm691_vm0, %v6616_v34  ;;  %5335 = vmatmul.mubr.msk.bf16.vlgmr.msra.gmra.mrb[8].mxu1 %vm691_vm0, %v6616_v34  ;;  %v5976_v14 = vld [vmem:[#allocation10 + $0x88] sm:$0xff]  }
  0xa8   :  { %942 = vmatpush1.bf16.msra.mxu0 %v5246_v22  ;;  %983 = vmatpush1.bf16.msra.mxu1 %v5248_v25  ;;  %v144_v22 = vld [vmem:[#allocation5 + $0xe8] sm:$0xff]  ;;  %v159_v25 = vld [vmem:[#allocation5 + $0x160] sm:$0xff] }
  0xa9   :  { %943 = vmatprep.subr.bf16.mxu0 %v5279_v26  ;;  %984 = vmatprep.subr.bf16.mxu1 %v5281_v29  ;;  %v175_v26 = vld [vmem:[#allocation5 + $0x1e0] sm:$0xff]  ;;  %v160_v29 = vld [vmem:[#allocation5 + $0x168] sm:$0xff]  ;;  %v5261_v31 = vcombine.high %v128_v21, %v144_v22  ;;  %v5260_v36 = vcombine.low %v128_v21, %v144_v22  ;;  %v5984_v21 = vld [vmem:[#allocation10 + $0x98] sm:$0xff]  }
  0xaa   :  { %973 = vmatprep.mubr.bf16.mxu0 %v6488_v0  ;;  %1014 = vmatprep.mubr.bf16.mxu1 %v6488_v0  ;;  %v5291_v37 = vcombine.high %v159_v25, %v175_v26  ;;  %v5290_v41 = vcombine.low %v159_v25, %v175_v26  ;;  %v5985_v22 = vld [vmem:[#allocation10 + $0x60] sm:$0xff]   ;;  %v5989_v26 = vld [vmem:[#allocation10 + $0x68] sm:$0xff]  }
  0xab   :  { %v5988_v25 = vld [vmem:[#allocation10 + $0xa0] sm:$0xff]  }
  0xac   :  { %944 = vmatpush1.bf16.msra.mxu0 %v5278_v30  ;;  %985 = vmatpush1.bf16.msra.mxu1 %v5280_v33  ;;  %v176_v30 = vld [vmem:[#allocation5 + $0x1e8] sm:$0xff]  ;;  %v191_v33 = vld [vmem:[#allocation5 + $0x260] sm:$0xff] }
  0xad   :  { %945 = vmatprep.subr.bf16.mxu0 %v5311_v35  ;;  %986 = vmatprep.subr.bf16.mxu1 %v5313_v38  ;;  %v207_v35 = vld [vmem:[#allocation5 + $0x2e0] sm:$0xff]  ;;  %v192_v38 = vld [vmem:[#allocation5 + $0x268] sm:$0xff]  ;;  %v5293_v40 = vcombine.high %v160_v29, %v176_v30  ;;  %v5292_v44 = vcombine.low %v160_v29, %v176_v30  ;;  %v5993_v30 = vld [vmem:[#allocation10 + $0x70] sm:$0xff]  }
  0xae   :  { %v5323_v45 = vcombine.high %v191_v33, %v207_v35  ;;  %v5322_v49 = vcombine.low %v191_v33, %v207_v35  ;;  %v5992_v29 = vld [vmem:[#allocation10 + $0xa8] sm:$0xff]   ;;  %v5996_v33 = vld [vmem:[#allocation10 + $0xb0] sm:$0xff]   ;;  %v5997_v35 = vld [vmem:[#allocation10 + $0x78] sm:$0xff]  }
  0xb0   :  { %946 = vmatpush1.bf16.msra.mxu0 %v5310_v39  ;;  %987 = vmatpush1.bf16.msra.mxu1 %v5312_v42  ;;  %v208_v39 = vld [vmem:[#allocation5 + $0x2e8] sm:$0xff]  ;;  %v129_v42 = vld [vmem:[#allocation5 + $0x70] sm:$0xff] }
  0xb1   :  { %1023 = vmatprep.subr.bf16.mxu0 %v5251_v43  ;;  %1064 = vmatprep.subr.bf16.mxu1 %v5253_v46  ;;  %v145_v43 = vld [vmem:[#allocation5 + $0xf0] sm:$0xff]  ;;  %v130_v46 = vld [vmem:[#allocation5 + $0x78] sm:$0xff]  ;;  %v5325_v48 = vcombine.high %v192_v38, %v208_v39  ;;  %v5324_v52 = vcombine.low %v192_v38, %v208_v39  ;;  %v6001_v39 = vld [vmem:[#allocation10 + $0x140] sm:$0xff]  }
  0xb2   :  { %v5263_v53 = vcombine.high %v129_v42, %v145_v43  ;;  %v5262_v57 = vcombine.low %v129_v42, %v145_v43  ;;  %v6000_v38 = vld [vmem:[#allocation10 + $0xb8] sm:$0xff]  }
  0xb3   :  { %5336 = vmatmul.mubr.msk.bf16.vlgmr.msra.gmra.mrb[12].mxu0 %vm691_vm0, %v6616_v34  ;;  %5337 = vmatmul.mubr.msk.bf16.vlgmr.msra.gmra.mrb[12].mxu1 %vm691_vm0, %v6616_v34 }
  0xb4   :  { %1024 = vmatpush1.bf16.msra.mxu0 %v5250_v47  ;;  %1065 = vmatpush1.bf16.msra.mxu1 %v5252_v50  ;;  %v146_v47 = vld [vmem:[#allocation5 + $0xf8] sm:$0xff]  ;;  %v161_v50 = vld [vmem:[#allocation5 + $0x170] sm:$0xff] }
  0xb5   :  { %1025 = vmatprep.subr.bf16.mxu0 %v5283_v51  ;;  %1066 = vmatprep.subr.bf16.mxu1 %v5285_v54  ;;  %v177_v51 = vld [vmem:[#allocation5 + $0x1f0] sm:$0xff]  ;;  %v162_v54 = vld [vmem:[#allocation5 + $0x178] sm:$0xff]  ;;  %v5265_v56 = vcombine.high %v130_v46, %v146_v47  ;;  %v5264_v60 = vcombine.low %v130_v46, %v146_v47 }
  0xb6   :  { %1055 = vmatprep.mubr.bf16.mxu0 %v6488_v0  ;;  %1096 = vmatprep.mubr.bf16.mxu1 %v6488_v0  ;;  %v5295_v61 = vcombine.high %v161_v50, %v177_v51  ;;  %v5294_v2 = vcombine.low %v161_v50, %v177_v51 }
  0xb8   :  { %1026 = vmatpush1.bf16.msra.mxu0 %v5282_v55  ;;  %1067 = vmatpush1.bf16.msra.mxu1 %v5284_v58  ;;  %v178_v55 = vld [vmem:[#allocation5 + $0x1f8] sm:$0xff]  ;;  %v193_v58 = vld [vmem:[#allocation5 + $0x270] sm:$0xff] }
  0xb9   :  { %1027 = vmatprep.subr.bf16.mxu0 %v5315_v59  ;;  %1068 = vmatprep.subr.bf16.mxu1 %v5317_v62  ;;  %v209_v59 = vld [vmem:[#allocation5 + $0x2f0] sm:$0xff]  ;;  %v194_v62 = vld [vmem:[#allocation5 + $0x278] sm:$0xff]  ;;  %v5297_v1 = vcombine.high %v162_v54, %v178_v55 }
  0xba   :  { %v5326_v6 = vcombine.low %v193_v58, %v209_v59 }
  0xbc   :  { %1028 = vmatpush1.bf16.msra.mxu0 %v5314_v63  ;;  %1069 = vmatpush1.bf16.msra.mxu1 %v5316_v3  ;;  %v210_v63 = vld [vmem:[#allocation5 + $0x2f8] sm:$0xff]  ;;  %v5296_v3 = vcombine.low %v162_v54, %v178_v55 }
  0xbd   :  { %1105 = vmatprep.subr.bf16.mxu0 %v5255_v4  ;;  %1146 = vmatprep.subr.bf16.mxu1 %v5257_v7  ;;  %v5327_v4 = vcombine.high %v193_v58, %v209_v59  ;;  %v5329_v5 = vcombine.high %v194_v62, %v210_v63  ;;  %v5328_v7 = vcombine.low %v194_v62, %v210_v63 }
  0xbf   :  { %5338 = vmatmul.mubr.msk.bf16.vlgmr.msra.gmra.mrb[16].mxu0 %vm691_vm0, %v6616_v34  ;;  %5339 = vmatmul.mubr.msk.bf16.vlgmr.msra.gmra.mrb[16].mxu1 %vm691_vm0, %v6616_v34 }
  0xc0   :  { %1106 = vmatpush1.bf16.msra.mxu0 %v5254_v8  ;;  %1147 = vmatpush1.bf16.msra.mxu1 %v5256_v11  ;;  %v5969_v8 = vld [vmem:[#allocation10 + $0x40] sm:$0xff]  }
  0xc1   :  { %1107 = vmatprep.subr.bf16.mxu0 %v5287_v12  ;;  %1148 = vmatprep.subr.bf16.mxu1 %v5289_v15  ;;  %v5972_v11 = vld [vmem:[#allocation10 + $0x80] sm:$0xff]   ;;  %v5974_v12 = vld [vmem:[#allocation10 + $0xc8] sm:$0xff]   ;;  %v5977_v15 = vld [vmem:[#allocation10 + $0x50] sm:$0xff]  }
  0xc2   :  { %1137 = vmatprep.mubr.bf16.mxu0 %v6488_v0  ;;  %1178 = vmatprep.mubr.bf16.mxu1 %v6488_v0 }
  0xc4   :  { %1108 = vmatpush1.bf16.msra.mxu0 %v5286_v16  ;;  %1149 = vmatpush1.bf16.msra.mxu1 %v5288_v19  ;;  %v5978_v16 = vld [vmem:[#allocation10 + $0xd0] sm:$0xff]   ;;  %v5982_v19 = vld [vmem:[#allocation10 + $0xd8] sm:$0xff]  }
  0xc5   :  { %1109 = vmatprep.subr.bf16.mxu0 %v5319_v20  ;;  %1150 = vmatprep.subr.bf16.mxu1 %v5321_v23  ;;  %v5983_v20 = vld [vmem:[#allocation10 + $0x18] sm:$0xff]   ;;  %v5986_v23 = vld [vmem:[#allocation10 + $0xe0] sm:$0xff]  }
  0xc8   :  { %1110 = vmatpush1.bf16.msra.mxu0 %v5318_v24  ;;  %1151 = vmatpush1.bf16.msra.mxu1 %v5320_v27  ;;  %v5987_v24 = vld [vmem:[#allocation10 + $0x20] sm:$0xff]   ;;  %v5990_v27 = vld [vmem:[#allocation10 + $0xe8] sm:$0xff]  }
  0xc9   :  { %1187 = vmatprep.subr.bf16.mxu0 %v5259_v28  ;;  %1228 = vmatprep.subr.bf16.mxu1 %v5261_v31  ;;  %v5991_v28 = vld [vmem:[#allocation10 + $0x28] sm:$0xff]   ;;  %v5994_v31 = vld [vmem:[#allocation10 + $0xf0] sm:$0xff]  }
  0xcb   :  { %5340 = vmatmul.mubr.msk.bf16.vlgmr.msra.gmra.mrb[20].mxu0 %vm691_vm0, %v6616_v34  ;;  %5341 = vmatmul.mubr.msk.bf16.vlgmr.msra.gmra.mrb[20].mxu1 %vm691_vm0, %v6616_v34 }
  0xcc   :  { %1188 = vmatpush1.bf16.msra.mxu0 %v5258_v32  ;;  %1229 = vmatpush1.bf16.msra.mxu1 %v5260_v36  ;;  %v5995_v32 = vld [vmem:[#allocation10 + $0x30] sm:$0xff]   ;;  %v5998_v36 = vld [vmem:[#allocation10 + $0xf8] sm:$0xff]  }
  0xcd   :  { %1189 = vmatprep.subr.bf16.mxu0 %v5291_v37  ;;  %1230 = vmatprep.subr.bf16.mxu1 %v5293_v40  ;;  %v5999_v37 = vld [vmem:[#allocation10 + $0x38] sm:$0xff]   ;;  %v6002_v40 = vld [vmem:[#allocation10 + $0x1c0] sm:$0xff]  }
  0xce   :  { %1219 = vmatprep.mubr.bf16.mxu0 %v6488_v0  ;;  %1260 = vmatprep.mubr.bf16.mxu1 %v6488_v0 }
  0xd0   :  { %1190 = vmatpush1.bf16.msra.mxu0 %v5290_v41  ;;  %1231 = vmatpush1.bf16.msra.mxu1 %v5292_v44 }
  0xd1   :  { %1191 = vmatprep.subr.bf16.mxu0 %v5323_v45  ;;  %1232 = vmatprep.subr.bf16.mxu1 %v5325_v48 }
  0xd4   :  { %1192 = vmatpush1.bf16.msra.mxu0 %v5322_v49  ;;  %1233 = vmatpush1.bf16.msra.mxu1 %v5324_v52 }
  0xd5   :  { %1269 = vmatprep.subr.bf16.mxu0 %v5263_v53  ;;  %1310 = vmatprep.subr.bf16.mxu1 %v5265_v56 }
  0xd7   :  { %5342 = vmatmul.mubr.msk.bf16.vlgmr.msra.gmra.mrb[24].mxu0 %vm691_vm0, %v6616_v34  ;;  %5343 = vmatmul.mubr.msk.bf16.vlgmr.msra.gmra.mrb[24].mxu1 %vm691_vm0, %v6616_v34 }
  0xd8   :  { %1270 = vmatpush1.bf16.msra.mxu0 %v5262_v57  ;;  %1311 = vmatpush1.bf16.msra.mxu1 %v5264_v60 }
  0xd9   :  { %1271 = vmatprep.subr.bf16.mxu0 %v5295_v61  ;;  %1312 = vmatprep.subr.bf16.mxu1 %v5297_v1 }
  0xda   :  { %1301 = vmatprep.mubr.bf16.mxu0 %v6488_v0  ;;  %1342 = vmatprep.mubr.bf16.mxu1 %v6488_v0  ;;  %v5973_v0 = vld [vmem:[#allocation10 + $0x48] sm:$0xff]  }
  0xdc   :  { %1272 = vmatpush1.bf16.msra.mxu0 %v5294_v2  ;;  %1313 = vmatpush1.bf16.msra.mxu1 %v5296_v3 }
  0xdd   :  { %1273 = vmatprep.subr.bf16.mxu0 %v5327_v4  ;;  %1314 = vmatprep.subr.bf16.mxu1 %v5329_v5 }
  0xe0   :  { %1274 = vmatpush1.bf16.msra.mxu0 %v5326_v6  ;;  %1315 = vmatpush1.bf16.msra.mxu1 %v5328_v7 }
  0xe1   :  { %5604 = vmatprep.subr.bf16.mxu0 %v5969_v8  ;;  %5626 = vmatprep.subr.bf16.mxu1 %v5970_v9 }
  0xe3   :  { %5344 = vmatmul.mubr.msk.bf16.vlgmr.msra.gmra.mrb[28].mxu0 %vm691_vm0, %v6616_v34  ;;  %5345 = vmatmul.mubr.msk.bf16.vlgmr.msra.gmra.mrb[28].mxu1 %vm691_vm0, %v6616_v34  ;;  %v5980_v34 = vld [vmem:[#allocation10 + $0x90] sm:$0xff]  }
  0xe4   :  { %5605 = vmatpush3.bf16.msra.mxu0 %v5971_v10  ;;  %5627 = vmatpush3.bf16.msra.mxu1 %v5972_v11 }
  0xe5   :  { %5606 = vmatprep.subr.bf16.mxu0 %v5973_v0  ;;  %5628 = vmatprep.subr.bf16.mxu1 %v5974_v12 }
  0xe8   :  { %5607 = vmatpush3.bf16.msra.mxu0 %v5975_v13  ;;  %5629 = vmatpush3.bf16.msra.mxu1 %v5976_v14 }
  0xe9   :  { %5608 = vmatprep.subr.bf16.mxu0 %v5977_v15  ;;  %5630 = vmatprep.subr.bf16.mxu1 %v5978_v16 }
  0xec   :  { %5609 = vmatpush3.bf16.msra.mxu0 %v5979_v17  ;;  %5631 = vmatpush3.bf16.msra.mxu1 %v5980_v34 }
  0xed   :  { %5610 = vmatprep.subr.bf16.mxu0 %v5981_v18  ;;  %5632 = vmatprep.subr.bf16.mxu1 %v5982_v19 }
  0xf0   :  { %5611 = vmatpush3.bf16.msra.mxu0 %v5983_v20  ;;  %5633 = vmatpush3.bf16.msra.mxu1 %v5984_v21 }
  0xf1   :  { %5612 = vmatprep.subr.bf16.mxu0 %v5985_v22  ;;  %5634 = vmatprep.subr.bf16.mxu1 %v5986_v23 }
  0xf4   :  { %5613 = vmatpush3.bf16.msra.mxu0 %v5987_v24  ;;  %5635 = vmatpush3.bf16.msra.mxu1 %v5988_v25 }
  0xf5   :  { %5614 = vmatprep.subr.bf16.mxu0 %v5989_v26  ;;  %5636 = vmatprep.subr.bf16.mxu1 %v5990_v27 }
  0xf8   :  { %5615 = vmatpush3.bf16.msra.mxu0 %v5991_v28  ;;  %5637 = vmatpush3.bf16.msra.mxu1 %v5992_v29 }
  0xf9   :  { %5616 = vmatprep.subr.bf16.mxu0 %v5993_v30  ;;  %5638 = vmatprep.subr.bf16.mxu1 %v5994_v31 }
  0xfc   :  { %5617 = vmatpush3.bf16.msra.mxu0 %v5995_v32  ;;  %5639 = vmatpush3.bf16.msra.mxu1 %v5996_v33 }
  0xfd   :  { %5618 = vmatprep.subr.bf16.mxu0 %v5997_v35  ;;  %5640 = vmatprep.subr.bf16.mxu1 %v5998_v36 }
 0x100   :  { %5619 = vmatpush3.bf16.msra.mxu0 %v5999_v37  ;;  %5641 = vmatpush3.bf16.msra.mxu1 %v6000_v38 }
 0x101   :  { %5648 = vmatprep.subr.bf16.mxu0 %v6001_v39  ;;  %5670 = vmatprep.subr.bf16.mxu1 %v6002_v40 }
 0x162   :  { %v729_v41 = vpop.f32.mrb[0].mxu0  ;;  %v770_v43 = vpop.f32.mrb[0].mxu1 }
 0x163   :  { %v1360_v42 = vsel %vm1359_vm1, %v729_v41, 0.0  ;;  %v731_v44 = vpop.f32.mrb[1].mxu0  ;;  %v1374_v46 = vsel %vm1359_vm1, %v770_v43, 0.0  ;;  %v772_v48 = vpop.f32.mrb[1].mxu1 }
 0x164   :  { %v1361_v45 = vrot.slane %v1360_v42, 4  ;;  %v1367_v47 = vsel %vm1359_vm1, %v731_v44, 0.0  ;;  %v733_v49 = vpop.f32.mrb[2].mxu0  ;;  %v1375_v50 = vrot.slane %v1374_v46, 4  ;;  %v1381_v52 = vsel %vm1359_vm1, %v772_v48, 0.0  ;;  %v774_v53 = vpop.f32.mrb[2].mxu1 }
 0x165   :  { %v1368_v51 = vrot.slane %v1367_v47, 4  ;;  %v734_v54 = vpop.f32.mrb[3].mxu0  ;;  %v1382_v56 = vrot.slane %v1381_v52, 4  ;;  %v775_v57 = vpop.f32.mrb[3].mxu1 }
 0x166   :  { %v1362_v55 = vadd.f32 %v1361_v45, %v1360_v42  ;;  %v1376_v58 = vadd.f32 %v1375_v50, %v1374_v46 }
 0x167   :  { %v1369_v59 = vadd.f32 %v1368_v51, %v1367_v47  ;;  %v1383_v61 = vadd.f32 %v1382_v56, %v1381_v52 }
 0x168   :  { %v1363_v60 = vrot.slane %v1362_v55, 2  ;;  %v1377_v62 = vrot.slane %v1376_v58, 2 }
 0x169   :  { %v1370_v63 = vrot.slane %v1369_v59, 2  ;;  %v1384_v2 = vrot.slane %v1383_v61, 2 }
 0x16a   :  { %v1364_v1 = vadd.f32 %v1363_v60, %v1362_v55  ;;  %v1378_v3 = vadd.f32 %v1377_v62, %v1376_v58 }
 0x16b   :  { %v1371_v4 = vadd.f32 %v1370_v63, %v1369_v59  ;;  %v1385_v6 = vadd.f32 %v1384_v2, %v1383_v61 }
 0x16c   :  { %v1365_v5 = vrot.slane %v1364_v1, 1  ;;  %v1379_v7 = vrot.slane %v1378_v3, 1 }
 0x16d   :  { %v1372_v8 = vrot.slane %v1371_v4, 1  ;;  %v1386_v10 = vrot.slane %v1385_v6, 1 }
 0x16e   :  { %v1366_v9 = vadd.f32 %v1365_v5, %v1364_v1  ;;  %v6668_v11 = vpop.f32.mrb[4].mxu0  ;;  %v1380_v0 = vadd.f32 %v1379_v7, %v1378_v3  ;;  %v6672_v14 = vpop.f32.mrb[4].mxu1 }
 0x16f   :  { %v1373_v12 = vadd.f32 %v1372_v8, %v1371_v4  ;;  %v1388_v13 = vsel %vm1359_vm1, %v6668_v11, 0.0  ;;  %v6674_v15 = vpop.f32.mrb[5].mxu0  ;;  %v1387_v17 = vadd.f32 %v1386_v10, %v1385_v6  ;;  %v1402_v18 = vsel %vm1359_vm1, %v6672_v14, 0.0  ;;  %v6678_v19 = vpop.f32.mrb[5].mxu1 }
 0x170   :  { %v1585_v16 = vmul.f32 0.5, %v1366_v9  ;;  %v1389_v34 = vrot.slane %v1388_v13, 4  ;;  %v815_v20 = vpop.f32.mrb[6].mxu0  ;;  %v1587_v21 = vmul.f32 0.5, %v1380_v0  ;;  %v1403_v23 = vrot.slane %v1402_v18, 4  ;;  %v856_v25 = vpop.f32.mrb[6].mxu1 }
 0x171   :  { %v1586_v22 = vmul.f32 0.5, %v1373_v12  ;;  %v1395_v24 = vsel %vm1359_vm1, %v6674_v15, 0.0  ;;  %v816_v26 = vpop.f32.mrb[7].mxu0  ;;  %v1588_v28 = vmul.f32 0.5, %v1387_v17  ;;  %v857_v31 = vpop.f32.mrb[7].mxu1  ;;  %v1409_v36 = vsel %vm1359_vm1, %v6678_v19, 0.0 }
 0x172   :  { %v6682_v27 = vsub.f32 %v729_v41, %v1585_v16  ;;  %v1390_v29 = vadd.f32 %v1389_v34, %v1388_v13  ;;  %v1396_v30 = vrot.slane %v1395_v24, 4  ;;  %v6684_v32 = vsub.f32 %v770_v43, %v1587_v21 }
 0x173   :  { %v6686_v33 = vsub.f32 %v731_v44, %v1586_v22  ;;  %v1404_v35 = vadd.f32 %v1403_v23, %v1402_v18  ;;  %v6692_v38 = vsub.f32 %v772_v48, %v1588_v28  ;;  %v1410_v44 = vrot.slane %v1409_v36, 4 }
 0x174   :  { %v1649_v37 = vmul.f32 %v6682_v27, %v6682_v27  ;;  %v1391_v39 = vrot.slane %v1390_v29, 2  ;;  %v1397_v40 = vadd.f32 %v1396_v30, %v1395_v24  ;;  %v1651_v41 = vmul.f32 %v6684_v32, %v6684_v32 }
 0x175   :  { %v1650_v42 = vmul.f32 %v6686_v33, %v6686_v33  ;;  %v1405_v43 = vrot.slane %v1404_v35, 2  ;;  %v1652_v46 = vmul.f32 %v6692_v38, %v6692_v38  ;;  %v1411_v60 = vadd.f32 %v1410_v44, %v1409_v36 }
 0x176   :  { %v1681_v45 = vsel %vm1359_vm1, %v1649_v37, 0.0  ;;  %v1392_v47 = vadd.f32 %v1391_v39, %v1390_v29  ;;  %v1398_v49 = vrot.slane %v1397_v40, 2  ;;  %v1695_v48 = vsel %vm1359_vm1, %v1651_v41, 0.0 }
 0x177   :  { %v1682_v50 = vrot.slane %v1681_v45, 4  ;;  %v1688_v51 = vsel %vm1359_vm1, %v1650_v42, 0.0  ;;  %v1406_v52 = vadd.f32 %v1405_v43, %v1404_v35  ;;  %v1702_v53 = vsel %vm1359_vm1, %v1652_v46, 0.0 }
 0x178   :  { %v1393_v54 = vrot.slane %v1392_v47, 1  ;;  %v1696_v55 = vrot.slane %v1695_v48, 4  ;;  %v1399_v57 = vadd.f32 %v1398_v49, %v1397_v40  ;;  %v1689_v58 = vrot.slane %v1688_v51, 4 }
 0x179   :  { %v1407_v56 = vrot.slane %v1406_v52, 1  ;;  %v1683_v62 = vadd.f32 %v1682_v50, %v1681_v45  ;;  %v1703_v63 = vrot.slane %v1702_v53, 4  ;;  %v1412_v6 = vrot.slane %v1411_v60, 2 }
 0x17a   :  { %v1394_v59 = vadd.f32 %v1393_v54, %v1392_v47  ;;  %v6704_v61 = vpop.f32.mrb[8].mxu0  ;;  %v1400_v2 = vrot.slane %v1399_v57, 1  ;;  %v6706_v3 = vpop.f32.mrb[8].mxu1  ;;  %v1697_v9 = vadd.f32 %v1696_v55, %v1695_v48  ;;  %v1690_v13 = vadd.f32 %v1689_v58, %v1688_v51 }
 0x17b   :  { %v1408_v1 = vadd.f32 %v1407_v56, %v1406_v52  ;;  %v6708_v4 = vpop.f32.mrb[9].mxu0  ;;  %v6710_v7 = vpop.f32.mrb[9].mxu1  ;;  %v1413_v17 = vadd.f32 %v1412_v6, %v1411_v60  ;;  %v1684_v18 = vrot.slane %v1683_v62, 2  ;;  %v1704_v20 = vadd.f32 %v1703_v63, %v1702_v53 }
 0x17c   :  { %v1589_v5 = vmul.f32 0.5, %v1394_v59  ;;  %v897_v8 = vpop.f32.mrb[10].mxu0  ;;  %v1401_v10 = vadd.f32 %v1400_v2, %v1399_v57  ;;  %v938_v12 = vpop.f32.mrb[10].mxu1  ;;  %v1698_v24 = vrot.slane %v1697_v9, 2  ;;  %v1691_v26 = vrot.slane %v1690_v13, 2 }
 0x17d   :  { %v898_v0 = vpop.f32.mrb[11].mxu0  ;;  %v1591_v16 = vmul.f32 0.5, %v1408_v1  ;;  %v939_v34 = vpop.f32.mrb[11].mxu1  ;;  %v1414_v23 = vrot.slane %v1413_v17, 1  ;;  %v1685_v30 = vadd.f32 %v1684_v18, %v1683_v62  ;;  %v2037_v31 = vlaneseq }
 0x17e   :  { %v1590_v21 = vmul.f32 0.5, %v1401_v10  ;;  %v6713_v22 = vsub.f32 %v6668_v11, %v1589_v5  ;;  %v1705_v35 = vrot.slane %v1704_v20, 2  ;;  %v1699_v37 = vadd.f32 %v1698_v24, %v1697_v9 }
 0x17f   :  { %v6719_v28 = vsub.f32 %v6672_v14, %v1591_v16  ;;  %v1415_v29 = vadd.f32 %v1414_v23, %v1413_v17  ;;  %v1692_v40 = vadd.f32 %v1691_v26, %v1690_v13  ;;  %v1686_v42 = vrot.slane %v1685_v30, 1  ;;  %v6758_v13 = vld [vmem:[#allocation7] sm:$0xff] }
 0x180   :  { %v6716_v25 = vsub.f32 %v6674_v15, %v1590_v21  ;;  %v1653_v36 = vmul.f32 %v6713_v22, %v6713_v22  ;;  %v6730_v43 = vshrl.u32 %v2037_v31, 7  ;;  %v1706_v44 = vadd.f32 %v1705_v35, %v1704_v20 }
 0x181   :  { %v1592_v39 = vmul.f32 0.5, %v1415_v29  ;;  %v1655_v15 = vmul.f32 %v6719_v28, %v6719_v28  ;;  %v1700_v52 = vrot.slane %v1699_v37, 1  ;;  %v1693_v56 = vrot.slane %v1692_v40, 1 }
 0x182   :  { %v1654_v11 = vmul.f32 %v6716_v25, %v6716_v25  ;;  %v1709_v49 = vsel %vm1359_vm1, %v1653_v36, 0.0  ;;  %v1416_v59 = vsel %vm1359_vm1, %v6704_v61, 0.0  ;;  %v1687_v62 = vadd.f32 %v1686_v42, %v1685_v30 }
 0x183   :  { %v6738_v50 = vsub.f32 %v6678_v19, %v1592_v39  ;;  %v1723_v57 = vsel %vm1359_vm1, %v1655_v15, 0.0  ;;  %v6748_v19 = vsub.s32 0, %v6730_v43  ;;  %v1707_v63 = vrot.slane %v1706_v44, 1  ;;  %v6767_v39 = vld [vmem:[#allocation8] sm:$0xff] }
 0x184   :  { %v1716_v41 = vsel %vm1359_vm1, %v1654_v11, 0.0  ;;  %v1710_v1 = vrot.slane %v1709_v49, 4  ;;  %v6751_v2 = vsub.s32 2, %v6730_v43  ;;  %v1423_v8 = vsel %vm1359_vm1, %v6708_v4, 0.0 }
 0x185   :  { %v1717_v45 = vrot.slane %v1716_v41, 4  ;;  %v1656_v58 = vmul.f32 %v6738_v50, %v6738_v50  ;;  %v1724_v9 = vrot.slane %v1723_v57, 4  ;;  %v1417_v0 = vrot.slane %v1416_v59, 4 }
 0x186   :  { %v6728_v14 = vpop.f32.mrb[12].mxu0  ;;  %v6734_v47 = vpop.f32.mrb[12].mxu1  ;;  %v1437_v12 = vsel %vm1359_vm1, %v6710_v7, 0.0  ;;  %v1701_v16 = vadd.f32 %v1700_v52, %v1699_v37  ;;  %v1694_v17 = vadd.f32 %v1693_v56, %v1692_v40  ;;  %v6761_v34 = vsub.s32 1, %v6730_v43 }
 0x187   :  { %v6732_v46 = vpop.f32.mrb[13].mxu0  ;;  %v6740_v48 = vpop.f32.mrb[13].mxu1  ;;  %v1718_v53 = vadd.f32 %v1717_v45, %v1716_v41  ;;  %v1730_v6 = vsel %vm1359_vm1, %v1656_v58, 0.0  ;;  %v1424_v18 = vrot.slane %v1423_v8, 4  ;;  %v1905_v20 = vmul.f32 0.5, %v1687_v62 }
 0x188   :  { %v979_v51 = vpop.f32.mrb[14].mxu0  ;;  %v1020_v55 = vpop.f32.mrb[14].mxu1  ;;  %v1731_v10 = vrot.slane %v1730_v6, 4  ;;  %v1708_v21 = vadd.f32 %v1707_v63, %v1706_v44  ;;  %v1711_v23 = vadd.f32 %v1710_v1, %v1709_v49  ;;  %v1430_v29 = vsel %vm1359_vm1, %v6706_v3, 0.0 }
 0x189   :  { %v980_v54 = vpop.f32.mrb[15].mxu0  ;;  %v1021_v60 = vpop.f32.mrb[15].mxu1  ;;  %v1719_v5 = vrot.slane %v1718_v53, 2  ;;  %v1425_v30 = vadd.f32 %v1424_v18, %v1423_v8  ;;  %v1438_v31 = vrot.slane %v1437_v12, 4  ;;  %v2040_v35 = vrot.slane %v6758_v13, %v6748_v19 }
 0x18a   :  { %v1732_v24 = vadd.f32 %v1731_v10, %v1730_v6  ;;  %v1725_v36 = vadd.f32 %v1724_v9, %v1723_v57  ;;  %v1418_v37 = vadd.f32 %v1417_v0, %v1416_v59  ;;  %v1907_v40 = vmul.f32 0.5, %v1701_v16 }
 0x18b   :  { %v1720_v26 = vadd.f32 %v1719_v5, %v1718_v53  ;;  %v1906_v41 = vmul.f32 0.5, %v1694_v17  ;;  %v6772_v42 = vsub.s32 3, %v6730_v43  ;;  %v1937_v45 = vadd.f32 1e-05, %v1905_v20 }
 0x18c   :  { %v1733_v11 = vrot.slane %v1732_v24, 2  ;;  %v1712_v49 = vrot.slane %v1711_v23, 2  ;;  %v1431_v52 = vrot.slane %v1430_v29, 4  ;;  %v1908_v55 = vmul.f32 0.5, %v1708_v21 }
 0x18d   :  { %v1721_v56 = vrot.slane %v1720_v26, 1  ;;  %v1426_v57 = vrot.slane %v1425_v30, 2  ;;  %v1439_v58 = vadd.f32 %v1438_v31, %v1437_v12  ;;  %v1726_v63 = vrot.slane %v1725_v36, 2 }
 0x18e   :  { %v1734_v51 = vadd.f32 %v1733_v11, %v1732_v24  ;;  %v1419_v5 = vrot.slane %v1418_v37, 2  ;;  %v1938_v10 = vadd.f32 1e-05, %v1906_v41  ;;  %v6789_v12 = vsub.s32 5, %v6730_v43 }
 0x18f   :  { %6225 = vrsqrt.f32 %v1937_v45  ;;  %v1939_v17 = vadd.f32 1e-05, %v1907_v40  ;;  %v1713_v18 = vadd.f32 %v1712_v49, %v1711_v23  ;;  %v1432_v20 = vadd.f32 %v1431_v52, %v1430_v29 }
 0x190   :  { %v1735_v1 = vrot.slane %v1734_v51, 1  ;;  %v1940_v21 = vadd.f32 1e-05, %v1908_v55  ;;  %v1722_v24 = vadd.f32 %v1721_v56, %v1720_v26  ;;  %v1427_v31 = vadd.f32 %v1426_v57, %v1425_v30 }
 0x191   :  { %v1440_v11 = vrot.slane %v1439_v58, 2  ;;  %v1451_v41 = vsel %vm1359_vm1, %v6732_v46, 0.0  ;;  %6227 = vrsqrt.f32 %v1938_v10  ;;  %v6794_v9 = vsub.s32 7, %v6730_v43 }
 0x192   :  { %v6774_v44 = vpop.f32.mrb[16].mxu0  ;;  %v6778_v54 = vpop.f32.mrb[16].mxu1  ;;  %v1428_v62 = vrot.slane %v1427_v31, 1  ;;  %6229 = vrsqrt.f32 %v1939_v17  ;;  %v1714_v40 = vrot.slane %v1713_v18, 1  ;;  %v1433_v23 = vrot.slane %v1432_v20, 2 }
 0x193   :  { %v6776_v53 = vpop.f32.mrb[17].mxu0  ;;  %v6780_v59 = vpop.f32.mrb[17].mxu1  ;;  %7267 = vst [vmem:[#allocation20_spill] sm:$0xff] %v6794_v9  ;;  %v1452_v29 = vrot.slane %v1451_v41, 4  ;;  %6231 = vrsqrt.f32 %v1940_v21  ;;  %v1910_v26 = vmul.f32 0.5, %v1722_v24 }
 0x194   :  { %v1061_v60 = vpop.f32.mrb[18].mxu0  ;;  %v1102_v8 = vpop.f32.mrb[18].mxu1  ;;  %v1429_v30 = vadd.f32 %v1428_v62, %v1427_v31  ;;  %v1434_v62 = vadd.f32 %v1433_v23, %v1432_v20 }
 0x195   :  { %v1062_v6 = vpop.f32.mrb[19].mxu0  ;;  %v1103_v16 = vpop.f32.mrb[19].mxu1  ;;  %v1727_v60 = vadd.f32 %v1726_v63, %v1725_v36  ;;  %v1420_v8 = vadd.f32 %v1419_v5, %v1418_v37  ;;  %v1715_v63 = vadd.f32 %v1714_v40, %v1713_v18  ;;  %v1458_v5 = vsel %vm1359_vm1, %v6734_v47, 0.0 }
 0x196   :  { %v1736_v6 = vadd.f32 %v1735_v1, %v1734_v51  ;;  %v1441_v16 = vadd.f32 %v1440_v11, %v1439_v58  ;;  %v1453_v51 = vadd.f32 %v1452_v29, %v1451_v41  ;;  %v1594_v56 = vmul.f32 0.5, %v1429_v30 }
 0x197   :  { %v1728_v36 = vrot.slane %v1727_v60, 1  ;;  %v1421_v37 = vrot.slane %v1420_v8, 1  ;;  %v1942_v21 = vadd.f32 1e-05, %v1910_v26 }
 0x198   :  { %v1442_v45 = vrot.slane %v1441_v16, 1  ;;  %v1912_v49 = vmul.f32 0.5, %v1736_v6  ;;  %v6811_v24 = vsub.f32 %v6708_v4, %v1594_v56  ;;  %v1454_v11 = vrot.slane %v1453_v51, 2 }
 0x199   :  { %v6226_v41 = vpop.eup %6225  ;;  %v1422_v20 = vadd.f32 %v1421_v37, %v1420_v8  ;;  %6233 = vrsqrt.f32 %v1942_v21 }
 0x19a   :  { %v1443_v57 = vadd.f32 %v1442_v45, %v1441_v16  ;;  %v1729_v16 = vadd.f32 %v1728_v36, %v1727_v60  ;;  %v1944_v40 = vadd.f32 1e-05, %v1912_v49  ;;  %v1658_v26 = vmul.f32 %v6811_v24, %v6811_v24 }
 0x19b   :  { %v1459_v45 = vrot.slane %v1458_v5, 4  ;;  %v1435_v60 = vrot.slane %v1434_v62, 1  ;;  %v6228_v49 = vpop.eup %6227  ;;  %v2001_v55 = vmul.f32 %v6226_v41, %v6682_v27  ;;  %v1465_v27 = vsel %vm1359_vm1, %v6740_v48, 0.0 }
 0x19c   :  { %v1596_v31 = vmul.f32 0.5, %v1443_v57  ;;  %v1744_v37 = vsel %vm1359_vm1, %v1658_v26, 0.0  ;;  %6235 = vrsqrt.f32 %v1944_v40  ;;  %v2002_v21 = vmul.f32 %v6228_v49, %v6686_v33 }
 0x19d   :  { %v1460_v36 = vadd.f32 %v1459_v45, %v1458_v5  ;;  %v1436_v23 = vadd.f32 %v1435_v60, %v1434_v62  ;;  %v2197_v33 = vmul.f32 %v2040_v35, %v2001_v55  ;;  %v1444_v35 = vsel %vm1359_vm1, %v6728_v14, 0.0 }
 0x19e   :  { %v6800_v58 = vpop.f32.mrb[20].mxu0  ;;  %v6808_v17 = vpop.f32.mrb[20].mxu1  ;;  %v6820_v4 = vsub.f32 %v6710_v7, %v1596_v31  ;;  %v1455_v31 = vadd.f32 %v1454_v11, %v1453_v51 }
 0x19f   :  { %v6806_v10 = vpop.f32.mrb[21].mxu0  ;;  %7268 = vst [vmem:[#allocation21_spill] sm:$0xff] %v6808_v17  ;;  %v6813_v6 = vpop.f32.mrb[21].mxu1  ;;  %v6961_v17 = vld [vmem:[#allocation8 + $0x8] sm:$0xff] }
 0x1a0   :  { %v1143_v18 = vpop.f32.mrb[22].mxu0  ;;  %v1184_v30 = vpop.f32.mrb[22].mxu1  ;;  %v1660_v7 = vmul.f32 %v6820_v4, %v6820_v4  ;;  %v1456_v56 = vrot.slane %v1455_v31, 1 }
 0x1a1   :  { %v1144_v29 = vpop.f32.mrb[23].mxu0  ;;  %v1185_v57 = vpop.f32.mrb[23].mxu1  ;;  %v1909_v18 = vmul.f32 0.5, %v1715_v63  ;;  %v1911_v30 = vmul.f32 0.5, %v1729_v16  ;;  %v1745_v63 = vrot.slane %v1744_v37, 4  ;;  %v1461_v16 = vrot.slane %v1460_v36, 2 }
 0x1a2   :  { %v6230_v29 = vpop.eup %6229  ;;  %v1593_v57 = vmul.f32 0.5, %v1422_v20  ;;  %v1758_v8 = vsel %vm1359_vm1, %v1660_v7, 0.0  ;;  %v1457_v11 = vadd.f32 %v1456_v56, %v1455_v31  ;;  %v1595_v56 = vmul.f32 0.5, %v1436_v23 }
 0x1a3   :  { %v6232_v1 = vpop.eup %6231  ;;  %v1746_v26 = vadd.f32 %v1745_v63, %v1744_v37  ;;  %v1759_v52 = vrot.slane %v1758_v8, 4  ;;  %v2003_v15 = vmul.f32 %v6230_v29, %v6684_v32  ;;  %v1941_v51 = vadd.f32 1e-05, %v1909_v18 }
 0x1a4   :  { %v6836_v40 = vsub.f32 %v6704_v61, %v1593_v57  ;;  %v2004_v62 = vmul.f32 %v6232_v1, %v6692_v38  ;;  %v6844_v5 = vadd.f32 1e-05, %v1911_v30  ;;  %v1462_v32 = vadd.f32 %v1461_v16, %v1460_v36  ;;  %v6234_v57 = vpop.eup %6233 }
 0x1a5   :  { %v1747_v20 = vrot.slane %v1746_v26, 2  ;;  %v1760_v0 = vadd.f32 %v1759_v52, %v1758_v8  ;;  %v7270_v61 = vrot.slane %v6758_v13, %v6761_v34  ;;  %v1598_v38 = vmul.f32 0.5, %v1457_v11 }
 0x1a6   :  { %v1463_v55 = vrot.slane %v1462_v32, 1  ;;  %v1466_v1 = vrot.slane %v1465_v27, 4  ;;  %v7274_v37 = vrot.slane %v6758_v13, %v6751_v2  ;;  %v1657_v23 = vmul.f32 %v6836_v40, %v6836_v40 }
 0x1a7   :  { %v2198_v45 = vmul.f32 %v7270_v61, %v2002_v21  ;;  %v1748_v52 = vadd.f32 %v1747_v20, %v1746_v26  ;;  %v1761_v18 = vrot.slane %v1760_v0, 2  ;;  %v7275_v63 = vrot.slane %v6767_v39, %v6748_v19  ;;  %v6236_v20 = vpop.eup %6235 }
 0x1a8   :  { %v2199_v7 = vmul.f32 %v7274_v37, %v2003_v15  ;;  %6237 = vrsqrt.f32 %v1941_v51  ;;  %v1464_v26 = vadd.f32 %v1463_v55, %v1462_v32  ;;  %v1467_v11 = vadd.f32 %v1466_v1, %v1465_v27 }
 0x1a9   :  { %v1749_v31 = vrot.slane %v1748_v52, 1  ;;  %v1762_v29 = vadd.f32 %v1761_v18, %v1760_v0  ;;  %v2393_v21 = vadd.f32 %v7275_v63, %v2197_v33  ;;  %v7276_v61 = vrot.slane %v6758_v13, %v6772_v42 }
 0x1aa   :  { %v6846_v41 = vpop.f32.mrb[24].mxu0  ;;  %v6853_v8 = vpop.f32.mrb[24].mxu1  ;;  %v1445_v0 = vrot.slane %v1444_v35, 4  ;;  %v6874_v18 = vsub.f32 %v6732_v46, %v1598_v38  ;;  %v7277_v51 = vrot.slane %v6767_v39, %v6761_v34  ;;  %v7278_v33 = vrot.slane %v6767_v39, %v6751_v2 }
 0x1ab   :  { %7269 = vst [vmem:[#allocation22_spill] sm:$0xff] %v6846_v41  ;;  %v6851_v60 = vpop.f32.mrb[25].mxu0  ;;  %7272 = vst [vmem:[#allocation24_spill] sm:$0xff] %v6853_v8  ;;  %v6857_v36 = vpop.f32.mrb[25].mxu1  ;;  %v2200_v15 = vmul.f32 %v7276_v61, %v2004_v62  ;;  %v1763_v37 = vrot.slane %v1762_v29, 1  ;;  %v1468_v8 = vrot.slane %v1467_v11, 2  ;;  %v2006_v62 = vmul.f32 %v6234_v57, %v6716_v25 }
 0x1ac   :  { %7271 = vst [vmem:[#allocation23_spill] sm:$0xff] %v6851_v60  ;;  %7273 = vst [vmem:[#allocation25_spill] sm:$0xff] %v6857_v36  ;;  %v1225_v49 = vpop.f32.mrb[26].mxu0  ;;  %v1266_v16 = vpop.f32.mrb[26].mxu1  ;;  %v2394_v27 = vadd.f32 %v7277_v51, %v2198_v45  ;;  %v2395_v32 = vadd.f32 %v7278_v33, %v2199_v7  ;;  %v2008_v1 = vmul.f32 %v6236_v20, %v6738_v50  ;;  %v6003_v33 = vld [vmem:[#allocation10 + $0x100] sm:$0xff]   ;;  %6239 = vrsqrt.f32 %v6844_v5 }
 0x1ad   :  { %v1226_v30 = vpop.f32.mrb[27].mxu0  ;;  %v6871_v49 = vsub.f32 %v6706_v3, %v1595_v56  ;;  %v1737_v3 = vsel %vm1359_vm1, %v1657_v23, 0.0  ;;  %v1750_v56 = vadd.f32 %v1749_v31, %v1748_v52  ;;  %v1267_v55 = vpop.f32.mrb[27].mxu1  ;;  %v1469_v38 = vadd.f32 %v1468_v8, %v1467_v11  ;;  %v6020_v41 = vld [vmem:[#allocation10 + $0x1a0] sm:$0xff]  }
 0x1ae   :  { %v1599_v30 = vmul.f32 0.5, %v1464_v26  ;;  %v2426_v63 = vmax.f32 %v2394_v27, 0.0  ;;  %v1764_v26 = vadd.f32 %v1763_v37, %v1762_v29  ;;  %v1446_v16 = vadd.f32 %v1445_v0, %v1444_v35 }
 0x1af   :  { %v1659_v45 = vmul.f32 %v6871_v49, %v6871_v49  ;;  %v7279_v7 = vrot.slane %v6767_v39, %v6772_v42  ;;  %v1662_v52 = vmul.f32 %v6874_v18, %v6874_v18  ;;  %v1470_v23 = vrot.slane %v1469_v38, 1 }
 0x1b0   :  { %v6886_v46 = vsub.f32 %v6734_v47, %v1599_v30  ;;  %v2458_v47 = vpack.c.bf16 %v2426_v63, %v2426_v63  ;;  %v7280_v8 = vrot.slane %v6758_v13, %v6789_v12  ;;  %v1738_v57 = vrot.slane %v1737_v3, 4 }
 0x1b1   :  { %v2396_v25 = vadd.f32 %v7279_v7, %v2200_v15  ;;  %v1914_v11 = vmul.f32 0.5, %v1750_v56  ;;  %v7281_v35 = vrot.slane %v6758_v13, %v6794_v9  ;;  %v1471_v15 = vadd.f32 %v1470_v23, %v1469_v38 }
 0x1b2   :  { %v1663_v50 = vmul.f32 %v6886_v46, %v6886_v46  ;;  %v2202_v31 = vmul.f32 %v7280_v8, %v2006_v62  ;;  %4569 = vmatprep.mubr.bf16.mxu0 %v2458_v47  ;;  %v2425_v37 = vmax.f32 %v2393_v21, 0.0  ;;  %v1751_v0 = vsel %vm1359_vm1, %v1659_v45, 0.0  ;;  %v6907_v62 = vpop.eup %6237  ;;  %v6004_v8 = vld [vmem:[#allocation10 + $0x180] sm:$0xff]  }
 0x1b3   :  { %v2428_v29 = vmax.f32 %v2396_v25, 0.0  ;;  %v2204_v20 = vmul.f32 %v7281_v35, %v2008_v1  ;;  %v1916_v30 = vmul.f32 0.5, %v1764_v26  ;;  %v1447_v56 = vrot.slane %v1446_v16, 2  ;;  %v6005_v25 = vld [vmem:[#allocation10 + $0x148] sm:$0xff]  }
 0x1b4   :  { %v1779_v61 = vsel %vm1359_vm1, %v1663_v50, 0.0  ;;  %v1772_v63 = vsel %vm1359_vm1, %v1662_v52, 0.0  ;;  %v1600_v7 = vmul.f32 0.5, %v1471_v15  ;;  %v2457_v1 = vpack.c.bf16 %v2425_v37, %v2425_v37  ;;  %v6007_v15 = vld [vmem:[#allocation10 + $0x108] sm:$0xff]  }
 0x1b5   :  { %v1780_v51 = vrot.slane %v1779_v61, 4  ;;  %v2460_v27 = vpack.c.bf16 %v2428_v29, %v2428_v29  ;;  %v1946_v50 = vadd.f32 1e-05, %v1914_v11  ;;  %v2427_v21 = vmax.f32 %v2395_v32, 0.0  ;;  %v6006_v32 = vld [vmem:[#allocation10 + $0x1c8] sm:$0xff]  }
 0x1b6   :  { %v6905_v55 = vpop.f32.mrb[28].mxu0  ;;  %v7283_v45 = vrot.slane %v6767_v39, %v6789_v12  ;;  %v1752_v23 = vrot.slane %v1751_v0, 4  ;;  %v6915_v47 = vsub.f32 %v6740_v48, %v1600_v7  ;;  %4570 = vmatmul.mubr.bf16.vlgmr.msra.gmra.mrb[32].mxu0 %v2457_v1  ;;  %v7284_v52 = vrot.slane %v6767_v39, %v6794_v9 }
 0x1b7   :  { %7282 = vst [vmem:[#allocation26_spill] sm:$0xff] %v6905_v55  ;;  %v1781_v38 = vadd.f32 %v1780_v51, %v1779_v61  ;;  %4609 = vmatprep.mubr.bf16.mxu1 %v2460_v27  ;;  %v1948_v11 = vadd.f32 1e-05, %v1916_v30  ;;  %v2459_v61 = vpack.c.bf16 %v2427_v21, %v2427_v21  ;;  %5649 = vmatpush3.bf16.msra.mxu0 %v6003_v33  ;;  %v1773_v5 = vrot.slane %v1772_v63, 4  ;;  %v6009_v27 = vld [vmem:[#allocation10 + $0x150] sm:$0xff]   ;;  %v6922_v30 = vpop.f32.mrb[29].mxu0 }
 0x1b8   :  { %v2398_v26 = vadd.f32 %v7283_v45, %v2202_v31  ;;  %v2400_v29 = vadd.f32 %v7284_v52, %v2204_v20  ;;  %v1739_v31 = vadd.f32 %v1738_v57, %v1737_v3  ;;  %v1448_v51 = vadd.f32 %v1447_v56, %v1446_v16  ;;  %5650 = vmatprep.subr.bf16.mxu0 %v6005_v25  ;;  %v6008_v45 = vld [vmem:[#allocation10 + $0x188] sm:$0xff]   ;;  %v1307_v3 = vpop.f32.mrb[30].mxu0  ;;  %v6010_v56 = vld [vmem:[#allocation10 + $0x1d0] sm:$0xff]  }
 0x1b9   :  { %v1782_v35 = vrot.slane %v1781_v38, 2  ;;  %v1664_v48 = vmul.f32 %v6915_v47, %v6915_v47  ;;  %6241 = vrsqrt.f32 %v1946_v50  ;;  %4610 = vmatmul.mubr.bf16.vlgmr.msra.gmra.mrb[32].mxu1 %v2459_v61  ;;  %7285 = vst [vmem:[#allocation27_spill] sm:$0xff] %v6922_v30  ;;  %v1753_v21 = vadd.f32 %v1752_v23, %v1751_v0  ;;  %v6011_v25 = vld [vmem:[#allocation10 + $0x110] sm:$0xff]   ;;  %v6013_v0 = vld [vmem:[#allocation10 + $0x158] sm:$0xff]   ;;  %v6928_v23 = vpop.f32.mrb[28].mxu1 }
 0x1ba   :  { %v2430_v37 = vmax.f32 %v2398_v26, 0.0  ;;  %v2432_v20 = vmax.f32 %v2400_v29, 0.0  ;;  %5671 = vmatpush3.bf16.msra.mxu1 %v6004_v8  ;;  %6243 = vrsqrt.f32 %v1948_v11  ;;  %v6926_v26 = vsub.s32 4, %v6730_v43  ;;  %7286 = vst [vmem:[#allocation28_spill] sm:$0xff] %v6928_v23 }
 0x1bb   :  { %v1783_v7 = vadd.f32 %v1782_v35, %v1781_v38  ;;  %v1786_v33 = vsel %vm1359_vm1, %v1664_v48, 0.0  ;;  %5672 = vmatprep.subr.bf16.mxu1 %v6006_v32  ;;  %5651 = vmatpush3.bf16.msra.mxu0 %v6007_v15  ;;  %v1308_v38 = vpop.f32.mrb[31].mxu0  ;;  %v1740_v52 = vrot.slane %v1739_v31, 2  ;;  %v1449_v29 = vrot.slane %v1448_v51, 1  ;;  %v6012_v32 = vld [vmem:[#allocation10 + $0x190] sm:$0xff]  }
 0x1bc   :  { %v2462_v1 = vpack.c.bf16 %v2430_v37, %v2430_v37  ;;  %v1787_v57 = vrot.slane %v1786_v33, 4  ;;  %v2464_v50 = vpack.c.bf16 %v2432_v20, %v2432_v20  ;;  %5652 = vmatprep.subr.bf16.mxu0 %v6009_v27  ;;  %v1774_v8 = vadd.f32 %v1773_v5, %v1772_v63  ;;  %v6015_v63 = vld [vmem:[#allocation10 + $0x118] sm:$0xff]  }
 0x1bd   :  { %v1784_v16 = vrot.slane %v1783_v7, 1  ;;  %v1479_v35 = vsel %vm1359_vm1, %v6776_v53, 0.0  ;;  %v6933_v61 = vsub.s32 6, %v6730_v43  ;;  %v1472_v15 = vsel %vm1359_vm1, %v6774_v44, 0.0 }
 0x1be   :  { %4649 = vmatprep.mubr.bf16.mxu0 %v2462_v1  ;;  %4689 = vmatprep.mubr.bf16.mxu1 %v2464_v50  ;;  %v1754_v37 = vrot.slane %v1753_v21, 2  ;;  %v1788_v27 = vadd.f32 %v1787_v57, %v1786_v33  ;;  %v6014_v1 = vld [vmem:[#allocation10 + $0x1d8] sm:$0xff]   ;;  %v1480_v5 = vrot.slane %v1479_v35, 4  ;;  %v2056_v20 = vrot.slane %v6758_v13, %v6926_v26  ;;  %v6941_v50 = vld [vmem:[#allocation7 + $0x8] sm:$0xff] }
 0x1bf   :  { %v1785_v11 = vadd.f32 %v1784_v16, %v1783_v7  ;;  %5673 = vmatpush3.bf16.msra.mxu1 %v6008_v45  ;;  %5653 = vmatpush3.bf16.msra.mxu0 %v6011_v25  ;;  %v6240_v7 = vpop.eup %6239  ;;  %v1741_v45 = vadd.f32 %v1740_v52, %v1739_v31  ;;  %v1450_v3 = vadd.f32 %v1449_v29, %v1448_v51  ;;  %v6017_v16 = vld [vmem:[#allocation10 + $0x160] sm:$0xff]   ;;  %v1775_v38 = vrot.slane %v1774_v8, 2  ;;  %v6943_v25 = vpop.f32.mrb[29].mxu1  ;;  %v6016_v51 = vld [vmem:[#allocation10 + $0x198] sm:$0xff]  }
 0x1c0   :  { %5674 = vmatprep.subr.bf16.mxu1 %v6010_v56  ;;  %5654 = vmatprep.subr.bf16.mxu0 %v6013_v0  ;;  %v1473_v57 = vrot.slane %v1472_v15, 4  ;;  %v1481_v56 = vadd.f32 %v1480_v5, %v1479_v35  ;;  %7287 = vst [vmem:[#allocation29_spill] sm:$0xff] %v6943_v25  ;;  %v2064_v55 = vrot.slane %v6758_v13, %v6933_v61  ;;  %v1493_v52 = vsel %vm1359_vm1, %v6780_v59, 0.0  ;;  %v1348_v29 = vpop.f32.mrb[30].mxu1  ;;  %v6018_v5 = vld [vmem:[#allocation10 + $0x1e0] sm:$0xff]   ;;  %v6021_v25 = vld [vmem:[#allocation10 + $0x168] sm:$0xff]  }
 0x1c1   :  { %v1919_v48 = vmul.f32 0.5, %v1785_v11  ;;  %v2005_v11 = vmul.f32 %v6907_v62, %v6713_v22  ;;  %v1789_v35 = vrot.slane %v1788_v27, 2  ;;  %v6019_v22 = vld [vmem:[#allocation10 + $0x120] sm:$0xff]   ;;  %v1349_v43 = vpop.f32.mrb[31].mxu1  ;;  %v1742_v13 = vrot.slane %v1741_v45, 1 }
 0x1c2   :  { %v1482_v62 = vrot.slane %v1481_v56, 2  ;;  %v2076_v31 = vrot.slane %v6941_v50, %v6761_v34  ;;  %v1494_v29 = vrot.slane %v1493_v52, 4  ;;  %v2096_v43 = vrot.slane %v6941_v50, %v6933_v61 }
 0x1c3   :  { %v1951_v33 = vadd.f32 1e-05, %v1919_v48  ;;  %5675 = vmatpush3.bf16.msra.mxu1 %v6012_v32  ;;  %v6242_v0 = vpop.eup %6241  ;;  %v1755_v48 = vadd.f32 %v1754_v37, %v1753_v21  ;;  %5655 = vmatpush3.bf16.msra.mxu0 %v6015_v63  ;;  %v2084_v32 = vrot.slane %v6941_v50, %v6772_v42  ;;  %v1597_v21 = vmul.f32 0.5, %v1450_v3 }
 0x1c4   :  { %5676 = vmatprep.subr.bf16.mxu1 %v6014_v1  ;;  %5656 = vmatprep.subr.bf16.mxu0 %v6017_v16  ;;  %v6244_v30 = vpop.eup %6243  ;;  %v1776_v37 = vadd.f32 %v1775_v38, %v1774_v8  ;;  %v1483_v1 = vadd.f32 %v1482_v62, %v1481_v56  ;;  %v2007_v63 = vmul.f32 %v6240_v7, %v6719_v28  ;;  %v6022_v8 = vld [vmem:[#allocation10 + $0x1e8] sm:$0xff]   ;;  %v1486_v7 = vsel %vm1359_vm1, %v6778_v54, 0.0 }
 0x1c5   :  { %6245 = vrsqrt.f32 %v1951_v33  ;;  %v1474_v33 = vadd.f32 %v1473_v57, %v1472_v15  ;;  %v2010_v23 = vmul.f32 %v6242_v0, %v6811_v24  ;;  %v1495_v36 = vadd.f32 %v1494_v29, %v1493_v52  ;;  %v6023_v15 = vld [vmem:[#allocation10 + $0x128] sm:$0xff]   ;;  %v6025_v24 = vld [vmem:[#allocation10 + $0x170] sm:$0xff]  }
 0x1c6   :  { %v2201_v60 = vmul.f32 %v2056_v20, %v2005_v11  ;;  %v1756_v16 = vrot.slane %v1755_v48, 1  ;;  %v1790_v9 = vadd.f32 %v1789_v35, %v1788_v27  ;;  %v1484_v3 = vrot.slane %v1483_v1, 1  ;;  %v6024_v0 = vld [vmem:[#allocation10 + $0x1a8] sm:$0xff]  }
 0x1c7   :  { %5677 = vmatpush3.bf16.msra.mxu1 %v6016_v51  ;;  %5657 = vmatpush3.bf16.msra.mxu0 %v6019_v22  ;;  %v1743_v38 = vadd.f32 %v1742_v13, %v1741_v45  ;;  %v2012_v28 = vmul.f32 %v6244_v30, %v6820_v4  ;;  %v1496_v57 = vrot.slane %v1495_v36, 2  ;;  %v6967_v20 = vsub.f32 %v6728_v14, %v1597_v21  ;;  %v6027_v14 = vld [vmem:[#allocation10 + $0x130] sm:$0xff]  }
 0x1c8   :  { %5678 = vmatprep.subr.bf16.mxu1 %v6018_v5  ;;  %5658 = vmatprep.subr.bf16.mxu0 %v6021_v25  ;;  %v1777_v56 = vrot.slane %v1776_v37, 1  ;;  %v1475_v11 = vrot.slane %v1474_v33, 2  ;;  %v1485_v27 = vadd.f32 %v1484_v3, %v1483_v1  ;;  %v2203_v51 = vmul.f32 %v2064_v55, %v2007_v63  ;;  %v6026_v5 = vld [vmem:[#allocation10 + $0x1f0] sm:$0xff]  }
 0x1c9   :  { %v2206_v52 = vmul.f32 %v2076_v31, %v2010_v23  ;;  %v1497_v35 = vadd.f32 %v1496_v57, %v1495_v36  ;;  %v2272_v4 = vrot.slane %v6961_v17, %v6761_v34  ;;  %v1757_v30 = vadd.f32 %v1756_v16, %v1755_v48  ;;  %v6029_v23 = vld [vmem:[#allocation10 + $0x178] sm:$0xff]  }
 0x1ca   :  { %v1791_v45 = vrot.slane %v1790_v9, 1  ;;  %v1602_v25 = vmul.f32 0.5, %v1485_v27  ;;  %v1487_v22 = vrot.slane %v1486_v7, 4  ;;  %v7288_v62 = vrot.slane %v6767_v39, %v6926_v26 }
 0x1cb   :  { %5679 = vmatpush3.bf16.msra.mxu1 %v6020_v41  ;;  %5659 = vmatpush3.bf16.msra.mxu0 %v6023_v15  ;;  %v2208_v55 = vmul.f32 %v2084_v32, %v2012_v28  ;;  %v1498_v41 = vrot.slane %v1497_v35, 1  ;;  %v2280_v36 = vrot.slane %v6961_v17, %v6772_v42  ;;  %v1913_v48 = vmul.f32 0.5, %v1743_v38 }
 0x1cc   :  { %5680 = vmatprep.subr.bf16.mxu1 %v6022_v8  ;;  %v2397_v13 = vadd.f32 %v7288_v62, %v2201_v60  ;;  %5660 = vmatprep.subr.bf16.mxu0 %v6025_v24  ;;  %v1661_v29 = vmul.f32 %v6967_v20, %v6967_v20  ;;  %v1778_v21 = vadd.f32 %v1777_v56, %v1776_v37  ;;  %v6028_v60 = vld [vmem:[#allocation10 + $0x1b0] sm:$0xff]   ;;  %v1915_v28 = vmul.f32 0.5, %v1757_v30  ;;  %v6030_v37 = vld [vmem:[#allocation10 + $0x1f8] sm:$0xff]   ;;  %v6033_v56 = vld [vmem:[#allocation10 + $0x240] sm:$0xff]  }
 0x1cd   :  { %v1476_v1 = vadd.f32 %v1475_v11, %v1474_v33  ;;  %v6980_v16 = vsub.f32 %v6776_v53, %v1602_v25  ;;  %v1499_v32 = vadd.f32 %v1498_v41, %v1497_v35  ;;  %v2402_v8 = vadd.f32 %v2272_v4, %v2206_v52  ;;  %v6031_v33 = vld [vmem:[#allocation10 + $0x138] sm:$0xff]   ;;  %v6034_v25 = vld [vmem:[#allocation10 + $0x2c0] sm:$0xff]  }
 0x1ce   :  { %v7289_v15 = vrot.slane %v6767_v39, %v6933_v61  ;;  %v1792_v38 = vadd.f32 %v1791_v45, %v1790_v9  ;;  %v1488_v24 = vadd.f32 %v1487_v22, %v1486_v7  ;;  %v2429_v53 = vmax.f32 %v2397_v13, 0.0 }
 0x1cf   :  { %v6246_v31 = vpop.eup %6245  ;;  %5681 = vmatpush3.bf16.msra.mxu1 %v6024_v0  ;;  %5661 = vmatpush3.bf16.msra.mxu0 %v6027_v14  ;;  %v2404_v11 = vadd.f32 %v2280_v36, %v2208_v55  ;;  %v1945_v27 = vadd.f32 1e-05, %v1913_v48  ;;  %v1765_v52 = vsel %vm1359_vm1, %v1661_v29, 0.0  ;;  %v1918_v0 = vmul.f32 0.5, %v1778_v21  ;;  %v6037_v55 = vld [vmem:[#allocation10 + $0x248] sm:$0xff]   ;;  %v6036_v48 = vld [vmem:[#allocation10 + $0x280] sm:$0xff]  }
 0x1d0   :  { %v2015_v63 = vmul.f32 %v6246_v31, %v6886_v46  ;;  %v2399_v3 = vadd.f32 %v7289_v15, %v2203_v51  ;;  %5682 = vmatprep.subr.bf16.mxu1 %v6026_v5  ;;  %v1604_v46 = vmul.f32 0.5, %v1499_v32  ;;  %5662 = vmatprep.subr.bf16.mxu0 %v6029_v23  ;;  %v1477_v39 = vrot.slane %v1476_v1, 1  ;;  %v6032_v51 = vld [vmem:[#allocation10 + $0x1b8] sm:$0xff]   ;;  %v6035_v5 = vld [vmem:[#allocation10 + $0x200] sm:$0xff]   ;;  %v6039_v15 = vld [vmem:[#allocation10 + $0x208] sm:$0xff]  }
 0x1d1   :  { %v1666_v9 = vmul.f32 %v6980_v16, %v6980_v16  ;;  %v1507_v35 = vsel %vm1359_vm1, %v6806_v10, 0.0  ;;  %v1920_v4 = vmul.f32 0.5, %v1792_v38  ;;  %v1489_v30 = vrot.slane %v1488_v24, 2  ;;  %v6041_v38 = vld [vmem:[#allocation10 + $0x250] sm:$0xff]  }
 0x1d2   :  { %v6985_v57 = vmul.f32 %v2096_v43, %v2015_v63  ;;  %v6991_v7 = vsub.f32 %v6780_v59, %v1604_v46  ;;  %v2434_v43 = vmax.f32 %v2402_v8, 0.0  ;;  %v2431_v45 = vmax.f32 %v2399_v3, 0.0  ;;  %v6038_v8 = vld [vmem:[#allocation10 + $0x2c8] sm:$0xff]  }
 0x1d3   :  { %5683 = vmatpush3.bf16.msra.mxu1 %v6028_v60  ;;  %5663 = vmatpush3.bf16.msra.mxu0 %v6031_v33  ;;  %v1508_v22 = vrot.slane %v1507_v35, 4  ;;  %v1947_v14 = vadd.f32 1e-05, %v1915_v28  ;;  %v2461_v13 = vpack.c.bf16 %v2429_v53, %v2429_v53  ;;  %v2436_v59 = vmax.f32 %v2404_v11, 0.0  ;;  %v6042_v11 = vld [vmem:[#allocation10 + $0x2d0] sm:$0xff]  }
 0x1d4   :  { %5684 = vmatprep.subr.bf16.mxu1 %v6030_v37  ;;  %v1668_v62 = vmul.f32 %v6991_v7, %v6991_v7  ;;  %5692 = vmatprep.subr.bf16.mxu0 %v6033_v56  ;;  %v1766_v41 = vrot.slane %v1765_v52, 4  ;;  %v1950_v23 = vadd.f32 1e-05, %v1918_v0  ;;  %6247 = vrsqrt.f32 %v1945_v27  ;;  %v6043_v27 = vld [vmem:[#allocation10 + $0x210] sm:$0xff]   ;;  %v6045_v0 = vld [vmem:[#allocation10 + $0x258] sm:$0xff]  }
 0x1d5   :  { %v1800_v36 = vsel %vm1359_vm1, %v1666_v9, 0.0  ;;  %v2466_v31 = vpack.c.bf16 %v2434_v43, %v2434_v43  ;;  %v1509_v29 = vadd.f32 %v1508_v22, %v1507_v35  ;;  %v1952_v21 = vadd.f32 1e-05, %v1920_v4  ;;  %v6049_v22 = vld [vmem:[#allocation10 + $0x260] sm:$0xff]  }
 0x1d6   :  { %4650 = vmatmul.mubr.bf16.vlgmr.msra.gmra.mrb[36].mxu0 %v2461_v13  ;;  %v1478_v63 = vadd.f32 %v1477_v39, %v1476_v1  ;;  %v1490_v60 = vadd.f32 %v1489_v30, %v1488_v24  ;;  %v2463_v32 = vpack.c.bf16 %v2431_v45, %v2431_v45  ;;  %6249 = vrsqrt.f32 %v1947_v14  ;;  %v6040_v1 = vld [vmem:[#allocation10 + $0x288] sm:$0xff]   ;;  %v6046_v45 = vld [vmem:[#allocation10 + $0x2d8] sm:$0xff]  }
 0x1d7   :  { %5685 = vmatpush3.bf16.msra.mxu1 %v6032_v51  ;;  %5693 = vmatpush3.bf16.msra.mxu0 %v6035_v5  ;;  %v1814_v3 = vsel %vm1359_vm1, %v1668_v62, 0.0  ;;  %v2468_v28 = vpack.c.bf16 %v2436_v59, %v2436_v59  ;;  %v1767_v37 = vadd.f32 %v1766_v41, %v1765_v52  ;;  %6251 = vrsqrt.f32 %v1950_v23  ;;  %v6044_v52 = vld [vmem:[#allocation10 + $0x290] sm:$0xff]   ;;  %v6048_v41 = vld [vmem:[#allocation10 + $0x298] sm:$0xff]  }
 0x1d8   :  { %5714 = vmatprep.subr.bf16.mxu1 %v6034_v25  ;;  %4729 = vmatprep.mubr.bf16.mxu0 %v2466_v31  ;;  %v1801_v33 = vrot.slane %v1800_v36, 4  ;;  %v1510_v24 = vrot.slane %v1509_v29, 2  ;;  %6253 = vrsqrt.f32 %v1952_v21  ;;  %v1601_v46 = vmul.f32 0.5, %v1478_v63  ;;  %v6047_v25 = vld [vmem:[#allocation10 + $0x218] sm:$0xff]   ;;  %v6051_v21 = vld [vmem:[#allocation10 + $0x220] sm:$0xff]  }
 0x1d9   :  { %5694 = vmatprep.subr.bf16.mxu0 %v6037_v55  ;;  %v1491_v53 = vrot.slane %v1490_v60, 1  ;;  %v1815_v56 = vrot.slane %v1814_v3, 4  ;;  %v1768_v39 = vrot.slane %v1767_v37, 2  ;;  %v1521_v43 = vsel %vm1359_vm1, %v6813_v6, 0.0 }
 0x1da   :  { %4690 = vmatmul.mubr.bf16.vlgmr.msra.gmra.mrb[36].mxu1 %v2463_v32  ;;  %v1802_v9 = vadd.f32 %v1801_v33, %v1800_v36  ;;  %v1511_v51 = vadd.f32 %v1510_v24, %v1509_v29  ;;  %v7002_v35 = vsub.f32 %v6774_v44, %v1601_v46  ;;  %v1500_v13 = vsel %vm1359_vm1, %v6800_v58, 0.0  ;;  %v6050_v29 = vld [vmem:[#allocation10 + $0x2e0] sm:$0xff]  }
 0x1db   :  { %5715 = vmatpush3.bf16.msra.mxu1 %v6036_v48  ;;  %4769 = vmatprep.mubr.bf16.mxu1 %v2468_v28  ;;  %v1492_v4 = vadd.f32 %v1491_v53, %v1490_v60  ;;  %v1816_v30 = vadd.f32 %v1815_v56, %v1814_v3  ;;  %v1769_v14 = vadd.f32 %v1768_v39, %v1767_v37  ;;  %v1522_v59 = vrot.slane %v1521_v43, 4  ;;  %v6052_v53 = vld [vmem:[#allocation10 + $0x2a0] sm:$0xff]   ;;  %v6054_v39 = vld [vmem:[#allocation10 + $0x2e8] sm:$0xff]  }
 0x1dc   :  { %5716 = vmatprep.subr.bf16.mxu1 %v6038_v8  ;;  %5695 = vmatpush3.bf16.msra.mxu0 %v6039_v15  ;;  %v1803_v62 = vrot.slane %v1802_v9, 2  ;;  %v1512_v44 = vrot.slane %v1511_v51, 1  ;;  %v1665_v36 = vmul.f32 %v7002_v35, %v7002_v35  ;;  %v2072_v32 = vrot.slane %v6941_v50, %v6748_v19  ;;  %v6053_v15 = vld [vmem:[#allocation10 + $0x268] sm:$0xff]  }
 0x1dd   :  { %5696 = vmatprep.subr.bf16.mxu0 %v6041_v38  ;;  %v1603_v31 = vmul.f32 0.5, %v1492_v4  ;;  %v1817_v48 = vrot.slane %v1816_v30, 2  ;;  %v1523_v63 = vadd.f32 %v1522_v59, %v1521_v43  ;;  %v2268_v8 = vrot.slane %v6961_v17, %v6748_v19  ;;  %v7290_v43 = vld [vmem:[#allocation20_spill] sm:$0xff] }
 0x1de   :  { %v6248_v5 = vpop.eup %6247  ;;  %v1501_v3 = vrot.slane %v1500_v13, 4  ;;  %v2080_v38 = vrot.slane %v6941_v50, %v6751_v2  ;;  %v1770_v37 = vrot.slane %v1769_v14, 1  ;;  %v1804_v33 = vadd.f32 %v1803_v62, %v1802_v9  ;;  %v6055_v9 = vld [vmem:[#allocation10 + $0x228] sm:$0xff]  }
 0x1df   :  { %5717 = vmatpush3.bf16.msra.mxu1 %v6040_v1  ;;  %v2009_v60 = vmul.f32 %v6248_v5, %v6836_v40  ;;  %v1524_v1 = vrot.slane %v1523_v63, 2  ;;  %v2092_v46 = vrot.slane %v6941_v50, %v6789_v12  ;;  %v1513_v56 = vadd.f32 %v1512_v44, %v1511_v51  ;;  %v6057_v51 = vld [vmem:[#allocation10 + $0x270] sm:$0xff]   ;;  %v6056_v59 = vld [vmem:[#allocation10 + $0x2a8] sm:$0xff]  }
 0x1e0   :  { %5718 = vmatprep.subr.bf16.mxu1 %v6042_v11  ;;  %5697 = vmatpush3.bf16.msra.mxu0 %v6043_v27  ;;  %v6250_v55 = vpop.eup %6249  ;;  %v1793_v11 = vsel %vm1359_vm1, %v1665_v36, 0.0  ;;  %v7021_v27 = vsub.f32 %v6778_v54, %v1603_v31  ;;  %v2100_v4 = vrot.slane %v6941_v50, %v7290_v43  ;;  %v1771_v54 = vadd.f32 %v1770_v37, %v1769_v14  ;;  %v6059_v36 = vld [vmem:[#allocation10 + $0x230] sm:$0xff]  }
 0x1e1   :  { %5698 = vmatprep.subr.bf16.mxu0 %v6045_v0  ;;  %v6252_v23 = vpop.eup %6251  ;;  %v2011_v24 = vmul.f32 %v6250_v55, %v6871_v49  ;;  %v1818_v0 = vadd.f32 %v1817_v48, %v1816_v30  ;;  %v2205_v49 = vmul.f32 %v2072_v32, %v2009_v60  ;;  %v1805_v5 = vrot.slane %v1804_v33, 1 }
 0x1e2   :  { %v6254_v28 = vpop.eup %6253  ;;  %v2014_v40 = vmul.f32 %v6252_v23, %v6874_v18  ;;  %v1794_v62 = vrot.slane %v1793_v11, 4  ;;  %v1606_v55 = vmul.f32 0.5, %v1513_v56  ;;  %v1667_v44 = vmul.f32 %v7021_v27, %v7021_v27  ;;  %v6058_v23 = vld [vmem:[#allocation10 + $0x2f0] sm:$0xff]   ;;  %v6063_v56 = vld [vmem:[#allocation10 + $0x238] sm:$0xff]  }
 0x1e3   :  { %5719 = vmatpush3.bf16.msra.mxu1 %v6044_v52  ;;  %v1525_v52 = vadd.f32 %v1524_v1, %v1523_v63  ;;  %v2016_v18 = vmul.f32 %v6254_v28, %v6915_v47  ;;  %v2288_v47 = vrot.slane %v6961_v17, %v6789_v12  ;;  %v2401_v31 = vadd.f32 %v2268_v8, %v2205_v49  ;;  %v6060_v1 = vld [vmem:[#allocation10 + $0x2b0] sm:$0xff]  }
 0x1e4   :  { %5720 = vmatprep.subr.bf16.mxu1 %v6046_v45  ;;  %5699 = vmatpush3.bf16.msra.mxu0 %v6047_v25  ;;  %v1502_v45 = vadd.f32 %v1501_v3, %v1500_v13  ;;  %v2276_v25 = vrot.slane %v6961_v17, %v6751_v2  ;;  %v1819_v13 = vrot.slane %v1818_v0, 1  ;;  %v2296_v63 = vrot.slane %v6961_v17, %v7290_v43 }
 0x1e5   :  { %5700 = vmatprep.subr.bf16.mxu0 %v6049_v22  ;;  %v1526_v30 = vrot.slane %v1525_v52, 1  ;;  %v2210_v22 = vmul.f32 %v2092_v46, %v2014_v40  ;;  %v2212_v48 = vmul.f32 %v2100_v4, %v2016_v18  ;;  %v1917_v60 = vmul.f32 0.5, %v1771_v54  ;;  %v7292_v54 = vld [vmem:[#allocation23_spill] sm:$0xff] }
 0x1e6   :  { %v1806_v32 = vadd.f32 %v1805_v5, %v1804_v33  ;;  %v1795_v3 = vadd.f32 %v1794_v62, %v1793_v11  ;;  %v7035_v28 = vsub.f32 %v6806_v10, %v1606_v55  ;;  %v1807_v40 = vsel %vm1359_vm1, %v1667_v44, 0.0  ;;  %v6067_v62 = vld [vmem:[#allocation10 + $0x300] sm:$0xff]  }
 0x1e7   :  { %5721 = vmatpush3.bf16.msra.mxu1 %v6048_v41  ;;  %v2207_v41 = vmul.f32 %v2080_v38, %v2011_v24  ;;  %v1527_v14 = vadd.f32 %v1526_v30, %v1525_v52  ;;  %v7291_v38 = vld [vmem:[#allocation21_spill] sm:$0xff]  ;;  %v2406_v8 = vadd.f32 %v2288_v47, %v2210_v22  ;;  %v1820_v46 = vadd.f32 %v1819_v13, %v1818_v0  ;;  %v6064_v0 = vld [vmem:[#allocation10 + $0x2b8] sm:$0xff]   ;;  %v6066_v22 = vld [vmem:[#allocation10 + $0x3c0] sm:$0xff]  }
 0x1e8   :  { %5722 = vmatprep.subr.bf16.mxu1 %v6050_v29  ;;  %5701 = vmatpush3.bf16.msra.mxu0 %v6051_v21  ;;  %v1503_v29 = vrot.slane %v1502_v45, 2  ;;  %v6061_v21 = vld [vmem:[#allocation10 + $0x278] sm:$0xff]   ;;  %v1514_v37 = vsel %vm1359_vm1, %v7291_v38, 0.0  ;;  %v2433_v10 = vmax.f32 %v2401_v31, 0.0  ;;  %v1949_v52 = vadd.f32 1e-05, %v1917_v60 }
 0x1e9   :  { %5702 = vmatprep.subr.bf16.mxu0 %v6053_v15  ;;  %v1608_v15 = vmul.f32 0.5, %v1527_v14  ;;  %v2403_v24 = vadd.f32 %v2276_v25, %v2207_v41  ;;  %v1922_v49 = vmul.f32 0.5, %v1806_v32  ;;  %v1515_v18 = vrot.slane %v1514_v37, 4  ;;  %v6069_v13 = vld [vmem:[#allocation10 + $0x348] sm:$0xff]  }
 0x1ea   :  { %v1504_v33 = vadd.f32 %v1503_v29, %v1502_v45  ;;  %v1796_v4 = vrot.slane %v1795_v3, 2  ;;  %v2438_v25 = vmax.f32 %v2406_v8, 0.0  ;;  %v1535_v45 = vsel %vm1359_vm1, %v7292_v54, 0.0 }
 0x1eb   :  { %5723 = vmatpush3.bf16.msra.mxu1 %v6052_v53  ;;  %v6062_v53 = vld [vmem:[#allocation10 + $0x2f8] sm:$0xff]   ;;  %v7041_v11 = vsub.f32 %v6813_v6, %v1608_v15  ;;  %v1808_v5 = vrot.slane %v1807_v40, 4  ;;  %v1924_v6 = vmul.f32 0.5, %v1820_v46  ;;  %v2435_v30 = vmax.f32 %v2403_v24, 0.0  ;;  %v6070_v15 = vld [vmem:[#allocation10 + $0x3c8] sm:$0xff]   ;;  %v6073_v46 = vld [vmem:[#allocation10 + $0x350] sm:$0xff]  }
 0x1ec   :  { %5724 = vmatprep.subr.bf16.mxu1 %v6054_v39  ;;  %5703 = vmatpush3.bf16.msra.mxu0 %v6055_v9  ;;  %v6065_v39 = vld [vmem:[#allocation10 + $0x340] sm:$0xff]   ;;  %v2408_v9 = vadd.f32 %v2296_v63, %v2212_v48  ;;  %v1505_v55 = vrot.slane %v1504_v33, 1  ;;  %v2465_v41 = vpack.c.bf16 %v2433_v10, %v2433_v10  ;;  %6255 = vrsqrt.f32 %v1949_v52 }
 0x1ed   :  { %5704 = vmatprep.subr.bf16.mxu0 %v6057_v51  ;;  %v1670_v51 = vmul.f32 %v7035_v28, %v7035_v28  ;;  %v1672_v47 = vmul.f32 %v7041_v11, %v7041_v11  ;;  %v2470_v31 = vpack.c.bf16 %v2438_v25, %v2438_v25  ;;  %v6068_v48 = vld [vmem:[#allocation10 + $0x380] sm:$0xff]   ;;  %v1809_v63 = vadd.f32 %v1808_v5, %v1807_v40 }
 0x1ee   :  { %v2440_v44 = vmax.f32 %v2408_v9, 0.0  ;;  %v1956_v60 = vadd.f32 1e-05, %v1924_v6  ;;  %v2467_v32 = vpack.c.bf16 %v2435_v30, %v2435_v30  ;;  %v1506_v8 = vadd.f32 %v1505_v55, %v1504_v33  ;;  %v6076_v30 = vld [vmem:[#allocation10 + $0x390] sm:$0xff]   ;;  %v6078_v55 = vld [vmem:[#allocation10 + $0x3d8] sm:$0xff]  }
 0x1ef   :  { %5725 = vmatpush3.bf16.msra.mxu1 %v6056_v59  ;;  %v1536_v59 = vrot.slane %v1535_v45, 4  ;;  %v1828_v14 = vsel %vm1359_vm1, %v1670_v51, 0.0  ;;  %v1842_v24 = vsel %vm1359_vm1, %v1672_v47, 0.0  ;;  %v1810_v52 = vrot.slane %v1809_v63, 2  ;;  %v6079_v47 = vld [vmem:[#allocation10 + $0x318] sm:$0xff]  }
 0x1f0   :  { %5726 = vmatprep.subr.bf16.mxu1 %v6058_v23  ;;  %5705 = vmatpush3.bf16.msra.mxu0 %v6059_v36  ;;  %v1954_v23 = vadd.f32 1e-05, %v1922_v49  ;;  %v1516_v36 = vadd.f32 %v1515_v18, %v1514_v37  ;;  %v2472_v37 = vpack.c.bf16 %v2440_v44, %v2440_v44  ;;  %v1829_v10 = vrot.slane %v1828_v14, 4  ;;  %v6074_v49 = vld [vmem:[#allocation10 + $0x3d0] sm:$0xff]   ;;  %v6081_v44 = vld [vmem:[#allocation10 + $0x360] sm:$0xff]  }
 0x1f1   :  { %5706 = vmatprep.subr.bf16.mxu0 %v6061_v21  ;;  %v1537_v29 = vadd.f32 %v1536_v59, %v1535_v45  ;;  %v1797_v21 = vadd.f32 %v1796_v4, %v1795_v3  ;;  %v1843_v33 = vrot.slane %v1842_v24, 4  ;;  %v6075_v18 = vld [vmem:[#allocation10 + $0x310] sm:$0xff]   ;;  %v1605_v25 = vmul.f32 0.5, %v1506_v8 }
 0x1f2   :  { %6257 = vrsqrt.f32 %v1954_v23  ;;  %v1517_v3 = vrot.slane %v1516_v36, 2  ;;  %v1830_v45 = vadd.f32 %v1829_v10, %v1828_v14 }
 0x1f3   :  { %5727 = vmatpush3.bf16.msra.mxu1 %v6060_v1  ;;  %v6071_v1 = vld [vmem:[#allocation10 + $0x308] sm:$0xff]   ;;  %v1538_v9 = vrot.slane %v1537_v29, 2  ;;  %6259 = vrsqrt.f32 %v1956_v60  ;;  %v1798_v51 = vrot.slane %v1797_v21, 1  ;;  %v1844_v59 = vadd.f32 %v1843_v33, %v1842_v24 }
 0x1f4   :  { %5728 = vmatprep.subr.bf16.mxu1 %v6062_v53  ;;  %5707 = vmatpush3.bf16.msra.mxu0 %v6063_v56  ;;  %v7293_v53 = vld [vmem:[#allocation25_spill] sm:$0xff]  ;;  %v1518_v5 = vadd.f32 %v1517_v3, %v1516_v36  ;;  %v1831_v14 = vrot.slane %v1830_v45, 2  ;;  %v2284_v24 = vrot.slane %v6961_v17, %v6926_v26 }
 0x1f5   :  { %5736 = vmatprep.subr.bf16.mxu0 %v6065_v39  ;;  %v1549_v56 = vsel %vm1359_vm1, %v7293_v53, 0.0  ;;  %v6072_v39 = vld [vmem:[#allocation10 + $0x388] sm:$0xff]   ;;  %v1799_v23 = vadd.f32 %v1798_v51, %v1797_v21  ;;  %v1845_v8 = vrot.slane %v1844_v59, 2  ;;  %v6082_v21 = vld [vmem:[#allocation10 + $0x3e0] sm:$0xff]  }
 0x1f6   :  { %v1550_v40 = vrot.slane %v1549_v56, 4  ;;  %v1519_v36 = vrot.slane %v1518_v5, 1 }
 0x1f7   :  { %5729 = vmatpush3.bf16.msra.mxu1 %v6064_v0  ;;  %4730 = vmatmul.mubr.bf16.vlgmr.msra.gmra.mrb[40].mxu0 %v2465_v41  ;;  %v6077_v0 = vld [vmem:[#allocation10 + $0x358] sm:$0xff]   ;;  %v6256_v41 = vpop.eup %6255  ;;  %v1921_v10 = vmul.f32 0.5, %v1799_v23  ;;  %v1846_v51 = vadd.f32 %v1845_v8, %v1844_v59 }
 0x1f8   :  { %5758 = vmatprep.subr.bf16.mxu1 %v6066_v22  ;;  %5737 = vmatpush3.bf16.msra.mxu0 %v6067_v62  ;;  %v1551_v4 = vadd.f32 %v1550_v40, %v1549_v56  ;;  %v1539_v22 = vadd.f32 %v1538_v9, %v1537_v29  ;;  %v1811_v62 = vadd.f32 %v1810_v52, %v1809_v63  ;;  %v6084_v52 = vld [vmem:[#allocation10 + $0x3a0] sm:$0xff]   ;;  %v7294_v59 = vld [vmem:[#allocation22_spill] sm:$0xff] }
 0x1f9   :  { %4809 = vmatprep.mubr.bf16.mxu0 %v2470_v31  ;;  %5738 = vmatprep.subr.bf16.mxu0 %v6069_v13  ;;  %v7054_v31 = vsub.f32 %v6800_v58, %v1605_v25  ;;  %v2013_v63 = vmul.f32 %v6256_v41, %v6967_v20  ;;  %v6083_v58 = vld [vmem:[#allocation10 + $0x320] sm:$0xff]   ;;  %v1520_v3 = vadd.f32 %v1519_v36, %v1518_v5  ;;  %v6087_v25 = vld [vmem:[#allocation10 + $0x328] sm:$0xff]   ;;  %v1528_v41 = vsel %vm1359_vm1, %v7294_v59, 0.0 }
 0x1fa   :  { %4770 = vmatmul.mubr.bf16.vlgmr.msra.gmra.mrb[40].mxu1 %v2467_v32  ;;  %v1552_v6 = vrot.slane %v1551_v4, 2  ;;  %v1540_v60 = vrot.slane %v1539_v22, 1  ;;  %v2088_v32 = vrot.slane %v6941_v50, %v6926_v26  ;;  %v1832_v50 = vadd.f32 %v1831_v14, %v1830_v45 }
 0x1fb   :  { %5759 = vmatpush3.bf16.msra.mxu1 %v6068_v48  ;;  %4849 = vmatprep.mubr.bf16.mxu1 %v2472_v37  ;;  %v6080_v48 = vld [vmem:[#allocation10 + $0x398] sm:$0xff]   ;;  %v6085_v37 = vld [vmem:[#allocation10 + $0x368] sm:$0xff]   ;;  %v1669_v20 = vmul.f32 %v7054_v31, %v7054_v31  ;;  %v2292_v40 = vrot.slane %v6961_v17, %v6933_v61  ;;  %v1847_v36 = vrot.slane %v1846_v51, 1 }
 0x1fc   :  { %5760 = vmatprep.subr.bf16.mxu1 %v6070_v15  ;;  %5739 = vmatpush3.bf16.msra.mxu0 %v6071_v1  ;;  %v1553_v13 = vadd.f32 %v1552_v6, %v1551_v4  ;;  %v6258_v29 = vpop.eup %6257  ;;  %v7059_v15 = vld [vmem:[#allocation7 + $0x10] sm:$0xff]  ;;  %v1812_v1 = vrot.slane %v1811_v62, 1  ;;  %v1541_v33 = vadd.f32 %v1540_v60, %v1539_v22  ;;  %v1953_v6 = vadd.f32 1e-05, %v1921_v10 }
 0x1fd   :  { %5740 = vmatprep.subr.bf16.mxu0 %v6073_v46  ;;  %v6260_v56 = vpop.eup %6259  ;;  %v2108_v9 = vrot.slane %v7059_v15, %v6761_v34  ;;  %v2116_v17 = vrot.slane %v7059_v15, %v6772_v42  ;;  %v1833_v22 = vrot.slane %v1832_v50, 1  ;;  %v7081_v14 = vadd.f32 %v2292_v40, %v6985_v57  ;;  %v6091_v60 = vld [vmem:[#allocation10 + $0x330] sm:$0xff]  }
 0x1fe   :  { %v1554_v46 = vrot.slane %v1553_v13, 1  ;;  %v1813_v4 = vadd.f32 %v1812_v1, %v1811_v62  ;;  %v2020_v45 = vmul.f32 %v6260_v56, %v6991_v7  ;;  %v6088_v62 = vld [vmem:[#allocation10 + $0x3a8] sm:$0xff]   ;;  %v6093_v1 = vld [vmem:[#allocation10 + $0x378] sm:$0xff]   ;;  %v1529_v57 = vrot.slane %v1528_v41, 4  ;;  %v6092_v56 = vld [vmem:[#allocation10 + $0x3b0] sm:$0xff]  }
 0x1ff   :  { %5761 = vmatpush3.bf16.msra.mxu1 %v6072_v39  ;;  %v2018_v39 = vmul.f32 %v6258_v29, %v6980_v16  ;;  %v6089_v16 = vld [vmem:[#allocation10 + $0x370] sm:$0xff]   ;;  %6261 = vrsqrt.f32 %v1953_v6  ;;  %v1848_v40 = vadd.f32 %v1847_v36, %v1846_v51  ;;  %v6096_v6 = vld [vmem:[#allocation10 + $0x3b8] sm:$0xff]  }
 0x200   :  { %5762 = vmatprep.subr.bf16.mxu1 %v6074_v49  ;;  %5741 = vmatpush3.bf16.msra.mxu0 %v6075_v18  ;;  %v2209_v49 = vmul.f32 %v2088_v32, %v2013_v63  ;;  %v7070_v18 = vld [vmem:[#allocation8 + $0x10] sm:$0xff]  ;;  %v1555_v5 = vadd.f32 %v1554_v46, %v1553_v13  ;;  %v1923_v13 = vmul.f32 0.5, %v1813_v4  ;;  %v2216_v29 = vmul.f32 %v2116_v17, %v2020_v45  ;;  %v6097_v4 = vld [vmem:[#allocation10 + $0x440] sm:$0xff]  }
 0x201   :  { %5742 = vmatprep.subr.bf16.mxu0 %v6077_v0  ;;  %v6086_v0 = vld [vmem:[#allocation10 + $0x3e8] sm:$0xff]   ;;  %v2304_v7 = vrot.slane %v7070_v18, %v6761_v34  ;;  %v2312_v8 = vrot.slane %v7070_v18, %v6772_v42 }
 0x202   :  { %v2405_v23 = vadd.f32 %v2284_v24, %v2209_v49  ;;  %v1612_v32 = vmul.f32 0.5, %v1555_v5  ;;  %v7295_v24 = vld [vmem:[#allocation28_spill] sm:$0xff] }
 0x203   :  { %5763 = vmatpush3.bf16.msra.mxu1 %v6076_v30  ;;  %v1821_v30 = vsel %vm1359_vm1, %v1669_v20, 0.0 }
 0x204   :  { %5764 = vmatprep.subr.bf16.mxu1 %v6078_v55  ;;  %5743 = vmatpush3.bf16.msra.mxu0 %v6079_v47  ;;  %v1607_v55 = vmul.f32 0.5, %v1520_v3  ;;  %v2214_v47 = vmul.f32 %v2108_v9, %v2018_v39  ;;  %v1822_v63 = vrot.slane %v1821_v30, 4  ;;  %v1955_v3 = vadd.f32 1e-05, %v1923_v13  ;;  %v7296_v39 = vld [vmem:[#allocation24_spill] sm:$0xff]  ;;  %v6095_v9 = vld [vmem:[#allocation10 + $0x338] sm:$0xff]  }
 0x205   :  { %5744 = vmatprep.subr.bf16.mxu0 %v6081_v44  ;;  %v1610_v44 = vmul.f32 0.5, %v1541_v33  ;;  %v7098_v49 = vsub.f32 %v7293_v53, %v1612_v32 }
 0x206   :  { %v2410_v10 = vadd.f32 %v2304_v7, %v2214_v47  ;;  %v7100_v45 = vadd.f32 %v1822_v63, %v1821_v30  ;;  %v1928_v47 = vmul.f32 0.5, %v1848_v40  ;;  %v2439_v30 = vmax.f32 %v7081_v14, 0.0  ;;  %v6099_v7 = vld [vmem:[#allocation10 + $0x400] sm:$0xff]  }
 0x207   :  { %5765 = vmatpush3.bf16.msra.mxu1 %v6080_v48  ;;  %v6090_v48 = vld [vmem:[#allocation10 + $0x3f0] sm:$0xff]   ;;  %v7091_v46 = vsub.f32 %v7292_v54, %v1610_v44  ;;  %v2437_v54 = vmax.f32 %v2405_v23, 0.0  ;;  %v6098_v44 = vld [vmem:[#allocation10 + $0x4c0] sm:$0xff]   ;;  %6263 = vrsqrt.f32 %v1955_v3 }
 0x208   :  { %5766 = vmatprep.subr.bf16.mxu1 %v6082_v21  ;;  %5745 = vmatpush3.bf16.msra.mxu0 %v6083_v58  ;;  %v1834_v21 = vadd.f32 %v1833_v22, %v1832_v50  ;;  %v7086_v58 = vsub.f32 %v7291_v38, %v1607_v55  ;;  %v1542_v50 = vsel %vm1359_vm1, %v7296_v39, 0.0  ;;  %v6094_v38 = vld [vmem:[#allocation10 + $0x3f8] sm:$0xff]   ;;  %v2442_v22 = vmax.f32 %v2410_v10, 0.0  ;;  %v7298_v23 = vld [vmem:[#allocation29_spill] sm:$0xff] }
 0x209   :  { %5746 = vmatprep.subr.bf16.mxu0 %v6085_v37  ;;  %v1570_v37 = vsel %vm1359_vm1, %v7295_v24, 0.0  ;;  %v1674_v5 = vmul.f32 %v7091_v46, %v7091_v46  ;;  %v1577_v13 = vsel %vm1359_vm1, %v7298_v23, 0.0  ;;  %v2469_v36 = vpack.c.bf16 %v2437_v54, %v2437_v54  ;;  %v6262_v54 = vpop.eup %6261 }
 0x20a   :  { %v1571_v20 = vrot.slane %v1570_v37, 4  ;;  %v1926_v51 = vmul.f32 0.5, %v1834_v21  ;;  %v1671_v17 = vmul.f32 %v7086_v58, %v7086_v58  ;;  %v2474_v21 = vpack.c.bf16 %v2442_v22, %v2442_v22 }
 0x20b   :  { %5767 = vmatpush3.bf16.msra.mxu1 %v6084_v52  ;;  %v7297_v52 = vld [vmem:[#allocation27_spill] sm:$0xff]  ;;  %v1856_v14 = vsel %vm1359_vm1, %v1674_v5, 0.0  ;;  %v1960_v10 = vadd.f32 1e-05, %v1928_v47  ;;  %v2471_v40 = vpack.c.bf16 %v2439_v30, %v2439_v30  ;;  %v6107_v47 = vld [vmem:[#allocation10 + $0x410] sm:$0xff]   ;;  %v1824_v30 = vrot.slane %v7100_v45, 2 }
 0x20c   :  { %5768 = vmatprep.subr.bf16.mxu1 %v6086_v0  ;;  %5747 = vmatpush3.bf16.msra.mxu0 %v6087_v25  ;;  %v1563_v33 = vsel %vm1359_vm1, %v7297_v52, 0.0  ;;  %v2412_v0 = vadd.f32 %v2312_v8, %v2216_v29  ;;  %v1572_v25 = vadd.f32 %v1571_v20, %v1570_v37  ;;  %v1958_v63 = vadd.f32 1e-05, %v1926_v51 }
 0x20d   :  { %5748 = vmatprep.subr.bf16.mxu0 %v6089_v16  ;;  %v1530_v16 = vadd.f32 %v1529_v57, %v1528_v41  ;;  %v1564_v53 = vrot.slane %v1563_v33, 4  ;;  %v1676_v41 = vmul.f32 %v7098_v49, %v7098_v49  ;;  %v1835_v32 = vsel %vm1359_vm1, %v1671_v17, 0.0  ;;  %v6100_v57 = vld [vmem:[#allocation10 + $0x480] sm:$0xff]  }
 0x20e   :  { %v1573_v55 = vrot.slane %v1572_v25, 2  ;;  %v1578_v8 = vrot.slane %v1577_v13, 4  ;;  %6265 = vrsqrt.f32 %v1958_v63  ;;  %v1857_v5 = vrot.slane %v1856_v14, 4 }
 0x20f   :  { %5769 = vmatpush3.bf16.msra.mxu1 %v6088_v62  ;;  %v1543_v62 = vrot.slane %v1542_v50, 4  ;;  %v1565_v37 = vadd.f32 %v1564_v53, %v1563_v33  ;;  %v1836_v33 = vrot.slane %v1835_v32, 4  ;;  %6267 = vrsqrt.f32 %v1960_v10 }
 0x210   :  { %5770 = vmatprep.subr.bf16.mxu1 %v6090_v48  ;;  %5749 = vmatpush3.bf16.msra.mxu0 %v6091_v60  ;;  %v2444_v48 = vmax.f32 %v2412_v0, 0.0  ;;  %v6101_v60 = vld [vmem:[#allocation10 + $0x448] sm:$0xff]   ;;  %v1574_v29 = vadd.f32 %v1573_v55, %v1572_v25  ;;  %v6105_v25 = vld [vmem:[#allocation10 + $0x450] sm:$0xff]   ;;  %v1579_v17 = vadd.f32 %v1578_v8, %v1577_v13  ;;  %v6111_v8 = vld [vmem:[#allocation10 + $0x418] sm:$0xff]  }
 0x211   :  { %5750 = vmatprep.subr.bf16.mxu0 %v6093_v1  ;;  %v1531_v1 = vrot.slane %v1530_v16, 2  ;;  %v1544_v20 = vadd.f32 %v1543_v62, %v1542_v50  ;;  %v6104_v50 = vld [vmem:[#allocation10 + $0x488] sm:$0xff]   ;;  %v6106_v55 = vld [vmem:[#allocation10 + $0x4d0] sm:$0xff]   ;;  %v1837_v13 = vadd.f32 %v1836_v33, %v1835_v32  ;;  %v2104_v32 = vrot.slane %v7059_v15, %v6748_v19 }
 0x212   :  { %v2476_v0 = vpack.c.bf16 %v2444_v48, %v2444_v48 }
 0x213   :  { %5771 = vmatpush3.bf16.msra.mxu1 %v6092_v56  ;;  %v1575_v56 = vrot.slane %v1574_v29, 1  ;;  %v1532_v3 = vadd.f32 %v1531_v1, %v1530_v16  ;;  %v1545_v22 = vrot.slane %v1544_v20, 2  ;;  %v6110_v1 = vld [vmem:[#allocation10 + $0x4d8] sm:$0xff]   ;;  %v1838_v10 = vrot.slane %v1837_v13, 2 }
 0x214   :  { %5772 = vmatprep.subr.bf16.mxu1 %v6094_v38  ;;  %5751 = vmatpush3.bf16.msra.mxu0 %v6095_v9  ;;  %v6102_v38 = vld [vmem:[#allocation10 + $0x4c8] sm:$0xff]  }
 0x215   :  { %5780 = vmatprep.subr.bf16.mxu0 %v6097_v4  ;;  %v6103_v9 = vld [vmem:[#allocation10 + $0x408] sm:$0xff]   ;;  %v1870_v4 = vsel %vm1359_vm1, %v1676_v41, 0.0  ;;  %v1576_v51 = vadd.f32 %v1575_v56, %v1574_v29  ;;  %v1858_v41 = vadd.f32 %v1857_v5, %v1856_v14  ;;  %v1546_v29 = vadd.f32 %v1545_v22, %v1544_v20  ;;  %v6264_v56 = vpop.eup %6263 }
 0x216   :  { %v1871_v53 = vrot.slane %v1870_v4, 4  ;;  %v1825_v14 = vadd.f32 %v1824_v30, %v7100_v45  ;;  %v2112_v45 = vrot.slane %v7059_v15, %v6751_v2  ;;  %v2308_v5 = vrot.slane %v7070_v18, %v6751_v2 }
 0x217   :  { %5773 = vmatpush3.bf16.msra.mxu1 %v6096_v6  ;;  %4810 = vmatmul.mubr.bf16.vlgmr.msra.gmra.mrb[44].mxu0 %v2469_v36  ;;  %v1566_v6 = vrot.slane %v1565_v37, 2  ;;  %v1615_v62 = vmul.f32 0.5, %v1576_v51  ;;  %v6108_v36 = vld [vmem:[#allocation10 + $0x490] sm:$0xff]   ;;  %v1859_v20 = vrot.slane %v1858_v41, 2  ;;  %v1839_v30 = vadd.f32 %v1838_v10, %v1837_v13  ;;  %v6119_v13 = vld [vmem:[#allocation10 + $0x428] sm:$0xff]  }
 0x218   :  { %5802 = vmatprep.subr.bf16.mxu1 %v6098_v44  ;;  %5781 = vmatpush3.bf16.msra.mxu0 %v6099_v7  ;;  %v6109_v44 = vld [vmem:[#allocation10 + $0x458] sm:$0xff]   ;;  %v1580_v7 = vrot.slane %v1579_v17, 2  ;;  %v1872_v63 = vadd.f32 %v1871_v53, %v1870_v4 }
 0x219   :  { %4889 = vmatprep.mubr.bf16.mxu0 %v2474_v21  ;;  %5782 = vmatprep.subr.bf16.mxu0 %v6101_v60  ;;  %v7116_v16 = vsub.f32 %v7295_v24, %v1615_v62  ;;  %v1567_v48 = vadd.f32 %v1566_v6, %v1565_v37  ;;  %v1533_v60 = vrot.slane %v1532_v3, 1  ;;  %v6113_v24 = vld [vmem:[#allocation10 + $0x460] sm:$0xff]   ;;  %v2017_v37 = vmul.f32 %v6262_v54, %v7002_v35  ;;  %v6117_v6 = vld [vmem:[#allocation10 + $0x468] sm:$0xff]  }
 0x21a   :  { %4850 = vmatmul.mubr.bf16.vlgmr.msra.gmra.mrb[44].mxu1 %v2471_v40  ;;  %v1873_v33 = vrot.slane %v1872_v63, 2  ;;  %v6114_v35 = vld [vmem:[#allocation10 + $0x4e0] sm:$0xff]   ;;  %v2019_v62 = vmul.f32 %v6264_v56, %v7021_v27  ;;  %v6118_v27 = vld [vmem:[#allocation10 + $0x4e8] sm:$0xff]   ;;  %v6121_v56 = vld [vmem:[#allocation10 + $0x470] sm:$0xff]  }
 0x21b   :  { %5803 = vmatpush3.bf16.msra.mxu1 %v6100_v57  ;;  %4929 = vmatprep.mubr.bf16.mxu1 %v2476_v0  ;;  %v1679_v21 = vmul.f32 %v7116_v16, %v7116_v16  ;;  %v1581_v57 = vadd.f32 %v1580_v7, %v1579_v17  ;;  %v1568_v4 = vrot.slane %v1567_v48, 1  ;;  %v1534_v51 = vadd.f32 %v1533_v60, %v1532_v3  ;;  %v6115_v54 = vld [vmem:[#allocation10 + $0x420] sm:$0xff]  }
 0x21c   :  { %5804 = vmatprep.subr.bf16.mxu1 %v6102_v38  ;;  %5783 = vmatpush3.bf16.msra.mxu0 %v6103_v9  ;;  %v2300_v38 = vrot.slane %v7070_v18, %v6748_v19  ;;  %v6112_v9 = vld [vmem:[#allocation10 + $0x498] sm:$0xff]   ;;  %v1547_v17 = vrot.slane %v1546_v29, 1  ;;  %v1860_v3 = vadd.f32 %v1859_v20, %v1858_v41  ;;  %v2124_v7 = vrot.slane %v7059_v15, %v6789_v12 }
 0x21d   :  { %5784 = vmatprep.subr.bf16.mxu0 %v6105_v25  ;;  %v1891_v40 = vsel %vm1359_vm1, %v1679_v21, 0.0  ;;  %v6266_v25 = vpop.eup %6265  ;;  %v1582_v53 = vrot.slane %v1581_v57, 1  ;;  %v1569_v60 = vadd.f32 %v1568_v4, %v1567_v48  ;;  %v1609_v21 = vmul.f32 0.5, %v1534_v51 }
 0x21e   :  { %v1892_v0 = vrot.slane %v1891_v40, 4  ;;  %v2215_v48 = vmul.f32 %v2112_v45, %v2019_v62  ;;  %v1840_v20 = vrot.slane %v1839_v30, 1  ;;  %v6122_v45 = vld [vmem:[#allocation10 + $0x4f0] sm:$0xff]  }
 0x21f   :  { %5805 = vmatpush3.bf16.msra.mxu1 %v6104_v50  ;;  %v1826_v50 = vrot.slane %v1825_v14, 1 }
 0x220   :  { %5806 = vmatprep.subr.bf16.mxu1 %v6106_v55  ;;  %5785 = vmatpush3.bf16.msra.mxu0 %v6107_v47  ;;  %v1893_v22 = vadd.f32 %v1892_v0, %v1891_v40  ;;  %v6268_v55 = vpop.eup %6267  ;;  %v2213_v47 = vmul.f32 %v2104_v32, %v2017_v37  ;;  %v1874_v40 = vadd.f32 %v1873_v33, %v1872_v63  ;;  %v1614_v63 = vmul.f32 0.5, %v1569_v60 }
 0x221   :  { %5786 = vmatprep.subr.bf16.mxu0 %v6109_v44  ;;  %v2022_v44 = vmul.f32 %v6266_v25, %v7035_v28  ;;  %v1827_v41 = vadd.f32 %v1826_v50, %v1825_v14  ;;  %v2024_v28 = vmul.f32 %v6268_v55, %v7041_v11  ;;  %v1583_v37 = vadd.f32 %v1582_v53, %v1581_v57  ;;  %v7299_v57 = vld [vmem:[#allocation26_spill] sm:$0xff] }
 0x222   :  { %v7138_v10 = vadd.f32 %v2300_v38, %v2213_v47  ;;  %v2320_v25 = vrot.slane %v7070_v18, %v6789_v12  ;;  %v7143_v14 = vsub.f32 %v7294_v59, %v1609_v21  ;;  %v1875_v51 = vrot.slane %v1874_v40, 1  ;;  %v6125_v50 = vld [vmem:[#allocation10 + $0x478] sm:$0xff]  }
 0x223   :  { %5807 = vmatpush3.bf16.msra.mxu1 %v6108_v36  ;;  %v6116_v36 = vld [vmem:[#allocation10 + $0x4a0] sm:$0xff]   ;;  %v2218_v4 = vmul.f32 %v2124_v7, %v2022_v44  ;;  %v1556_v38 = vsel %vm1359_vm1, %v7299_v57, 0.0  ;;  %v1925_v59 = vmul.f32 0.5, %v1827_v41  ;;  %v1841_v55 = vadd.f32 %v1840_v20, %v1839_v30  ;;  %v6124_v44 = vld [vmem:[#allocation10 + $0x4b0] sm:$0xff]  }
 0x224   :  { %5808 = vmatprep.subr.bf16.mxu1 %v6110_v1  ;;  %5787 = vmatpush3.bf16.msra.mxu0 %v6111_v8  ;;  %v1894_v1 = vrot.slane %v1893_v22, 2  ;;  %v2132_v8 = vrot.slane %v7059_v15, %v7290_v43  ;;  %v7150_v47 = vsub.f32 %v7297_v52, %v1614_v63  ;;  %v2441_v52 = vmax.f32 %v7138_v10, 0.0  ;;  %v6131_v20 = vld [vmem:[#allocation10 + $0x500] sm:$0xff]  }
 0x225   :  { %5788 = vmatprep.subr.bf16.mxu0 %v6113_v24  ;;  %v1548_v24 = vadd.f32 %v1547_v17, %v1546_v29  ;;  %v6120_v29 = vld [vmem:[#allocation10 + $0x4a8] sm:$0xff]   ;;  %v6123_v17 = vld [vmem:[#allocation10 + $0x430] sm:$0xff]   ;;  %v2414_v7 = vadd.f32 %v2320_v25, %v2218_v4 }
 0x226   :  { %v1895_v32 = vadd.f32 %v1894_v1, %v1893_v22  ;;  %v2220_v33 = vmul.f32 %v2132_v8, %v2024_v28  ;;  %v2411_v22 = vadd.f32 %v2308_v5, %v2215_v48  ;;  %v1876_v1 = vadd.f32 %v1875_v51, %v1874_v40  ;;  %v6126_v5 = vld [vmem:[#allocation10 + $0x4f8] sm:$0xff]   ;;  %v6130_v48 = vld [vmem:[#allocation10 + $0x5c0] sm:$0xff]  }
 0x227   :  { %5809 = vmatpush3.bf16.msra.mxu1 %v6112_v9  ;;  %v1861_v9 = vrot.slane %v1860_v3, 1  ;;  %v1611_v11 = vmul.f32 0.5, %v1548_v24  ;;  %v1557_v8 = vrot.slane %v1556_v38, 4  ;;  %v6129_v24 = vld [vmem:[#allocation10 + $0x540] sm:$0xff]   ;;  %v1927_v28 = vmul.f32 0.5, %v1841_v55  ;;  %v6128_v40 = vld [vmem:[#allocation10 + $0x4b8] sm:$0xff]  }
 0x228   :  { %5810 = vmatprep.subr.bf16.mxu1 %v6114_v35  ;;  %5789 = vmatpush3.bf16.msra.mxu0 %v6115_v54  ;;  %v1896_v0 = vrot.slane %v1895_v32, 1  ;;  %v1616_v54 = vmul.f32 0.5, %v1583_v37  ;;  %v1932_v37 = vmul.f32 0.5, %v1876_v1  ;;  %v2443_v10 = vmax.f32 %v2411_v22, 0.0  ;;  %v6137_v55 = vld [vmem:[#allocation10 + $0x550] sm:$0xff]  }
 0x229   :  { %5790 = vmatprep.subr.bf16.mxu0 %v6117_v6  ;;  %v2328_v6 = vrot.slane %v7070_v18, %v7290_v43  ;;  %v1862_v53 = vadd.f32 %v1861_v9, %v1860_v3  ;;  %v7155_v60 = vsub.f32 %v7296_v39, %v1611_v11  ;;  %v6127_v3 = vld [vmem:[#allocation10 + $0x438] sm:$0xff]   ;;  %v1678_v39 = vmul.f32 %v7150_v47, %v7150_v47 }
 0x22a   :  { %v1897_v35 = vadd.f32 %v1896_v0, %v1895_v32  ;;  %v7158_v21 = vsub.f32 %v7298_v23, %v1616_v54  ;;  %v2446_v32 = vmax.f32 %v2414_v7, 0.0  ;;  %v1558_v9 = vadd.f32 %v1557_v8, %v1556_v38  ;;  %v6133_v0 = vld [vmem:[#allocation10 + $0x548] sm:$0xff]  }
 0x22b   :  { %5811 = vmatpush3.bf16.msra.mxu1 %v6116_v36  ;;  %v1673_v36 = vmul.f32 %v7143_v14, %v7143_v14  ;;  %v1930_v41 = vmul.f32 0.5, %v1862_v53  ;;  %v1675_v23 = vmul.f32 %v7155_v60, %v7155_v60  ;;  %v1959_v11 = vadd.f32 1e-05, %v1927_v28 }
 0x22c   :  { %5812 = vmatprep.subr.bf16.mxu1 %v6118_v27  ;;  %5791 = vmatpush3.bf16.msra.mxu0 %v6119_v13  ;;  %v1935_v62 = vmul.f32 0.5, %v1897_v35  ;;  %v2416_v27 = vadd.f32 %v2328_v6, %v2220_v33  ;;  %v1957_v13 = vadd.f32 1e-05, %v1925_v59  ;;  %v1680_v4 = vmul.f32 %v7158_v21, %v7158_v21  ;;  %v6135_v6 = vld [vmem:[#allocation10 + $0x508] sm:$0xff]  }
 0x22d   :  { %5792 = vmatprep.subr.bf16.mxu0 %v6121_v56  ;;  %v1849_v56 = vsel %vm1359_vm1, %v1673_v36, 0.0  ;;  %v1962_v25 = vadd.f32 1e-05, %v1930_v41  ;;  %v1884_v51 = vsel %vm1359_vm1, %v1678_v39, 0.0  ;;  %v1863_v35 = vsel %vm1359_vm1, %v1675_v23, 0.0  ;;  %v6136_v36 = vld [vmem:[#allocation10 + $0x588] sm:$0xff]  }
 0x22e   :  { %v1967_v30 = vadd.f32 1e-05, %v1935_v62  ;;  %v2448_v63 = vmax.f32 %v2416_v27, 0.0  ;;  %v1850_v33 = vrot.slane %v1849_v56, 4  ;;  %v1964_v38 = vadd.f32 1e-05, %v1932_v37 }
 0x22f   :  { %5813 = vmatpush3.bf16.msra.mxu1 %v6120_v29  ;;  %v2473_v29 = vpack.c.bf16 %v2441_v52, %v2441_v52  ;;  %v2475_v54 = vpack.c.bf16 %v2443_v10, %v2443_v10  ;;  %v1559_v22 = vrot.slane %v1558_v9, 2  ;;  %v1898_v59 = vsel %vm1359_vm1, %v1680_v4, 0.0  ;;  %v6142_v10 = vld [vmem:[#allocation10 + $0x5d8] sm:$0xff]   ;;  %v6145_v4 = vld [vmem:[#allocation10 + $0x560] sm:$0xff]  }
 0x230   :  { %5814 = vmatprep.subr.bf16.mxu1 %v6122_v45  ;;  %5793 = vmatpush3.bf16.msra.mxu0 %v6123_v17  ;;  %6269 = vrsqrt.f32 %v1967_v30  ;;  %v2478_v45 = vpack.c.bf16 %v2446_v32, %v2446_v32  ;;  %v6132_v17 = vld [vmem:[#allocation10 + $0x580] sm:$0xff]   ;;  %v2480_v53 = vpack.c.bf16 %v2448_v63, %v2448_v63  ;;  %v1885_v62 = vrot.slane %v1884_v51, 4  ;;  %v6139_v30 = vld [vmem:[#allocation10 + $0x510] sm:$0xff]  }
 0x231   :  { %5794 = vmatprep.subr.bf16.mxu0 %v6125_v50  ;;  %6271 = vrsqrt.f32 %v1957_v13  ;;  %v6134_v50 = vld [vmem:[#allocation10 + $0x5c8] sm:$0xff]   ;;  %v1864_v7 = vrot.slane %v1863_v35, 4  ;;  %v1851_v1 = vadd.f32 %v1850_v33, %v1849_v56  ;;  %v1560_v27 = vadd.f32 %v1559_v22, %v1558_v9  ;;  %v6141_v13 = vld [vmem:[#allocation10 + $0x558] sm:$0xff]   ;;  %v6140_v32 = vld [vmem:[#allocation10 + $0x590] sm:$0xff]  }
 0x232   :  { %6273 = vrsqrt.f32 %v1962_v25  ;;  %v1886_v41 = vadd.f32 %v1885_v62, %v1884_v51 }
 0x233   :  { %5815 = vmatpush3.bf16.msra.mxu1 %v6124_v44  ;;  %6275 = vrsqrt.f32 %v1959_v11  ;;  %v7171_v44 = vld [vmem:[#allocation7 + $0x18] sm:$0xff]  ;;  %v1852_v56 = vrot.slane %v1851_v1, 2  ;;  %v1561_v9 = vrot.slane %v1560_v27, 1 }
 0x234   :  { %5816 = vmatprep.subr.bf16.mxu1 %v6126_v5  ;;  %5795 = vmatpush3.bf16.msra.mxu0 %v6127_v3  ;;  %6277 = vrsqrt.f32 %v1964_v38  ;;  %v2160_v8 = vrot.slane %v7171_v44, %v6933_v61  ;;  %v1899_v5 = vrot.slane %v1898_v59, 4  ;;  %v6138_v3 = vld [vmem:[#allocation10 + $0x5d0] sm:$0xff]   ;;  %v2120_v38 = vrot.slane %v7059_v15, %v6926_v26 }
 0x235   :  { %5824 = vmatprep.subr.bf16.mxu0 %v6129_v24  ;;  %v7175_v24 = vld [vmem:[#allocation8 + $0x18] sm:$0xff]  ;;  %v1853_v11 = vadd.f32 %v1852_v56, %v1851_v1 }
 0x236   :  { %v2356_v39 = vrot.slane %v7175_v24, %v6933_v61  ;;  %v1900_v37 = vadd.f32 %v1899_v5, %v1898_v59  ;;  %v2316_v59 = vrot.slane %v7070_v18, %v6926_v26  ;;  %v6150_v5 = vld [vmem:[#allocation10 + $0x5e8] sm:$0xff]  }
 0x237   :  { %5817 = vmatpush3.bf16.msra.mxu1 %v6128_v40  ;;  %4890 = vmatmul.mubr.bf16.vlgmr.msra.gmra.mrb[48].mxu0 %v2473_v29  ;;  %v1865_v40 = vadd.f32 %v1864_v7, %v1863_v35  ;;  %v1887_v29 = vrot.slane %v1886_v41, 2  ;;  %v6148_v7 = vld [vmem:[#allocation10 + $0x5a0] sm:$0xff]   ;;  %v1854_v1 = vrot.slane %v1853_v11, 1 }
 0x238   :  { %5846 = vmatprep.subr.bf16.mxu1 %v6130_v48  ;;  %5825 = vmatpush3.bf16.msra.mxu0 %v6131_v20  ;;  %v6143_v48 = vld [vmem:[#allocation10 + $0x518] sm:$0xff]   ;;  %v1901_v51 = vrot.slane %v1900_v37, 2 }
 0x239   :  { %4969 = vmatprep.mubr.bf16.mxu0 %v2478_v45  ;;  %5826 = vmatprep.subr.bf16.mxu0 %v6133_v0  ;;  %v6144_v0 = vld [vmem:[#allocation10 + $0x598] sm:$0xff]   ;;  %v6146_v45 = vld [vmem:[#allocation10 + $0x5e0] sm:$0xff]   ;;  %v1888_v22 = vadd.f32 %v1887_v29, %v1886_v41  ;;  %v1855_v56 = vadd.f32 %v1854_v1, %v1853_v11 }
 0x23a   :  { %4930 = vmatmul.mubr.bf16.vlgmr.msra.gmra.mrb[48].mxu1 %v2475_v54  ;;  %v6270_v52 = vpop.eup %6269  ;;  %v1562_v54 = vadd.f32 %v1561_v9, %v1560_v27  ;;  %v6157_v9 = vld [vmem:[#allocation10 + $0x578] sm:$0xff]  }
 0x23b   :  { %5847 = vmatpush3.bf16.msra.mxu1 %v6132_v17  ;;  %5009 = vmatprep.mubr.bf16.mxu1 %v2480_v53  ;;  %v2031_v28 = vmul.f32 %v6270_v52, %v7116_v16  ;;  %v6272_v20 = vpop.eup %6271  ;;  %v1866_v16 = vrot.slane %v1865_v40, 2  ;;  %v6147_v17 = vld [vmem:[#allocation10 + $0x520] sm:$0xff]   ;;  %v2148_v52 = vrot.slane %v7171_v44, %v6772_v42  ;;  %v1889_v41 = vrot.slane %v1888_v22, 1  ;;  %v6158_v11 = vld [vmem:[#allocation10 + $0x5f8] sm:$0xff]  }
 0x23c   :  { %5848 = vmatprep.subr.bf16.mxu1 %v6134_v50  ;;  %5827 = vmatpush3.bf16.msra.mxu0 %v6135_v6  ;;  %v6274_v25 = vpop.eup %6273  ;;  %v2021_v35 = vmul.f32 %v6272_v20, %v7054_v31  ;;  %v6149_v50 = vld [vmem:[#allocation10 + $0x568] sm:$0xff]   ;;  %v1613_v27 = vmul.f32 0.5, %v1562_v54 }
 0x23d   :  { %5828 = vmatprep.subr.bf16.mxu0 %v6137_v55  ;;  %v2227_v23 = vmul.f32 %v2160_v8, %v2031_v28  ;;  %v6276_v33 = vpop.eup %6275  ;;  %v2026_v53 = vmul.f32 %v6274_v25, %v7091_v46  ;;  %v2140_v55 = vrot.slane %v7171_v44, %v6761_v34  ;;  %v1867_v62 = vadd.f32 %v1866_v16, %v1865_v40 }
 0x23e   :  { %v6278_v6 = vpop.eup %6277  ;;  %v2023_v31 = vmul.f32 %v6276_v33, %v7086_v58  ;;  %v1902_v8 = vadd.f32 %v1901_v51, %v1900_v37  ;;  %v6155_v37 = vld [vmem:[#allocation10 + $0x530] sm:$0xff]   ;;  %v7201_v20 = vsub.f32 %v7299_v57, %v1613_v27  ;;  %v6159_v51 = vld [vmem:[#allocation10 + $0x538] sm:$0xff]   ;;  %v6167_v27 = vld [vmem:[#allocation10 + $0x608] sm:$0xff]  }
 0x23f   :  { %5849 = vmatpush3.bf16.msra.mxu1 %v6136_v36  ;;  %v7180_v63 = vadd.f32 %v2356_v39, %v2227_v23  ;;  %v2128_v36 = vrot.slane %v7059_v15, %v6933_v61  ;;  %v2028_v46 = vmul.f32 %v6278_v6, %v7098_v49  ;;  %v2222_v58 = vmul.f32 %v2140_v55, %v2026_v53  ;;  %v6152_v15 = vld [vmem:[#allocation10 + $0x5a8] sm:$0xff]   ;;  %v6154_v23 = vld [vmem:[#allocation10 + $0x5f0] sm:$0xff]   ;;  %v6163_v53 = vld [vmem:[#allocation10 + $0x600] sm:$0xff]  }
 0x240   :  { %5850 = vmatprep.subr.bf16.mxu1 %v6138_v3  ;;  %5829 = vmatpush3.bf16.msra.mxu0 %v6139_v30  ;;  %v6151_v3 = vld [vmem:[#allocation10 + $0x528] sm:$0xff]   ;;  %v2217_v30 = vmul.f32 %v2120_v38, %v2021_v35  ;;  %v1868_v28 = vrot.slane %v1867_v62, 1  ;;  %v2336_v39 = vrot.slane %v7175_v24, %v6761_v34  ;;  %v1903_v49 = vrot.slane %v1902_v8, 1  ;;  %v6160_v38 = vld [vmem:[#allocation10 + $0x5b8] sm:$0xff]  }
 0x241   :  { %5830 = vmatprep.subr.bf16.mxu0 %v6141_v13  ;;  %v6153_v13 = vld [vmem:[#allocation10 + $0x570] sm:$0xff]   ;;  %v2219_v40 = vmul.f32 %v2128_v36, %v2023_v31  ;;  %v2344_v34 = vrot.slane %v7175_v24, %v6772_v42  ;;  %v1677_v57 = vmul.f32 %v7201_v20, %v7201_v20  ;;  %v6165_v31 = vld [vmem:[#allocation10 + $0x648] sm:$0xff]  }
 0x242   :  { %v1869_v29 = vadd.f32 %v1868_v28, %v1867_v62  ;;  %v1904_v25 = vadd.f32 %v1903_v49, %v1902_v8  ;;  %v6174_v49 = vld [vmem:[#allocation10 + $0x6d8] sm:$0xff]  }
 0x243   :  { %5851 = vmatpush3.bf16.msra.mxu1 %v6140_v32  ;;  %v2324_v32 = vrot.slane %v7070_v18, %v6933_v61  ;;  %v6156_v61 = vld [vmem:[#allocation10 + $0x5b0] sm:$0xff]   ;;  %v2418_v18 = vadd.f32 %v2336_v39, %v2222_v58  ;;  %v1877_v55 = vsel %vm1359_vm1, %v1677_v57, 0.0  ;;  %v6168_v58 = vld [vmem:[#allocation10 + $0x688] sm:$0xff]   ;;  %v6180_v57 = vld [vmem:[#allocation10 + $0x6a0] sm:$0xff]  }
 0x244   :  { %5852 = vmatprep.subr.bf16.mxu1 %v6142_v10  ;;  %5831 = vmatpush3.bf16.msra.mxu0 %v6143_v48  ;;  %v2413_v10 = vadd.f32 %v2316_v59, %v2217_v30  ;;  %v2224_v48 = vmul.f32 %v2148_v52, %v2028_v46  ;;  %v1931_v35 = vmul.f32 0.5, %v1869_v29  ;;  %v1936_v6 = vmul.f32 0.5, %v1904_v25  ;;  %v6162_v59 = vld [vmem:[#allocation10 + $0x6c0] sm:$0xff]   ;;  %v6166_v52 = vld [vmem:[#allocation10 + $0x6c8] sm:$0xff]   ;;  %v6171_v39 = vld [vmem:[#allocation10 + $0x610] sm:$0xff]  }
 0x245   :  { %5832 = vmatprep.subr.bf16.mxu0 %v6145_v4  ;;  %v1890_v4 = vadd.f32 %v1889_v41, %v1888_v22  ;;  %v2415_v16 = vadd.f32 %v2324_v32, %v2219_v40  ;;  %v2450_v54 = vmax.f32 %v2418_v18, 0.0  ;;  %v6169_v41 = vld [vmem:[#allocation10 + $0x650] sm:$0xff]   ;;  %v6173_v40 = vld [vmem:[#allocation10 + $0x658] sm:$0xff]   ;;  %v6179_v29 = vld [vmem:[#allocation10 + $0x620] sm:$0xff]  }
 0x246   :  { %v2420_v33 = vadd.f32 %v2344_v34, %v2224_v48  ;;  %v1963_v1 = vadd.f32 1e-05, %v1931_v35  ;;  %v1968_v30 = vadd.f32 1e-05, %v1936_v6  ;;  %v6172_v32 = vld [vmem:[#allocation10 + $0x690] sm:$0xff]   ;;  %v6176_v48 = vld [vmem:[#allocation10 + $0x698] sm:$0xff]  }
 0x247   :  { %5853 = vmatpush3.bf16.msra.mxu1 %v6144_v0  ;;  %v1929_v0 = vmul.f32 0.5, %v1855_v56  ;;  %v1934_v42 = vmul.f32 0.5, %v1890_v4  ;;  %v2447_v22 = vmax.f32 %v2415_v16, 0.0  ;;  %v2482_v8 = vpack.c.bf16 %v2450_v54, %v2450_v54  ;;  %v6178_v4 = vld [vmem:[#allocation10 + $0x6e0] sm:$0xff]   ;;  %v6184_v6 = vld [vmem:[#allocation10 + $0x6a8] sm:$0xff]  }
 0x248   :  { %5854 = vmatprep.subr.bf16.mxu1 %v6146_v45  ;;  %5833 = vmatpush3.bf16.msra.mxu0 %v6147_v17  ;;  %v2445_v45 = vmax.f32 %v2413_v10, 0.0  ;;  %v6161_v17 = vld [vmem:[#allocation10 + $0x640] sm:$0xff]   ;;  %v2136_v16 = vrot.slane %v7171_v44, %v6748_v19  ;;  %v2164_v54 = vrot.slane %v7171_v44, %v7290_v43 }
 0x249   :  { %5834 = vmatprep.subr.bf16.mxu0 %v6149_v50  ;;  %v1961_v50 = vadd.f32 1e-05, %v1929_v0  ;;  %v1966_v36 = vadd.f32 1e-05, %v1934_v42  ;;  %v2479_v46 = vpack.c.bf16 %v2447_v22, %v2447_v22  ;;  %v6181_v0 = vld [vmem:[#allocation10 + $0x668] sm:$0xff]   ;;  %v2352_v22 = vrot.slane %v7175_v24, %v6789_v12 }
 0x24a   :  { %v2477_v62 = vpack.c.bf16 %v2445_v45, %v2445_v45  ;;  %v6183_v42 = vld [vmem:[#allocation10 + $0x628] sm:$0xff]  }
 0x24b   :  { %5855 = vmatpush3.bf16.msra.mxu1 %v6148_v7  ;;  %v2452_v7 = vmax.f32 %v2420_v33, 0.0  ;;  %6279 = vrsqrt.f32 %v1961_v50  ;;  %v6185_v50 = vld [vmem:[#allocation10 + $0x670] sm:$0xff]  }
 0x24c   :  { %5856 = vmatprep.subr.bf16.mxu1 %v6150_v5  ;;  %5835 = vmatpush3.bf16.msra.mxu0 %v6151_v3  ;;  %v6164_v5 = vld [vmem:[#allocation10 + $0x680] sm:$0xff]   ;;  %v1878_v3 = vrot.slane %v1877_v55, 4  ;;  %6281 = vrsqrt.f32 %v1966_v36  ;;  %v2360_v36 = vrot.slane %v7175_v24, %v7290_v43 }
 0x24d   :  { %5836 = vmatprep.subr.bf16.mxu0 %v6153_v13  ;;  %v2484_v13 = vpack.c.bf16 %v2452_v7, %v2452_v7  ;;  %6283 = vrsqrt.f32 %v1963_v1  ;;  %v6188_v1 = vld [vmem:[#allocation10 + $0x6b0] sm:$0xff]  }
 0x24e   :  { %v1879_v28 = vadd.f32 %v1878_v3, %v1877_v55  ;;  %6285 = vrsqrt.f32 %v1968_v30  ;;  %v6191_v3 = vld [vmem:[#allocation10 + $0x638] sm:$0xff]  }
 0x24f   :  { %5857 = vmatpush3.bf16.msra.mxu1 %v6152_v15  ;;  %v6170_v15 = vld [vmem:[#allocation10 + $0x6d0] sm:$0xff]  }
 0x250   :  { %5858 = vmatprep.subr.bf16.mxu1 %v6154_v23  ;;  %5837 = vmatpush3.bf16.msra.mxu0 %v6155_v37  ;;  %v1880_v56 = vrot.slane %v1879_v28, 2  ;;  %v6175_v23 = vld [vmem:[#allocation10 + $0x618] sm:$0xff]   ;;  %v6177_v37 = vld [vmem:[#allocation10 + $0x660] sm:$0xff]  }
 0x251   :  { %5838 = vmatprep.subr.bf16.mxu0 %v6157_v9 }
 0x252   :  { %v1881_v34 = vadd.f32 %v1880_v56, %v1879_v28  ;;  %v6195_v28 = vld [vmem:[#allocation10 + $0x700] sm:$0xff]  }
 0x253   :  { %5859 = vmatpush3.bf16.msra.mxu1 %v6156_v61  ;;  %v6196_v56 = vld [vmem:[#allocation10 + $0x780] sm:$0xff]  }
 0x254   :  { %5860 = vmatprep.subr.bf16.mxu1 %v6158_v11  ;;  %5839 = vmatpush3.bf16.msra.mxu0 %v6159_v51  ;;  %v2156_v51 = vrot.slane %v7171_v44, %v6789_v12  ;;  %v1882_v33 = vrot.slane %v1881_v34, 1 }
 0x255   :  { %5868 = vmatprep.subr.bf16.mxu0 %v6161_v17  ;;  %v6280_v10 = vpop.eup %6279  ;;  %v2144_v17 = vrot.slane %v7171_v44, %v6751_v2 }
 0x256   :  { %v6282_v9 = vpop.eup %6281  ;;  %v2025_v18 = vmul.f32 %v6280_v10, %v7143_v14  ;;  %v6182_v14 = vld [vmem:[#allocation10 + $0x6e8] sm:$0xff]   ;;  %v1883_v55 = vadd.f32 %v1882_v33, %v1881_v34  ;;  %v6202_v34 = vld [vmem:[#allocation10 + $0x7d0] sm:$0xff]  }
 0x257   :  { %5861 = vmatpush3.bf16.msra.mxu1 %v6160_v38  ;;  %4970 = vmatmul.mubr.bf16.vlgmr.msra.gmra.mrb[52].mxu0 %v2477_v62  ;;  %v6284_v61 = vpop.eup %6283  ;;  %v2030_v11 = vmul.f32 %v6282_v9, %v7150_v47  ;;  %v2332_v38 = vrot.slane %v7175_v24, %v6748_v19  ;;  %v6186_v19 = vld [vmem:[#allocation10 + $0x6f0] sm:$0xff]   ;;  %v6200_v9 = vld [vmem:[#allocation10 + $0x788] sm:$0xff]  }
 0x258   :  { %5890 = vmatprep.subr.bf16.mxu1 %v6162_v59  ;;  %5869 = vmatpush3.bf16.msra.mxu0 %v6163_v53  ;;  %v6286_v25 = vpop.eup %6285  ;;  %v2027_v45 = vmul.f32 %v6284_v61, %v7155_v60  ;;  %v2221_v35 = vmul.f32 %v2136_v16, %v2025_v18  ;;  %v2340_v53 = vrot.slane %v7175_v24, %v6751_v2  ;;  %v6190_v2 = vld [vmem:[#allocation10 + $0x6f8] sm:$0xff]   ;;  %v6204_v61 = vld [vmem:[#allocation10 + $0x790] sm:$0xff]   ;;  %v6213_v33 = vld [vmem:[#allocation10 + $0x768] sm:$0xff]  }
 0x259   :  { %5049 = vmatprep.mubr.bf16.mxu0 %v2482_v8  ;;  %5870 = vmatprep.subr.bf16.mxu0 %v6165_v31  ;;  %v2032_v47 = vmul.f32 %v6286_v25, %v7158_v21  ;;  %v2226_v60 = vmul.f32 %v2156_v51, %v2030_v11  ;;  %v6187_v21 = vld [vmem:[#allocation10 + $0x630] sm:$0xff]   ;;  %v6189_v31 = vld [vmem:[#allocation10 + $0x678] sm:$0xff]   ;;  %v6210_v51 = vld [vmem:[#allocation10 + $0x7e0] sm:$0xff]  }
 0x25a   :  { %5010 = vmatmul.mubr.bf16.vlgmr.msra.gmra.mrb[52].mxu1 %v2479_v46  ;;  %v2223_v59 = vmul.f32 %v2144_v17, %v2027_v45  ;;  %v2417_v62 = vadd.f32 %v2332_v38, %v2221_v35  ;;  %v6193_v46 = vld [vmem:[#allocation10 + $0x740] sm:$0xff]   ;;  %v6206_v18 = vld [vmem:[#allocation10 + $0x7d8] sm:$0xff]   ;;  %v2152_v17 = vrot.slane %v7171_v44, %v6926_v26  ;;  %v6215_v35 = vld [vmem:[#allocation10 + $0x728] sm:$0xff]  }
 0x25b   :  { %5891 = vmatpush3.bf16.msra.mxu1 %v6164_v5  ;;  %5089 = vmatprep.mubr.bf16.mxu1 %v2484_v13  ;;  %v2228_v7 = vmul.f32 %v2164_v54, %v2032_v47  ;;  %v2422_v8 = vadd.f32 %v2352_v22, %v2226_v60  ;;  %v1933_v5 = vmul.f32 0.5, %v1883_v55  ;;  %v6207_v16 = vld [vmem:[#allocation10 + $0x718] sm:$0xff]   ;;  %v2348_v47 = vrot.slane %v7175_v24, %v6926_v26  ;;  %v6217_v54 = vld [vmem:[#allocation10 + $0x770] sm:$0xff]   ;;  %v6216_v60 = vld [vmem:[#allocation10 + $0x7a8] sm:$0xff]  }
 0x25c   :  { %5892 = vmatprep.subr.bf16.mxu1 %v6166_v52  ;;  %5871 = vmatpush3.bf16.msra.mxu0 %v6167_v27  ;;  %v2419_v12 = vadd.f32 %v2340_v53, %v2223_v59  ;;  %v2449_v30 = vmax.f32 %v2417_v62, 0.0  ;;  %v6192_v27 = vld [vmem:[#allocation10 + $0x6b8] sm:$0xff]   ;;  %v6218_v22 = vld [vmem:[#allocation10 + $0x7f0] sm:$0xff]  }
 0x25d   :  { %5872 = vmatprep.subr.bf16.mxu0 %v6169_v41  ;;  %v2424_v52 = vadd.f32 %v2360_v36, %v2228_v7  ;;  %v2454_v13 = vmax.f32 %v2422_v8, 0.0  ;;  %v1965_v41 = vadd.f32 1e-05, %v1933_v5  ;;  %v6208_v11 = vld [vmem:[#allocation10 + $0x798] sm:$0xff]   ;;  %v6219_v59 = vld [vmem:[#allocation10 + $0x730] sm:$0xff]  }
 0x25e   :  { %v2451_v43 = vmax.f32 %v2419_v12, 0.0  ;;  %v6220_v24 = vld [vmem:[#allocation10 + $0x7b0] sm:$0xff]   ;;  %v6222_v36 = vld [vmem:[#allocation10 + $0x7f8] sm:$0xff]  }
 0x25f   :  { %5893 = vmatpush3.bf16.msra.mxu1 %v6168_v58  ;;  %v6194_v58 = vld [vmem:[#allocation10 + $0x7c0] sm:$0xff]   ;;  %6287 = vrsqrt.f32 %v1965_v41  ;;  %v6224_v5 = vld [vmem:[#allocation10 + $0x7b8] sm:$0xff]  }
 0x260   :  { %5894 = vmatprep.subr.bf16.mxu1 %v6170_v15  ;;  %5873 = vmatpush3.bf16.msra.mxu0 %v6171_v39  ;;  %v2481_v15 = vpack.c.bf16 %v2449_v30, %v2449_v30  ;;  %v2456_v39 = vmax.f32 %v2424_v52, 0.0 }
 0x261   :  { %5874 = vmatprep.subr.bf16.mxu0 %v6173_v40  ;;  %v6197_v40 = vld [vmem:[#allocation10 + $0x748] sm:$0xff]  }
 0x262   :  { %v2488_v10 = vpack.c.bf16 %v2456_v39, %v2456_v39 }
 0x263   :  { %5895 = vmatpush3.bf16.msra.mxu1 %v6172_v32  ;;  %v2486_v32 = vpack.c.bf16 %v2454_v13, %v2454_v13 }
 0x264   :  { %5896 = vmatprep.subr.bf16.mxu1 %v6174_v49  ;;  %5875 = vmatpush3.bf16.msra.mxu0 %v6175_v23  ;;  %v2483_v49 = vpack.c.bf16 %v2451_v43, %v2451_v43  ;;  %v6198_v23 = vld [vmem:[#allocation10 + $0x7c8] sm:$0xff]  }
 0x265   :  { %5876 = vmatprep.subr.bf16.mxu0 %v6177_v37  ;;  %v6199_v37 = vld [vmem:[#allocation10 + $0x708] sm:$0xff]  }
 0x267   :  { %5897 = vmatpush3.bf16.msra.mxu1 %v6176_v48  ;;  %v6201_v48 = vld [vmem:[#allocation10 + $0x750] sm:$0xff]  }
 0x268   :  { %5898 = vmatprep.subr.bf16.mxu1 %v6178_v4  ;;  %5877 = vmatpush3.bf16.msra.mxu0 %v6179_v29  ;;  %v6203_v4 = vld [vmem:[#allocation10 + $0x710] sm:$0xff]   ;;  %v6205_v29 = vld [vmem:[#allocation10 + $0x758] sm:$0xff]  }
 0x269   :  { %5878 = vmatprep.subr.bf16.mxu0 %v6181_v0  ;;  %v6209_v0 = vld [vmem:[#allocation10 + $0x760] sm:$0xff]   ;;  %v6288_v25 = vpop.eup %6287 }
 0x26a   :  { %v2029_v45 = vmul.f32 %v6288_v25, %v7201_v20 }
 0x26b   :  { %5899 = vmatpush3.bf16.msra.mxu1 %v6180_v57  ;;  %v6211_v57 = vld [vmem:[#allocation10 + $0x720] sm:$0xff]  }
 0x26c   :  { %5900 = vmatprep.subr.bf16.mxu1 %v6182_v14  ;;  %5879 = vmatpush3.bf16.msra.mxu0 %v6183_v42  ;;  %v6212_v14 = vld [vmem:[#allocation10 + $0x7a0] sm:$0xff]   ;;  %v6214_v42 = vld [vmem:[#allocation10 + $0x7e8] sm:$0xff]   ;;  %v2225_v38 = vmul.f32 %v2152_v17, %v2029_v45 }
 0x26d   :  { %5880 = vmatprep.subr.bf16.mxu0 %v6185_v50 }
 0x26e   :  { %v2421_v53 = vadd.f32 %v2348_v47, %v2225_v38 }
 0x26f   :  { %5901 = vmatpush3.bf16.msra.mxu1 %v6184_v6 }
 0x270   :  { %5902 = vmatprep.subr.bf16.mxu1 %v6186_v19  ;;  %5881 = vmatpush3.bf16.msra.mxu0 %v6187_v21  ;;  %v6221_v21 = vld [vmem:[#allocation10 + $0x778] sm:$0xff]   ;;  %v2453_v12 = vmax.f32 %v2421_v53, 0.0 }
 0x271   :  { %5882 = vmatprep.subr.bf16.mxu0 %v6189_v31 }
 0x273   :  { %5903 = vmatpush3.bf16.msra.mxu1 %v6188_v1  ;;  %v6223_v1 = vld [vmem:[#allocation10 + $0x738] sm:$0xff]  }
 0x274   :  { %5904 = vmatprep.subr.bf16.mxu1 %v6190_v2  ;;  %5883 = vmatpush3.bf16.msra.mxu0 %v6191_v3  ;;  %v2455_v2 = vmax.f32 %v7180_v63, 0.0  ;;  %v2485_v3 = vpack.c.bf16 %v2453_v12, %v2453_v12 }
 0x275   :  { %5912 = vmatprep.subr.bf16.mxu0 %v6193_v46 }
 0x276   :  { %v2487_v30 = vpack.c.bf16 %v2455_v2, %v2455_v2 }
 0x277   :  { %5905 = vmatpush3.bf16.msra.mxu1 %v6192_v27  ;;  %5050 = vmatmul.mubr.bf16.vlgmr.msra.gmra.mrb[56].mxu0 %v2481_v15 }
 0x278   :  { %5934 = vmatprep.subr.bf16.mxu1 %v6194_v58  ;;  %5913 = vmatpush3.bf16.msra.mxu0 %v6195_v28 }
 0x279   :  { %5129 = vmatprep.mubr.bf16.mxu0 %v2486_v32  ;;  %5914 = vmatprep.subr.bf16.mxu0 %v6197_v40 }
 0x27a   :  { %5090 = vmatmul.mubr.bf16.vlgmr.msra.gmra.mrb[56].mxu1 %v2483_v49 }
 0x27b   :  { %5935 = vmatpush3.bf16.msra.mxu1 %v6196_v56  ;;  %5169 = vmatprep.mubr.bf16.mxu1 %v2488_v10 }
 0x27c   :  { %5936 = vmatprep.subr.bf16.mxu1 %v6198_v23  ;;  %5915 = vmatpush3.bf16.msra.mxu0 %v6199_v37 }
 0x27d   :  { %5916 = vmatprep.subr.bf16.mxu0 %v6201_v48 }
 0x27f   :  { %5937 = vmatpush3.bf16.msra.mxu1 %v6200_v9 }
 0x280   :  { %5938 = vmatprep.subr.bf16.mxu1 %v6202_v34  ;;  %5917 = vmatpush3.bf16.msra.mxu0 %v6203_v4 }
 0x281   :  { %5918 = vmatprep.subr.bf16.mxu0 %v6205_v29 }
 0x283   :  { %5939 = vmatpush3.bf16.msra.mxu1 %v6204_v61 }
 0x284   :  { %5940 = vmatprep.subr.bf16.mxu1 %v6206_v18  ;;  %5919 = vmatpush3.bf16.msra.mxu0 %v6207_v16 }
 0x285   :  { %5920 = vmatprep.subr.bf16.mxu0 %v6209_v0 }
 0x287   :  { %5941 = vmatpush3.bf16.msra.mxu1 %v6208_v11 }
 0x288   :  { %5942 = vmatprep.subr.bf16.mxu1 %v6210_v51  ;;  %5921 = vmatpush3.bf16.msra.mxu0 %v6211_v57 }
 0x289   :  { %5922 = vmatprep.subr.bf16.mxu0 %v6213_v33  ;;  %v5620_v50 = vpop.f32.mrb[32].mxu0 }
 0x28a   :  { %v5621_v20 = vpop.f32.mrb[33].mxu0 }
 0x28b   :  { %5943 = vmatpush3.bf16.msra.mxu1 %v6212_v14  ;;  %v5622_v44 = vadd.f32 %v5621_v20, %v5620_v50  ;;  %v5623_v6 = vpop.f32.mrb[34].mxu0 }
 0x28c   :  { %5944 = vmatprep.subr.bf16.mxu1 %v6214_v42  ;;  %5923 = vmatpush3.bf16.msra.mxu0 %v6215_v35  ;;  %v5642_v55 = vpop.f32.mrb[32].mxu1  ;;  %v5624_v19 = vpop.f32.mrb[35].mxu0 }
 0x28d   :  { %5924 = vmatprep.subr.bf16.mxu0 %v6217_v54  ;;  %v5643_v62 = vpop.f32.mrb[33].mxu1 }
 0x28e   :  { %v5644_v7 = vadd.f32 %v5643_v62, %v5642_v55  ;;  %v5645_v26 = vpop.f32.mrb[34].mxu1 }
 0x28f   :  { %5945 = vmatpush3.bf16.msra.mxu1 %v6216_v60  ;;  %v5646_v31 = vpop.f32.mrb[35].mxu1 }
 0x290   :  { %5946 = vmatprep.subr.bf16.mxu1 %v6218_v22  ;;  %5925 = vmatpush3.bf16.msra.mxu0 %v6219_v59  ;;  %v4612_v8 = vadd.f32 %v5644_v7, %v5622_v44 }
 0x291   :  { %5926 = vmatprep.subr.bf16.mxu0 %v6221_v21 }
 0x293   :  { %5947 = vmatpush3.bf16.msra.mxu1 %v6220_v24 }
 0x294   :  { %5948 = vmatprep.subr.bf16.mxu1 %v6222_v36  ;;  %5927 = vmatpush3.bf16.msra.mxu0 %v6223_v1 }
 0x297   :  { %5949 = vmatpush3.bf16.msra.mxu1 %v6224_v5  ;;  %5130 = vmatmul.mubr.bf16.vlgmr.msra.gmra.mrb[60].mxu0 %v2485_v3 }
 0x29a   :  { %5170 = vmatmul.mubr.bf16.vlgmr.msra.gmra.mrb[60].mxu1 %v2487_v30 }
 0x2a9   :  { %v5664_v46 = vpop.f32.mrb[36].mxu0 }
 0x2aa   :  { %v5665_v52 = vpop.f32.mrb[37].mxu0 }
 0x2ab   :  { %v5666_v27 = vadd.f32 %v5665_v52, %v5664_v46  ;;  %v5667_v13 = vpop.f32.mrb[38].mxu0 }
 0x2ac   :  { %v5668_v43 = vpop.f32.mrb[39].mxu0 }
 0x2ad   :  { %v5686_v41 = vpop.f32.mrb[36].mxu1  ;;  %v4652_v58 = vadd.f32 %v5666_v27, %v4612_v8 }
 0x2ae   :  { %v5687_v28 = vpop.f32.mrb[37].mxu1 }
 0x2af   :  { %v5688_v15 = vadd.f32 %v5687_v28, %v5686_v41  ;;  %v5689_v39 = vpop.f32.mrb[38].mxu1 }
 0x2b0   :  { %v5690_v40 = vpop.f32.mrb[39].mxu1 }
 0x2b1   :  { %v4692_v32 = vadd.f32 %v5688_v15, %v4652_v58 }
 0x2ca   :  { %v5708_v56 = vpop.f32.mrb[40].mxu0 }
 0x2cb   :  { %v5709_v49 = vpop.f32.mrb[41].mxu0 }
 0x2cc   :  { %v5710_v63 = vadd.f32 %v5709_v49, %v5708_v56  ;;  %v5711_v23 = vpop.f32.mrb[42].mxu0 }
 0x2cd   :  { %v5730_v37 = vpop.f32.mrb[40].mxu1  ;;  %v5712_v10 = vpop.f32.mrb[43].mxu0 }
 0x2ce   :  { %v4732_v48 = vadd.f32 %v5710_v63, %v4692_v32  ;;  %v5731_v9 = vpop.f32.mrb[41].mxu1 }
 0x2cf   :  { %v5732_v34 = vadd.f32 %v5731_v9, %v5730_v37  ;;  %v5733_v4 = vpop.f32.mrb[42].mxu1 }
 0x2d0   :  { %v5734_v29 = vpop.f32.mrb[43].mxu1 }
 0x2d1   :  { %v4772_v61 = vadd.f32 %v5732_v34, %v4732_v48 }
 0x2ea   :  { %v5752_v18 = vpop.f32.mrb[44].mxu0 }
 0x2eb   :  { %v5753_v16 = vpop.f32.mrb[45].mxu0 }
 0x2ec   :  { %v5754_v0 = vadd.f32 %v5753_v16, %v5752_v18  ;;  %v5755_v25 = vpop.f32.mrb[46].mxu0 }
 0x2ed   :  { %v5774_v11 = vpop.f32.mrb[44].mxu1  ;;  %v5756_v51 = vpop.f32.mrb[47].mxu0 }
 0x2ee   :  { %v4812_v57 = vadd.f32 %v5754_v0, %v4772_v61  ;;  %v5775_v45 = vpop.f32.mrb[45].mxu1 }
 0x2ef   :  { %v5776_v17 = vadd.f32 %v5775_v45, %v5774_v11  ;;  %v5777_v33 = vpop.f32.mrb[46].mxu1 }
 0x2f0   :  { %v5778_v14 = vpop.f32.mrb[47].mxu1 }
 0x2f1   :  { %v4852_v42 = vadd.f32 %v5776_v17, %v4812_v57 }
 0x30a   :  { %v5796_v35 = vpop.f32.mrb[48].mxu0 }
 0x30b   :  { %v5797_v38 = vpop.f32.mrb[49].mxu0 }
 0x30c   :  { %v5798_v47 = vadd.f32 %v5797_v38, %v5796_v35  ;;  %v5799_v54 = vpop.f32.mrb[50].mxu0 }
 0x30d   :  { %v5818_v50 = vpop.f32.mrb[48].mxu1  ;;  %v5800_v20 = vpop.f32.mrb[51].mxu0 }
 0x30e   :  { %v4892_v60 = vadd.f32 %v5798_v47, %v4852_v42  ;;  %v5819_v44 = vpop.f32.mrb[49].mxu1 }
 0x30f   :  { %v5820_v6 = vadd.f32 %v5819_v44, %v5818_v50  ;;  %v5821_v22 = vpop.f32.mrb[50].mxu1  ;;  %v5602_v50 = vld [vmem:[#allocation11] ss:$0 sm:$0xff] }
 0x310   :  { %v5822_v59 = vpop.f32.mrb[51].mxu1 }
 0x311   :  { %v4932_v53 = vadd.f32 %v5820_v6, %v4892_v60  ;;  %v5603_v60 = vld [vmem:[#allocation13] ss:$0 sm:$0xff] }
 0x32a   :  { %v5840_v55 = vpop.f32.mrb[52].mxu0 }
 0x32b   :  { %v5841_v19 = vpop.f32.mrb[53].mxu0 }
 0x32c   :  { %v5842_v21 = vadd.f32 %v5841_v19, %v5840_v55  ;;  %v5843_v62 = vpop.f32.mrb[54].mxu0 }
 0x32d   :  { %v5862_v7 = vpop.f32.mrb[52].mxu1  ;;  %v5844_v26 = vpop.f32.mrb[55].mxu0 }
 0x32e   :  { %v4972_v24 = vadd.f32 %v5842_v21, %v4932_v53  ;;  %v5863_v31 = vpop.f32.mrb[53].mxu1 }
 0x32f   :  { %v5864_v36 = vadd.f32 %v5863_v31, %v5862_v7  ;;  %v5865_v1 = vpop.f32.mrb[54].mxu1 }
 0x330   :  { %v5866_v8 = vpop.f32.mrb[55].mxu1 }
 0x331   :  { %v5012_v12 = vadd.f32 %v5864_v36, %v4972_v24 }
 0x34a   :  { %v5884_v5 = vpop.f32.mrb[56].mxu0 }
 0x34b   :  { %v5885_v2 = vpop.f32.mrb[57].mxu0 }
 0x34c   :  { %v5886_v3 = vadd.f32 %v5885_v2, %v5884_v5  ;;  %v5887_v30 = vpop.f32.mrb[58].mxu0 }
 0x34d   :  { %v5906_v46 = vpop.f32.mrb[56].mxu1  ;;  %v5888_v52 = vpop.f32.mrb[59].mxu0 }
 0x34e   :  { %v5052_v27 = vadd.f32 %v5886_v3, %v5012_v12  ;;  %v5907_v13 = vpop.f32.mrb[57].mxu1 }
 0x34f   :  { %v5908_v41 = vadd.f32 %v5907_v13, %v5906_v46  ;;  %v5909_v43 = vpop.f32.mrb[58].mxu1 }
 0x350   :  { %v5910_v58 = vpop.f32.mrb[59].mxu1 }
 0x351   :  { %v5092_v28 = vadd.f32 %v5908_v41, %v5052_v27 }
 0x36a   :  { %v5928_v15 = vpop.f32.mrb[60].mxu0 }
 0x36b   :  { %v5929_v39 = vpop.f32.mrb[61].mxu0 }
 0x36c   :  { %v5930_v40 = vadd.f32 %v5929_v39, %v5928_v15  ;;  %v5931_v32 = vpop.f32.mrb[62].mxu0 }
 0x36d   :  { %v5950_v56 = vpop.f32.mrb[60].mxu1  ;;  %v5932_v49 = vpop.f32.mrb[63].mxu0 }
 0x36e   :  { %v5132_v63 = vadd.f32 %v5930_v40, %v5092_v28  ;;  %v5951_v23 = vpop.f32.mrb[61].mxu1 }
 0x36f   :  { %v5952_v37 = vadd.f32 %v5951_v23, %v5950_v56  ;;  %v5953_v10 = vpop.f32.mrb[62].mxu1 }
 0x370   :  { %v5954_v48 = vpop.f32.mrb[63].mxu1 }
 0x371   :  { %v5172_v9 = vadd.f32 %v5952_v37, %v5132_v63 }
 0x373   :  { %v5179_v34 = vsel %vm1359_vm1, %v5172_v9, 0.0 }
 0x374   :  { %v5180_v4 = vrot.slane %v5179_v34, 4 }
 0x376   :  { %v5181_v29 = vadd.f32 %v5180_v4, %v5179_v34 }
 0x378   :  { %v5182_v61 = vrot.slane %v5181_v29, 2 }
 0x37a   :  { %v5183_v18 = vadd.f32 %v5182_v61, %v5181_v29 }
 0x37c   :  { %v5184_v16 = vrot.slane %v5183_v18, 1 }
 0x37e   :  { %v5185_v0 = vadd.f32 %v5184_v16, %v5183_v18 }
 0x380   :  { %v5186_v25 = vmul.f32 0.5, %v5185_v0 }
 0x382   :  { %v5187_v11 = vsub.f32 %v5172_v9, %v5186_v25 }
 0x384   :  { %v5188_v51 = vmul.f32 %v5187_v11, %v5187_v11 }
 0x386   :  { %v5189_v57 = vsel %vm1359_vm1, %v5188_v51, 0.0 }
 0x387   :  { %v5190_v45 = vrot.slane %v5189_v57, 4 }
 0x389   :  { %v5191_v17 = vadd.f32 %v5190_v45, %v5189_v57 }
 0x38b   :  { %v5192_v33 = vrot.slane %v5191_v17, 2 }
 0x38d   :  { %v5193_v14 = vadd.f32 %v5192_v33, %v5191_v17 }
 0x38f   :  { %v5194_v42 = vrot.slane %v5193_v14, 1 }
 0x391   :  { %v5195_v35 = vadd.f32 %v5194_v42, %v5193_v14 }
 0x393   :  { %v5196_v38 = vmul.f32 0.5, %v5195_v35 }
 0x395   :  { %v5197_v47 = vadd.f32 1e-05, %v5196_v38 }
 0x397   :  { %6289 = vrsqrt.f32 %v5197_v47 }
 0x3a1   :  { %v6290_v54 = vpop.eup %6289 }
 0x3a2   :  { %v5199_v20 = vmul.f32 %v6290_v54, %v5187_v11 }
 0x3a4   :  { %v5206_v44 = vmul.f32 %v5602_v50, %v5199_v20 }
 0x3a6   :  { %v5213_v6 = vadd.f32 %v5603_v60, %v5206_v44 }
 0x3a8   :  { %v5214_v22 = vmax.f32 %v5213_v6, 0.0 }
 0x3aa   :  { %5215 = vst [vmem:[#allocation14] sm:$0x3] %v5214_v22 }
 0x3ab   :  { %6456 = shalt.err (!%p6453_p4)
}
 0x3ac   :  { %s6457_s14 = scalar_lea.hbm %s7255_s7, 32 }
 0x3ad   :  { %p6458_p5 = scmp.ne.s32.totalorder %s7255_s7, %s6457_s14  ;;  %p6461_p6 = scmp.lt.u32.totalorder %s6457_s14, %s7255_s7 }
 0x3af   :  { %p6463_p7 = pnand %p6461_p6, %p6458_p5 }
 0x3b1   :  { %6466 = shalt.err (!%p6463_p7)
}
 0x3b2   :  { %5225 = dma.vmem_to_hbm [thread:$0]  %s5223_s0, 32, %s7255_s7, [#allocation4]  }
 0x3b3   :  { %6475 = dma.done.wait [#allocation4], 32  }
 0x3b4   :  { %6476 = vsyncadd [#allocation4], 4294967264 }
 0x3b5   :  { %5229 = vsyncpa [#allocation3], 1 }
 0x3b6   :  { %5230 = vsyncpa [#allocation6], 1 }
 0x3b7   :  { %5231 = vsyncpa [#allocation9], 1 }
 0x3b8   :  { %5232 = vsyncpa [#allocation12], 1 }
 0x3b9   :  { %5233 = vsyncpa [#allocation4], 1 }

// kernel: generator_forward.10
= control target key start
LH: loop header
LB: loop body
LE: loop exit
PB: predicated region body
PF: predicated region fallthrough
CT: control target
= control target key end

     0   :  { %vm881_vm0 = vcmask 1043456   ;;  %vm84_vm1 = vcmask 64512   ;;  %s2799_s3 = inlined_call_operand.vmem [shape: bf16[8,128], index: 3, kind: input, shape index: {}]   ;;  %s2800_s0 = inlined_call_operand.vmem [shape: f32[512,8], index: 0, kind: input, shape index: {}]   ;;  %s2801_s1 = inlined_call_operand.vmem [shape: f32[1,8], index: 1, kind: input, shape index: {}]   ;;  %s2802_s2 = inlined_call_operand.vmem [shape: f32[1,8], index: 2, kind: input, shape index: {}]   ;;  %s2803_s4 = inlined_call_operand.vmem [shape: f32[512,128], index: 4, kind: output, shape index: {}]  }
   0x1   :  { %v784_v0 = vld [vmem:[%s2799_s3] sm:$0xf]  ;;  %v1417_v2 = vld [vmem:[%s2800_s0 + $0x8] sm:$0xff]  ;;  %v1422_v4 = vld [vmem:[%s2800_s0 + $0x10] sm:$0xff] }
   0x2   :  { %v1412_v1 = vld [vmem:[%s2800_s0] sm:$0xff]  ;;  %1377 = vmatprep.subr.msk.bf16.mxu0 %vm881_vm0, %v784_v0  ;;  %1378 = vmatprep.subr.msk.bf16.mxu1 %vm881_vm0, %v784_v0  ;;  %v883_v3 = vsel %vm881_vm0, %v784_v0, 0  ;;  %v1427_v5 = vld [vmem:[%s2800_s0 + $0x18] sm:$0xff]  ;;  %v86_v7 = vsel %vm84_vm1, %v1417_v2, 0.0  ;;  %v88_v10 = vsel %vm84_vm1, %v1422_v4, 0.0  ;;  %v1445_v12 = vld [vmem:[%s2800_s0 + $0x28] sm:$0xff] }
   0x3   :  { %v85_v6 = vsel %vm84_vm1, %v1412_v1, 0.0  ;;  %1310 = vmatpush3.bf16.msra.mxu0 %v883_v3  ;;  %1376 = vmatpush3.bf16.msra.mxu1 %v883_v3  ;;  %v1436_v8 = vld [vmem:[%s2800_s0 + $0x20] sm:$0xff]  ;;  %v90_v11 = vsel %vm84_vm1, %v1427_v5, 0.0  ;;  %v1452_v15 = vld [vmem:[%s2800_s0 + $0x30] sm:$0xff]  ;;  %v94_v17 = vsel %vm84_vm1, %v1445_v12, 0.0  ;;  %v1459_v18 = vld [vmem:[%s2800_s0 + $0x38] sm:$0xff] }
   0x4   :  { %v87_v9 = vadd.f32 %v86_v7, %v85_v6  ;;  %v92_v14 = vsel %vm84_vm1, %v1436_v8, 0.0  ;;  %v96_v20 = vsel %vm84_vm1, %v1452_v15, 0.0  ;;  %v1466_v21 = vld [vmem:[%s2800_s0 + $0x40] sm:$0xff]  ;;  %v98_v23 = vsel %vm84_vm1, %v1459_v18, 0.0  ;;  %v1473_v24 = vld [vmem:[%s2800_s0 + $0x48] sm:$0xff]  ;;  %v1480_v27 = vld [vmem:[%s2800_s0 + $0x50] sm:$0xff] }
   0x5   :  { %v100_v26 = vsel %vm84_vm1, %v1466_v21, 0.0  ;;  %v102_v29 = vsel %vm84_vm1, %v1473_v24, 0.0  ;;  %v1487_v30 = vld [vmem:[%s2800_s0 + $0x58] sm:$0xff]  ;;  %v104_v32 = vsel %vm84_vm1, %v1480_v27, 0.0  ;;  %v1494_v33 = vld [vmem:[%s2800_s0 + $0x60] sm:$0xff]  ;;  %v1501_v36 = vld [vmem:[%s2800_s0 + $0x68] sm:$0xff] }
   0x6   :  { %v89_v13 = vadd.f32 %v88_v10, %v87_v9  ;;  %v106_v35 = vsel %vm84_vm1, %v1487_v30, 0.0  ;;  %v108_v38 = vsel %vm84_vm1, %v1494_v33, 0.0  ;;  %v1508_v39 = vld [vmem:[%s2800_s0 + $0x70] sm:$0xff]  ;;  %v110_v41 = vsel %vm84_vm1, %v1501_v36, 0.0  ;;  %v1515_v42 = vld [vmem:[%s2800_s0 + $0x78] sm:$0xff]  ;;  %v1522_v45 = vld [vmem:[%s2800_s0 + $0x80] sm:$0xff] }
   0x7   :  { %v112_v44 = vsel %vm84_vm1, %v1508_v39, 0.0  ;;  %v114_v47 = vsel %vm84_vm1, %v1515_v42, 0.0  ;;  %v1529_v48 = vld [vmem:[%s2800_s0 + $0x88] sm:$0xff]  ;;  %v116_v50 = vsel %vm84_vm1, %v1522_v45, 0.0  ;;  %v1536_v51 = vld [vmem:[%s2800_s0 + $0x90] sm:$0xff]  ;;  %v1543_v54 = vld [vmem:[%s2800_s0 + $0x98] sm:$0xff] }
   0x8   :  { %v91_v16 = vadd.f32 %v90_v11, %v89_v13  ;;  %v118_v53 = vsel %vm84_vm1, %v1529_v48, 0.0  ;;  %v120_v56 = vsel %vm84_vm1, %v1536_v51, 0.0  ;;  %v1550_v57 = vld [vmem:[%s2800_s0 + $0xa0] sm:$0xff]  ;;  %v122_v59 = vsel %vm84_vm1, %v1543_v54, 0.0  ;;  %v1557_v60 = vld [vmem:[%s2800_s0 + $0xa8] sm:$0xff]  ;;  %v1564_v63 = vld [vmem:[%s2800_s0 + $0xb0] sm:$0xff] }
   0x9   :  { %v124_v62 = vsel %vm84_vm1, %v1550_v57, 0.0  ;;  %v126_v3 = vsel %vm84_vm1, %v1557_v60, 0.0  ;;  %v1571_v6 = vld [vmem:[%s2800_s0 + $0xb8] sm:$0xff]  ;;  %v128_v9 = vsel %vm84_vm1, %v1564_v63, 0.0  ;;  %v1578_v10 = vld [vmem:[%s2800_s0 + $0xc0] sm:$0xff] }
   0xa   :  { %v93_v19 = vadd.f32 %v92_v14, %v91_v16  ;;  %v130_v13 = vsel %vm84_vm1, %v1571_v6, 0.0  ;;  %v1585_v14 = vld [vmem:[%s2800_s0 + $0xc8] sm:$0xff] }
   0xc   :  { %v95_v22 = vadd.f32 %v94_v17, %v93_v19  ;;  %v132_v17 = vsel %vm84_vm1, %v1578_v10, 0.0  ;;  %v1592_v19 = vld [vmem:[%s2800_s0 + $0xd0] sm:$0xff] }
   0xe   :  { %v97_v25 = vadd.f32 %v96_v20, %v95_v22  ;;  %v134_v22 = vsel %vm84_vm1, %v1585_v14, 0.0 }
  0x10   :  { %v99_v28 = vadd.f32 %v98_v23, %v97_v25  ;;  %v1599_v23 = vld [vmem:[%s2800_s0 + $0xd8] sm:$0xff] }
  0x12   :  { %v101_v31 = vadd.f32 %v100_v26, %v99_v28  ;;  %v136_v26 = vsel %vm84_vm1, %v1592_v19, 0.0  ;;  %v1606_v28 = vld [vmem:[%s2800_s0 + $0xe0] sm:$0xff] }
  0x14   :  { %v103_v34 = vadd.f32 %v102_v29, %v101_v31  ;;  %v138_v31 = vsel %vm84_vm1, %v1599_v23, 0.0 }
  0x16   :  { %v105_v37 = vadd.f32 %v104_v32, %v103_v34  ;;  %v1613_v32 = vld [vmem:[%s2800_s0 + $0xe8] sm:$0xff] }
  0x18   :  { %v107_v40 = vadd.f32 %v106_v35, %v105_v37  ;;  %v140_v35 = vsel %vm84_vm1, %v1606_v28, 0.0  ;;  %v1620_v37 = vld [vmem:[%s2800_s0 + $0xf0] sm:$0xff] }
  0x1a   :  { %v109_v43 = vadd.f32 %v108_v38, %v107_v40  ;;  %v142_v40 = vsel %vm84_vm1, %v1613_v32, 0.0 }
  0x1c   :  { %v111_v46 = vadd.f32 %v110_v41, %v109_v43  ;;  %v1627_v41 = vld [vmem:[%s2800_s0 + $0xf8] sm:$0xff] }
  0x1e   :  { %v113_v49 = vadd.f32 %v112_v44, %v111_v46  ;;  %v144_v44 = vsel %vm84_vm1, %v1620_v37, 0.0  ;;  %v1634_v46 = vld [vmem:[%s2800_s0 + $0x100] sm:$0xff] }
  0x20   :  { %v115_v52 = vadd.f32 %v114_v47, %v113_v49  ;;  %v146_v49 = vsel %vm84_vm1, %v1627_v41, 0.0 }
  0x22   :  { %v117_v55 = vadd.f32 %v116_v50, %v115_v52  ;;  %v1641_v50 = vld [vmem:[%s2800_s0 + $0x108] sm:$0xff] }
  0x24   :  { %v119_v58 = vadd.f32 %v118_v53, %v117_v55  ;;  %v148_v53 = vsel %vm84_vm1, %v1634_v46, 0.0  ;;  %v1648_v55 = vld [vmem:[%s2800_s0 + $0x110] sm:$0xff] }
  0x26   :  { %v121_v61 = vadd.f32 %v120_v56, %v119_v58  ;;  %v150_v58 = vsel %vm84_vm1, %v1641_v50, 0.0 }
  0x28   :  { %v123_v0 = vadd.f32 %v122_v59, %v121_v61  ;;  %v1655_v59 = vld [vmem:[%s2800_s0 + $0x118] sm:$0xff] }
  0x2a   :  { %v125_v7 = vadd.f32 %v124_v62, %v123_v0  ;;  %v152_v62 = vsel %vm84_vm1, %v1648_v55, 0.0  ;;  %v1662_v0 = vld [vmem:[%s2800_s0 + $0x120] sm:$0xff] }
  0x2c   :  { %v127_v11 = vadd.f32 %v126_v3, %v125_v7  ;;  %v154_v7 = vsel %vm84_vm1, %v1655_v59, 0.0 }
  0x2e   :  { %v129_v16 = vadd.f32 %v128_v9, %v127_v11  ;;  %v1669_v9 = vld [vmem:[%s2800_s0 + $0x128] sm:$0xff] }
  0x30   :  { %v131_v20 = vadd.f32 %v130_v13, %v129_v16  ;;  %v156_v13 = vsel %vm84_vm1, %v1662_v0, 0.0  ;;  %v1676_v16 = vld [vmem:[%s2800_s0 + $0x130] sm:$0xff] }
  0x32   :  { %v133_v25 = vadd.f32 %v132_v17, %v131_v20  ;;  %v158_v20 = vsel %vm84_vm1, %v1669_v9, 0.0 }
  0x34   :  { %v135_v29 = vadd.f32 %v134_v22, %v133_v25  ;;  %v1683_v22 = vld [vmem:[%s2800_s0 + $0x138] sm:$0xff] }
  0x36   :  { %v137_v34 = vadd.f32 %v136_v26, %v135_v29  ;;  %v160_v26 = vsel %vm84_vm1, %v1676_v16, 0.0  ;;  %v1690_v29 = vld [vmem:[%s2800_s0 + $0x140] sm:$0xff] }
  0x38   :  { %v139_v38 = vadd.f32 %v138_v31, %v137_v34  ;;  %v162_v34 = vsel %vm84_vm1, %v1683_v22, 0.0 }
  0x3a   :  { %v141_v43 = vadd.f32 %v140_v35, %v139_v38  ;;  %v1697_v35 = vld [vmem:[%s2800_s0 + $0x148] sm:$0xff] }
  0x3c   :  { %v143_v47 = vadd.f32 %v142_v40, %v141_v43  ;;  %v164_v40 = vsel %vm84_vm1, %v1690_v29, 0.0  ;;  %v1704_v43 = vld [vmem:[%s2800_s0 + $0x150] sm:$0xff] }
  0x3e   :  { %v145_v52 = vadd.f32 %v144_v44, %v143_v47  ;;  %v166_v47 = vsel %vm84_vm1, %v1697_v35, 0.0 }
  0x40   :  { %v147_v56 = vadd.f32 %v146_v49, %v145_v52  ;;  %v1711_v49 = vld [vmem:[%s2800_s0 + $0x158] sm:$0xff] }
  0x42   :  { %v149_v61 = vadd.f32 %v148_v53, %v147_v56  ;;  %v168_v53 = vsel %vm84_vm1, %v1704_v43, 0.0  ;;  %v1718_v56 = vld [vmem:[%s2800_s0 + $0x160] sm:$0xff] }
  0x44   :  { %v151_v3 = vadd.f32 %v150_v58, %v149_v61  ;;  %v170_v61 = vsel %vm84_vm1, %v1711_v49, 0.0 }
  0x46   :  { %v153_v11 = vadd.f32 %v152_v62, %v151_v3  ;;  %v1725_v62 = vld [vmem:[%s2800_s0 + $0x168] sm:$0xff] }
  0x48   :  { %v155_v17 = vadd.f32 %v154_v7, %v153_v11  ;;  %v172_v7 = vsel %vm84_vm1, %v1718_v56, 0.0  ;;  %v1732_v11 = vld [vmem:[%s2800_s0 + $0x170] sm:$0xff] }
  0x4a   :  { %v157_v25 = vadd.f32 %v156_v13, %v155_v17  ;;  %v174_v17 = vsel %vm84_vm1, %v1725_v62, 0.0 }
  0x4c   :  { %v159_v31 = vadd.f32 %v158_v20, %v157_v25  ;;  %v1739_v20 = vld [vmem:[%s2800_s0 + $0x178] sm:$0xff] }
  0x4e   :  { %v161_v38 = vadd.f32 %v160_v26, %v159_v31  ;;  %v176_v26 = vsel %vm84_vm1, %v1732_v11, 0.0  ;;  %v1746_v31 = vld [vmem:[%s2800_s0 + $0x180] sm:$0xff] }
  0x50   :  { %v163_v44 = vadd.f32 %v162_v34, %v161_v38  ;;  %v178_v38 = vsel %vm84_vm1, %v1739_v20, 0.0 }
  0x52   :  { %v165_v52 = vadd.f32 %v164_v40, %v163_v44  ;;  %v1753_v40 = vld [vmem:[%s2800_s0 + $0x188] sm:$0xff] }
  0x53   :  { %2839 = vst [vmem:[#allocation2_spill] sm:$0xff] %v1753_v40 }
  0x54   :  { %v167_v58 = vadd.f32 %v166_v47, %v165_v52  ;;  %v180_v47 = vsel %vm84_vm1, %v1746_v31, 0.0  ;;  %v1760_v52 = vld [vmem:[%s2800_s0 + $0x190] sm:$0xff] }
  0x55   :  { %2840 = vst [vmem:[#allocation3_spill] sm:$0xff] %v1760_v52 }
  0x56   :  { %v169_v3 = vadd.f32 %v168_v53, %v167_v58  ;;  %v182_v58 = vsel %vm84_vm1, %v1753_v40, 0.0 }
  0x58   :  { %v171_v13 = vadd.f32 %v170_v61, %v169_v3  ;;  %v1767_v61 = vld [vmem:[%s2800_s0 + $0x198] sm:$0xff] }
  0x59   :  { %2841 = vst [vmem:[#allocation4_spill] sm:$0xff] %v1767_v61 }
  0x5a   :  { %v173_v25 = vadd.f32 %v172_v7, %v171_v13  ;;  %v184_v7 = vsel %vm84_vm1, %v1760_v52, 0.0  ;;  %v1774_v13 = vld [vmem:[%s2800_s0 + $0x1a0] sm:$0xff] }
  0x5b   :  { %2842 = vst [vmem:[#allocation5_spill] sm:$0xff] %v1774_v13 }
  0x5c   :  { %v175_v34 = vadd.f32 %v174_v17, %v173_v25  ;;  %v186_v25 = vsel %vm84_vm1, %v1767_v61, 0.0 }
  0x5e   :  { %v177_v44 = vadd.f32 %v176_v26, %v175_v34  ;;  %v1781_v26 = vld [vmem:[%s2800_s0 + $0x1a8] sm:$0xff] }
  0x5f   :  { %2843 = vst [vmem:[#allocation6_spill] sm:$0xff] %v1781_v26 }
  0x60   :  { %v179_v53 = vadd.f32 %v178_v38, %v177_v44  ;;  %v188_v38 = vsel %vm84_vm1, %v1774_v13, 0.0  ;;  %v1788_v44 = vld [vmem:[%s2800_s0 + $0x1b0] sm:$0xff] }
  0x61   :  { %2844 = vst [vmem:[#allocation7_spill] sm:$0xff] %v1788_v44 }
  0x62   :  { %v181_v3 = vadd.f32 %v180_v47, %v179_v53  ;;  %v190_v53 = vsel %vm84_vm1, %v1781_v26, 0.0 }
  0x64   :  { %v183_v17 = vadd.f32 %v182_v58, %v181_v3  ;;  %v1795_v58 = vld [vmem:[%s2800_s0 + $0x1b8] sm:$0xff] }
  0x65   :  { %2845 = vst [vmem:[#allocation8_spill] sm:$0xff] %v1795_v58 }
  0x66   :  { %v185_v34 = vadd.f32 %v184_v7, %v183_v17  ;;  %v192_v7 = vsel %vm84_vm1, %v1788_v44, 0.0  ;;  %v1802_v17 = vld [vmem:[%s2800_s0 + $0x1c0] sm:$0xff] }
  0x67   :  { %2846 = vst [vmem:[#allocation9_spill] sm:$0xff] %v1802_v17 }
  0x68   :  { %v187_v47 = vadd.f32 %v186_v25, %v185_v34  ;;  %v194_v25 = vsel %vm84_vm1, %v1795_v58, 0.0  ;;  %v1809_v34 = vld [vmem:[%s2800_s0 + $0x1c8] sm:$0xff] }
  0x69   :  { %2847 = vst [vmem:[#allocation10_spill] sm:$0xff] %v1809_v34 }
  0x6a   :  { %v189_v3 = vadd.f32 %v188_v38, %v187_v47  ;;  %v196_v38 = vsel %vm84_vm1, %v1802_v17, 0.0  ;;  %v1816_v47 = vld [vmem:[%s2800_s0 + $0x1d0] sm:$0xff] }
  0x6b   :  { %2848 = vst [vmem:[#allocation11_spill] sm:$0xff] %v1816_v47 }
  0x6c   :  { %v191_v13 = vadd.f32 %v190_v53, %v189_v3  ;;  %v198_v53 = vsel %vm84_vm1, %v1809_v34, 0.0  ;;  %v1823_v3 = vld [vmem:[%s2800_s0 + $0x1d8] sm:$0xff] }
  0x6d   :  { %2849 = vst [vmem:[#allocation12_spill] sm:$0xff] %v1823_v3  ;;  %v202_v17 = vsel %vm84_vm1, %v1823_v3, 0.0 }
  0x6e   :  { %v193_v26 = vadd.f32 %v192_v7, %v191_v13  ;;  %v200_v13 = vsel %vm84_vm1, %v1816_v47, 0.0 }
  0x70   :  { %v195_v44 = vadd.f32 %v194_v25, %v193_v26  ;;  %v1832_v26 = vld [vmem:[%s2800_s0 + $0x1e0] sm:$0xff] }
  0x71   :  { %2850 = vst [vmem:[#allocation13_spill] sm:$0xff] %v1832_v26  ;;  %v204_v61 = vsel %vm84_vm1, %v1832_v26, 0.0 }
  0x72   :  { %v197_v58 = vadd.f32 %v196_v38, %v195_v44  ;;  %v1839_v44 = vld [vmem:[%s2800_s0 + $0x1e8] sm:$0xff] }
  0x73   :  { %2851 = vst [vmem:[#allocation14_spill] sm:$0xff] %v1839_v44 }
  0x74   :  { %v199_v7 = vadd.f32 %v198_v53, %v197_v58  ;;  %v206_v58 = vsel %vm84_vm1, %v1839_v44, 0.0  ;;  %v1846_v53 = vld [vmem:[%s2800_s0 + $0x1f0] sm:$0xff] }
  0x75   :  { %2852 = vst [vmem:[#allocation15_spill] sm:$0xff] %v1846_v53 }
  0x76   :  { %v201_v25 = vadd.f32 %v200_v13, %v199_v7  ;;  %v1853_v13 = vld [vmem:[%s2800_s0 + $0x1f8] sm:$0xff] }
  0x78   :  { %v203_v34 = vadd.f32 %v202_v17, %v201_v25  ;;  %v208_v17 = vsel %vm84_vm1, %v1846_v53, 0.0 }
  0x7a   :  { %v205_v38 = vadd.f32 %v204_v61, %v203_v34  ;;  %v210_v61 = vsel %vm84_vm1, %v1853_v13, 0.0 }
  0x7c   :  { %v207_v3 = vadd.f32 %v206_v58, %v205_v38 }
  0x7e   :  { %v209_v7 = vadd.f32 %v208_v17, %v207_v3 }
  0x80   :  { %v211_v34 = vadd.f32 %v210_v61, %v209_v7 }
  0x82   :  { %v212_v25 = vrot.slane %v211_v34, 4 }
  0x84   :  { %v213_v44 = vadd.f32 %v212_v25, %v211_v34 }
  0x86   :  { %v214_v26 = vrot.slane %v213_v44, 2 }
  0x88   :  { %v215_v47 = vadd.f32 %v214_v26, %v213_v44 }
  0x8a   :  { %v216_v52 = vrot.slane %v215_v47, 1 }
  0x8c   :  { %v217_v40 = vadd.f32 %v216_v52, %v215_v47 }
  0x8e   :  { %v1857_v38 = vmul.f32 0.001953125, %v217_v40 }
  0x90   :  { %v1861_v58 = vsub.f32 %v1412_v1, %v1857_v38  ;;  %v1865_v53 = vsub.f32 %v1417_v2, %v1857_v38  ;;  %v1869_v3 = vsub.f32 %v1422_v4, %v1857_v38  ;;  %v1873_v17 = vsub.f32 %v1427_v5, %v1857_v38 }
  0x91   :  { %v1877_v40 = vsub.f32 %v1436_v8, %v1857_v38  ;;  %v1887_v4 = vsub.f32 %v1445_v12, %v1857_v38  ;;  %v1893_v8 = vsub.f32 %v1452_v15, %v1857_v38  ;;  %v1902_v12 = vsub.f32 %v1459_v18, %v1857_v38 }
  0x92   :  { %v284_v1 = vmul.f32 %v1861_v58, %v1861_v58  ;;  %v285_v52 = vmul.f32 %v1865_v53, %v1865_v53  ;;  %v286_v2 = vmul.f32 %v1869_v3, %v1869_v3  ;;  %v287_v5 = vmul.f32 %v1873_v17, %v1873_v17 }
  0x93   :  { %2853 = vst [vmem:[#allocation16_spill] sm:$0xff] %v1877_v40  ;;  %v288_v47 = vmul.f32 %v1877_v40, %v1877_v40  ;;  %v289_v34 = vmul.f32 %v1887_v4, %v1887_v4  ;;  %v1909_v40 = vsub.f32 %v1466_v21, %v1857_v38  ;;  %v1916_v18 = vsub.f32 %v1473_v24, %v1857_v38 }
  0x94   :  { %v348_v26 = vsel %vm84_vm1, %v284_v1, 0.0  ;;  %v349_v44 = vsel %vm84_vm1, %v285_v52, 0.0  ;;  %v351_v7 = vsel %vm84_vm1, %v286_v2, 0.0  ;;  %v353_v15 = vsel %vm84_vm1, %v287_v5, 0.0 }
  0x95   :  { %v350_v61 = vadd.f32 %v349_v44, %v348_v26  ;;  %v290_v1 = vmul.f32 %v1893_v8, %v1893_v8  ;;  %v355_v52 = vsel %vm84_vm1, %v288_v47, 0.0  ;;  %v291_v26 = vmul.f32 %v1902_v12, %v1902_v12 }
  0x96   :  { %v357_v5 = vsel %vm84_vm1, %v289_v34, 0.0  ;;  %v1923_v21 = vsub.f32 %v1480_v27, %v1857_v38  ;;  %v1930_v24 = vsub.f32 %v1487_v30, %v1857_v38  ;;  %v1937_v27 = vsub.f32 %v1494_v33, %v1857_v38 }
  0x97   :  { %v352_v25 = vadd.f32 %v351_v7, %v350_v61  ;;  %v292_v7 = vmul.f32 %v1909_v40, %v1909_v40  ;;  %v359_v47 = vsel %vm84_vm1, %v290_v1, 0.0  ;;  %v361_v34 = vsel %vm84_vm1, %v291_v26, 0.0 }
  0x98   :  { %v1944_v30 = vsub.f32 %v1501_v36, %v1857_v38  ;;  %v1951_v33 = vsub.f32 %v1508_v39, %v1857_v38  ;;  %v1958_v36 = vsub.f32 %v1515_v42, %v1857_v38  ;;  %v1965_v39 = vsub.f32 %v1522_v45, %v1857_v38 }
  0x99   :  { %v354_v2 = vadd.f32 %v353_v15, %v352_v25  ;;  %v293_v15 = vmul.f32 %v1916_v18, %v1916_v18  ;;  %v363_v1 = vsel %vm84_vm1, %v292_v7, 0.0  ;;  %v1972_v42 = vsub.f32 %v1529_v48, %v1857_v38 }
  0x9a   :  { %v1979_v45 = vsub.f32 %v1536_v51, %v1857_v38  ;;  %v1986_v48 = vsub.f32 %v1543_v54, %v1857_v38  ;;  %v1993_v51 = vsub.f32 %v1550_v57, %v1857_v38  ;;  %v2000_v54 = vsub.f32 %v1557_v60, %v1857_v38 }
  0x9b   :  { %v356_v44 = vadd.f32 %v355_v52, %v354_v2  ;;  %v294_v52 = vmul.f32 %v1923_v21, %v1923_v21  ;;  %v365_v26 = vsel %vm84_vm1, %v293_v15, 0.0  ;;  %v2007_v57 = vsub.f32 %v1564_v63, %v1857_v38 }
  0x9c   :  { %v2014_v60 = vsub.f32 %v1571_v6, %v1857_v38  ;;  %v2021_v63 = vsub.f32 %v1578_v10, %v1857_v38  ;;  %v2028_v6 = vsub.f32 %v1585_v14, %v1857_v38  ;;  %v2035_v10 = vsub.f32 %v1592_v19, %v1857_v38 }
  0x9d   :  { %v358_v61 = vadd.f32 %v357_v5, %v356_v44  ;;  %v295_v5 = vmul.f32 %v1930_v24, %v1930_v24  ;;  %v367_v7 = vsel %vm84_vm1, %v294_v52, 0.0  ;;  %2854 = vst [vmem:[#allocation17_spill] sm:$0xff] %v2007_v57  ;;  %v2042_v14 = vsub.f32 %v1599_v23, %v1857_v38 }
  0x9e   :  { %2855 = vst [vmem:[#allocation18_spill] sm:$0xff] %v2014_v60  ;;  %2856 = vst [vmem:[#allocation19_spill] sm:$0xff] %v2021_v63  ;;  %v2049_v19 = vsub.f32 %v1606_v28, %v1857_v38  ;;  %v2056_v23 = vsub.f32 %v1613_v32, %v1857_v38  ;;  %v2063_v28 = vsub.f32 %v1620_v37, %v1857_v38 }
  0x9f   :  { %v360_v25 = vadd.f32 %v359_v47, %v358_v61  ;;  %v296_v47 = vmul.f32 %v1937_v27, %v1937_v27  ;;  %v369_v15 = vsel %vm84_vm1, %v295_v5, 0.0  ;;  %2857 = vst [vmem:[#allocation20_spill] sm:$0xff] %v2028_v6  ;;  %2858 = vst [vmem:[#allocation21_spill] sm:$0xff] %v2035_v10  ;;  %v2070_v32 = vsub.f32 %v1627_v41, %v1857_v38 }
  0xa0   :  { %2859 = vst [vmem:[#allocation22_spill] sm:$0xff] %v2042_v14  ;;  %2860 = vst [vmem:[#allocation23_spill] sm:$0xff] %v2049_v19  ;;  %v2077_v37 = vsub.f32 %v1634_v46, %v1857_v38  ;;  %v2084_v41 = vsub.f32 %v1641_v50, %v1857_v38  ;;  %v2091_v46 = vsub.f32 %v1648_v55, %v1857_v38 }
  0xa1   :  { %v362_v2 = vadd.f32 %v361_v34, %v360_v25  ;;  %v297_v34 = vmul.f32 %v1944_v30, %v1944_v30  ;;  %v371_v52 = vsel %vm84_vm1, %v296_v47, 0.0  ;;  %2861 = vst [vmem:[#allocation24_spill] sm:$0xff] %v2056_v23  ;;  %2862 = vst [vmem:[#allocation25_spill] sm:$0xff] %v2063_v28  ;;  %v2098_v50 = vsub.f32 %v1655_v59, %v1857_v38 }
  0xa2   :  { %2863 = vst [vmem:[#allocation26_spill] sm:$0xff] %v2070_v32  ;;  %v2105_v55 = vsub.f32 %v1662_v0, %v1857_v38  ;;  %v2112_v59 = vsub.f32 %v1669_v9, %v1857_v38  ;;  %v2119_v0 = vsub.f32 %v1676_v16, %v1857_v38  ;;  %v2126_v9 = vsub.f32 %v1683_v22, %v1857_v38 }
  0xa3   :  { %v364_v44 = vadd.f32 %v363_v1, %v362_v2  ;;  %v298_v1 = vmul.f32 %v1951_v33, %v1951_v33  ;;  %v373_v5 = vsel %vm84_vm1, %v297_v34, 0.0  ;;  %v2133_v16 = vsub.f32 %v1690_v29, %v1857_v38 }
  0xa4   :  { %v2140_v22 = vsub.f32 %v1697_v35, %v1857_v38  ;;  %v2147_v29 = vsub.f32 %v1704_v43, %v1857_v38  ;;  %v2154_v35 = vsub.f32 %v1711_v49, %v1857_v38  ;;  %v2161_v43 = vsub.f32 %v1718_v56, %v1857_v38 }
  0xa5   :  { %v366_v61 = vadd.f32 %v365_v26, %v364_v44  ;;  %v299_v26 = vmul.f32 %v1958_v36, %v1958_v36  ;;  %v375_v47 = vsel %vm84_vm1, %v298_v1, 0.0  ;;  %v2168_v49 = vsub.f32 %v1725_v62, %v1857_v38 }
  0xa6   :  { %v2175_v56 = vsub.f32 %v1732_v11, %v1857_v38  ;;  %v2182_v62 = vsub.f32 %v1739_v20, %v1857_v38  ;;  %v2189_v11 = vsub.f32 %v1746_v31, %v1857_v38 }
  0xa7   :  { %v368_v25 = vadd.f32 %v367_v7, %v366_v61  ;;  %v300_v7 = vmul.f32 %v1965_v39, %v1965_v39  ;;  %v377_v34 = vsel %vm84_vm1, %v299_v26, 0.0 }
  0xa9   :  { %v370_v2 = vadd.f32 %v369_v15, %v368_v25  ;;  %v301_v15 = vmul.f32 %v1972_v42, %v1972_v42  ;;  %v379_v1 = vsel %vm84_vm1, %v300_v7, 0.0 }
  0xab   :  { %v372_v44 = vadd.f32 %v371_v52, %v370_v2  ;;  %v302_v52 = vmul.f32 %v1979_v45, %v1979_v45  ;;  %v381_v26 = vsel %vm84_vm1, %v301_v15, 0.0 }
  0xad   :  { %v374_v61 = vadd.f32 %v373_v5, %v372_v44  ;;  %v303_v5 = vmul.f32 %v1986_v48, %v1986_v48  ;;  %v383_v7 = vsel %vm84_vm1, %v302_v52, 0.0 }
  0xaf   :  { %v376_v25 = vadd.f32 %v375_v47, %v374_v61  ;;  %v304_v47 = vmul.f32 %v1993_v51, %v1993_v51  ;;  %v385_v15 = vsel %vm84_vm1, %v303_v5, 0.0 }
  0xb1   :  { %v378_v2 = vadd.f32 %v377_v34, %v376_v25  ;;  %v305_v34 = vmul.f32 %v2000_v54, %v2000_v54  ;;  %v387_v52 = vsel %vm84_vm1, %v304_v47, 0.0 }
  0xb3   :  { %v380_v44 = vadd.f32 %v379_v1, %v378_v2  ;;  %v306_v1 = vmul.f32 %v2007_v57, %v2007_v57  ;;  %v389_v5 = vsel %vm84_vm1, %v305_v34, 0.0 }
  0xb5   :  { %v382_v61 = vadd.f32 %v381_v26, %v380_v44  ;;  %v307_v26 = vmul.f32 %v2014_v60, %v2014_v60  ;;  %v391_v47 = vsel %vm84_vm1, %v306_v1, 0.0 }
  0xb7   :  { %v384_v25 = vadd.f32 %v383_v7, %v382_v61  ;;  %v308_v7 = vmul.f32 %v2021_v63, %v2021_v63  ;;  %v393_v34 = vsel %vm84_vm1, %v307_v26, 0.0 }
  0xb9   :  { %v386_v2 = vadd.f32 %v385_v15, %v384_v25  ;;  %v309_v15 = vmul.f32 %v2028_v6, %v2028_v6  ;;  %v395_v1 = vsel %vm84_vm1, %v308_v7, 0.0 }
  0xbb   :  { %v388_v44 = vadd.f32 %v387_v52, %v386_v2  ;;  %v310_v52 = vmul.f32 %v2035_v10, %v2035_v10  ;;  %v397_v26 = vsel %vm84_vm1, %v309_v15, 0.0 }
  0xbd   :  { %v390_v61 = vadd.f32 %v389_v5, %v388_v44  ;;  %v311_v5 = vmul.f32 %v2042_v14, %v2042_v14  ;;  %v399_v7 = vsel %vm84_vm1, %v310_v52, 0.0 }
  0xbf   :  { %v392_v25 = vadd.f32 %v391_v47, %v390_v61  ;;  %v312_v47 = vmul.f32 %v2049_v19, %v2049_v19  ;;  %v401_v15 = vsel %vm84_vm1, %v311_v5, 0.0 }
  0xc1   :  { %v394_v2 = vadd.f32 %v393_v34, %v392_v25  ;;  %v313_v34 = vmul.f32 %v2056_v23, %v2056_v23  ;;  %v403_v52 = vsel %vm84_vm1, %v312_v47, 0.0 }
  0xc3   :  { %v396_v44 = vadd.f32 %v395_v1, %v394_v2  ;;  %v314_v1 = vmul.f32 %v2063_v28, %v2063_v28  ;;  %v405_v5 = vsel %vm84_vm1, %v313_v34, 0.0 }
  0xc5   :  { %v398_v61 = vadd.f32 %v397_v26, %v396_v44  ;;  %v315_v26 = vmul.f32 %v2070_v32, %v2070_v32  ;;  %v407_v47 = vsel %vm84_vm1, %v314_v1, 0.0  ;;  %v332_v32 = vmul.f32 %v2189_v11, %v2189_v11 }
  0xc7   :  { %v400_v25 = vadd.f32 %v399_v7, %v398_v61  ;;  %v316_v7 = vmul.f32 %v2077_v37, %v2077_v37  ;;  %v409_v34 = vsel %vm84_vm1, %v315_v26, 0.0 }
  0xc9   :  { %v402_v2 = vadd.f32 %v401_v15, %v400_v25  ;;  %v317_v15 = vmul.f32 %v2084_v41, %v2084_v41  ;;  %v411_v1 = vsel %vm84_vm1, %v316_v7, 0.0 }
  0xcb   :  { %v404_v44 = vadd.f32 %v403_v52, %v402_v2  ;;  %v318_v52 = vmul.f32 %v2091_v46, %v2091_v46  ;;  %v413_v26 = vsel %vm84_vm1, %v317_v15, 0.0 }
  0xcd   :  { %v406_v61 = vadd.f32 %v405_v5, %v404_v44  ;;  %v319_v5 = vmul.f32 %v2098_v50, %v2098_v50  ;;  %v415_v7 = vsel %vm84_vm1, %v318_v52, 0.0 }
  0xcf   :  { %v408_v25 = vadd.f32 %v407_v47, %v406_v61  ;;  %v320_v47 = vmul.f32 %v2105_v55, %v2105_v55  ;;  %v417_v15 = vsel %vm84_vm1, %v319_v5, 0.0 }
  0xd1   :  { %v410_v2 = vadd.f32 %v409_v34, %v408_v25  ;;  %v321_v34 = vmul.f32 %v2112_v59, %v2112_v59  ;;  %v419_v52 = vsel %vm84_vm1, %v320_v47, 0.0 }
  0xd3   :  { %v412_v44 = vadd.f32 %v411_v1, %v410_v2  ;;  %v322_v1 = vmul.f32 %v2119_v0, %v2119_v0  ;;  %v421_v5 = vsel %vm84_vm1, %v321_v34, 0.0 }
  0xd5   :  { %v414_v61 = vadd.f32 %v413_v26, %v412_v44  ;;  %v323_v26 = vmul.f32 %v2126_v9, %v2126_v9  ;;  %v423_v47 = vsel %vm84_vm1, %v322_v1, 0.0 }
  0xd7   :  { %v416_v25 = vadd.f32 %v415_v7, %v414_v61  ;;  %v324_v7 = vmul.f32 %v2133_v16, %v2133_v16  ;;  %v425_v34 = vsel %vm84_vm1, %v323_v26, 0.0 }
  0xd9   :  { %v418_v2 = vadd.f32 %v417_v15, %v416_v25  ;;  %v325_v15 = vmul.f32 %v2140_v22, %v2140_v22  ;;  %v427_v1 = vsel %vm84_vm1, %v324_v7, 0.0 }
  0xdb   :  { %v420_v44 = vadd.f32 %v419_v52, %v418_v2  ;;  %v326_v52 = vmul.f32 %v2147_v29, %v2147_v29  ;;  %v429_v26 = vsel %vm84_vm1, %v325_v15, 0.0 }
  0xdd   :  { %v422_v61 = vadd.f32 %v421_v5, %v420_v44  ;;  %v327_v5 = vmul.f32 %v2154_v35, %v2154_v35  ;;  %v431_v7 = vsel %vm84_vm1, %v326_v52, 0.0 }
  0xdf   :  { %v424_v25 = vadd.f32 %v423_v47, %v422_v61  ;;  %v328_v47 = vmul.f32 %v2161_v43, %v2161_v43  ;;  %v433_v15 = vsel %vm84_vm1, %v327_v5, 0.0 }
  0xe1   :  { %v426_v2 = vadd.f32 %v425_v34, %v424_v25  ;;  %v329_v34 = vmul.f32 %v2168_v49, %v2168_v49  ;;  %v435_v52 = vsel %vm84_vm1, %v328_v47, 0.0 }
  0xe3   :  { %v428_v44 = vadd.f32 %v427_v1, %v426_v2  ;;  %v330_v1 = vmul.f32 %v2175_v56, %v2175_v56  ;;  %v437_v5 = vsel %vm84_vm1, %v329_v34, 0.0 }
  0xe5   :  { %v430_v61 = vadd.f32 %v429_v26, %v428_v44  ;;  %v2864_v26 = vld [vmem:[#allocation2_spill] sm:$0xff]  ;;  %v331_v44 = vmul.f32 %v2182_v62, %v2182_v62  ;;  %v439_v47 = vsel %vm84_vm1, %v330_v1, 0.0  ;;  %v443_v1 = vsel %vm84_vm1, %v332_v32, 0.0 }
  0xe6   :  { %v2196_v20 = vsub.f32 %v2864_v26, %v1857_v38 }
  0xe7   :  { %v432_v25 = vadd.f32 %v431_v7, %v430_v61  ;;  %v2865_v61 = vld [vmem:[#allocation3_spill] sm:$0xff]  ;;  %v441_v34 = vsel %vm84_vm1, %v331_v44, 0.0 }
  0xe8   :  { %v2203_v31 = vsub.f32 %v2865_v61, %v1857_v38  ;;  %v333_v28 = vmul.f32 %v2196_v20, %v2196_v20 }
  0xe9   :  { %v434_v2 = vadd.f32 %v433_v15, %v432_v25  ;;  %v2866_v25 = vld [vmem:[#allocation4_spill] sm:$0xff] }
  0xea   :  { %v2210_v26 = vsub.f32 %v2866_v25, %v1857_v38  ;;  %v334_v23 = vmul.f32 %v2203_v31, %v2203_v31  ;;  %v445_v44 = vsel %vm84_vm1, %v333_v28, 0.0 }
  0xeb   :  { %v436_v7 = vadd.f32 %v435_v52, %v434_v2  ;;  %v2867_v2 = vld [vmem:[#allocation5_spill] sm:$0xff] }
  0xec   :  { %v2217_v61 = vsub.f32 %v2867_v2, %v1857_v38  ;;  %v335_v19 = vmul.f32 %v2210_v26, %v2210_v26  ;;  %v447_v32 = vsel %vm84_vm1, %v334_v23, 0.0 }
  0xed   :  { %v438_v15 = vadd.f32 %v437_v5, %v436_v7  ;;  %v2868_v7 = vld [vmem:[#allocation6_spill] sm:$0xff] }
  0xee   :  { %v2224_v25 = vsub.f32 %v2868_v7, %v1857_v38  ;;  %v336_v14 = vmul.f32 %v2217_v61, %v2217_v61  ;;  %v449_v28 = vsel %vm84_vm1, %v335_v19, 0.0 }
  0xef   :  { %v440_v52 = vadd.f32 %v439_v47, %v438_v15  ;;  %v2869_v15 = vld [vmem:[#allocation7_spill] sm:$0xff] }
  0xf0   :  { %v2231_v2 = vsub.f32 %v2869_v15, %v1857_v38  ;;  %v337_v10 = vmul.f32 %v2224_v25, %v2224_v25  ;;  %v451_v23 = vsel %vm84_vm1, %v336_v14, 0.0 }
  0xf1   :  { %v442_v5 = vadd.f32 %v441_v34, %v440_v52  ;;  %v2871_v52 = vld [vmem:[#allocation8_spill] sm:$0xff] }
  0xf2   :  { %2870 = vst [vmem:[#allocation2_spill] sm:$0xff] %v2231_v2  ;;  %v2238_v7 = vsub.f32 %v2871_v52, %v1857_v38  ;;  %v338_v6 = vmul.f32 %v2231_v2, %v2231_v2  ;;  %v453_v19 = vsel %vm84_vm1, %v337_v10, 0.0 }
  0xf3   :  { %v444_v47 = vadd.f32 %v443_v1, %v442_v5  ;;  %v2873_v5 = vld [vmem:[#allocation9_spill] sm:$0xff] }
  0xf4   :  { %2872 = vst [vmem:[#allocation3_spill] sm:$0xff] %v2238_v7  ;;  %v2245_v15 = vsub.f32 %v2873_v5, %v1857_v38  ;;  %v339_v63 = vmul.f32 %v2238_v7, %v2238_v7  ;;  %v455_v14 = vsel %vm84_vm1, %v338_v6, 0.0 }
  0xf5   :  { %v446_v34 = vadd.f32 %v445_v44, %v444_v47  ;;  %v2875_v47 = vld [vmem:[#allocation10_spill] sm:$0xff] }
  0xf6   :  { %2874 = vst [vmem:[#allocation4_spill] sm:$0xff] %v2245_v15  ;;  %v2252_v52 = vsub.f32 %v2875_v47, %v1857_v38  ;;  %v340_v2 = vmul.f32 %v2245_v15, %v2245_v15  ;;  %v457_v10 = vsel %vm84_vm1, %v339_v63, 0.0 }
  0xf7   :  { %v448_v1 = vadd.f32 %v447_v32, %v446_v34  ;;  %v2877_v34 = vld [vmem:[#allocation11_spill] sm:$0xff] }
  0xf8   :  { %2876 = vst [vmem:[#allocation5_spill] sm:$0xff] %v2252_v52  ;;  %v2259_v5 = vsub.f32 %v2877_v34, %v1857_v38  ;;  %v341_v7 = vmul.f32 %v2252_v52, %v2252_v52  ;;  %v459_v6 = vsel %vm84_vm1, %v340_v2, 0.0 }
  0xf9   :  { %v450_v44 = vadd.f32 %v449_v28, %v448_v1  ;;  %v2879_v1 = vld [vmem:[#allocation12_spill] sm:$0xff] }
  0xfa   :  { %2878 = vst [vmem:[#allocation6_spill] sm:$0xff] %v2259_v5  ;;  %v2266_v47 = vsub.f32 %v2879_v1, %v1857_v38  ;;  %v342_v15 = vmul.f32 %v2259_v5, %v2259_v5  ;;  %v461_v63 = vsel %vm84_vm1, %v341_v7, 0.0 }
  0xfb   :  { %v452_v32 = vadd.f32 %v451_v23, %v450_v44  ;;  %v2881_v44 = vld [vmem:[#allocation13_spill] sm:$0xff] }
  0xfc   :  { %2880 = vst [vmem:[#allocation7_spill] sm:$0xff] %v2266_v47  ;;  %v2273_v34 = vsub.f32 %v2881_v44, %v1857_v38  ;;  %v343_v52 = vmul.f32 %v2266_v47, %v2266_v47  ;;  %v463_v2 = vsel %vm84_vm1, %v342_v15, 0.0 }
  0xfd   :  { %v454_v28 = vadd.f32 %v453_v19, %v452_v32  ;;  %v2883_v32 = vld [vmem:[#allocation14_spill] sm:$0xff] }
  0xfe   :  { %2882 = vst [vmem:[#allocation8_spill] sm:$0xff] %v2273_v34  ;;  %v2280_v1 = vsub.f32 %v2883_v32, %v1857_v38  ;;  %v344_v5 = vmul.f32 %v2273_v34, %v2273_v34  ;;  %v465_v7 = vsel %vm84_vm1, %v343_v52, 0.0 }
  0xff   :  { %v456_v23 = vadd.f32 %v455_v14, %v454_v28  ;;  %v2885_v28 = vld [vmem:[#allocation15_spill] sm:$0xff] }
 0x100   :  { %2884 = vst [vmem:[#allocation9_spill] sm:$0xff] %v2280_v1  ;;  %v2287_v44 = vsub.f32 %v2885_v28, %v1857_v38  ;;  %v345_v32 = vmul.f32 %v2280_v1, %v2280_v1  ;;  %v467_v28 = vsel %vm84_vm1, %v344_v5, 0.0 }
 0x101   :  { %v458_v19 = vadd.f32 %v457_v10, %v456_v23  ;;  %v2294_v23 = vsub.f32 %v1853_v13, %v1857_v38 }
 0x102   :  { %2886 = vst [vmem:[#allocation10_spill] sm:$0xff] %v2287_v44 }
 0x103   :  { %v460_v14 = vadd.f32 %v459_v6, %v458_v19  ;;  %2887 = vst [vmem:[#allocation11_spill] sm:$0xff] %v2294_v23  ;;  %v346_v19 = vmul.f32 %v2287_v44, %v2287_v44  ;;  %v347_v15 = vmul.f32 %v2294_v23, %v2294_v23 }
 0x105   :  { %v462_v10 = vadd.f32 %v461_v63, %v460_v14  ;;  %v469_v63 = vsel %vm84_vm1, %v345_v32, 0.0  ;;  %v471_v13 = vsel %vm84_vm1, %v346_v19, 0.0  ;;  %v473_v1 = vsel %vm84_vm1, %v347_v15, 0.0 }
 0x107   :  { %v464_v6 = vadd.f32 %v463_v2, %v462_v10 }
 0x109   :  { %v466_v47 = vadd.f32 %v465_v7, %v464_v6 }
 0x10b   :  { %v468_v14 = vadd.f32 %v467_v28, %v466_v47  ;;  %v2312_v47 = vld [vmem:[%s2801_s1] ss:$0 sm:$0xff] }
 0x10d   :  { %v470_v38 = vadd.f32 %v469_v63, %v468_v14 }
 0x10f   :  { %v472_v34 = vadd.f32 %v471_v13, %v470_v38 }
 0x111   :  { %v474_v52 = vadd.f32 %v473_v1, %v472_v34  ;;  %v2325_v1 = vld [vmem:[%s2802_s2] ss:$0 sm:$0xff] }
 0x113   :  { %v475_v2 = vrot.slane %v474_v52, 4 }
 0x115   :  { %v476_v10 = vadd.f32 %v475_v2, %v474_v52 }
 0x117   :  { %v477_v60 = vrot.slane %v476_v10, 2 }
 0x119   :  { %v478_v44 = vadd.f32 %v477_v60, %v476_v10 }
 0x11b   :  { %v479_v57 = vrot.slane %v478_v44, 1 }
 0x11d   :  { %v480_v5 = vadd.f32 %v479_v57, %v478_v44 }
 0x11f   :  { %v481_v7 = vmul.f32 0.001953125, %v480_v5 }
 0x121   :  { %v482_v6 = vadd.f32 1e-05, %v481_v7 }
 0x123   :  { %1379 = vrsqrt.f32 %v482_v6 }
 0x12d   :  { %v2307_v23 = vpop.eup %1379 }
 0x12e   :  { %v484_v32 = vmul.f32 %v2307_v23, %v1861_v58  ;;  %v485_v34 = vmul.f32 %v2307_v23, %v1865_v53  ;;  %v516_v60 = vmul.f32 %v2307_v23, %v2077_v37  ;;  %v517_v57 = vmul.f32 %v2307_v23, %v2084_v41 }
 0x12f   :  { %v486_v44 = vmul.f32 %v2307_v23, %v1869_v3  ;;  %v487_v58 = vmul.f32 %v2307_v23, %v1873_v17  ;;  %v518_v53 = vmul.f32 %v2307_v23, %v2091_v46  ;;  %v519_v37 = vmul.f32 %v2307_v23, %v2098_v50 }
 0x130   :  { %v554_v19 = vmul.f32 %v2312_v47, %v484_v32  ;;  %v555_v41 = vmul.f32 %v2312_v47, %v485_v34  ;;  %v586_v28 = vmul.f32 %v2312_v47, %v516_v60  ;;  %v587_v15 = vmul.f32 %v2312_v47, %v517_v57 }
 0x131   :  { %v556_v63 = vmul.f32 %v2312_v47, %v486_v44  ;;  %v557_v3 = vmul.f32 %v2312_v47, %v487_v58  ;;  %v588_v17 = vmul.f32 %v2312_v47, %v518_v53  ;;  %v589_v14 = vmul.f32 %v2312_v47, %v519_v37 }
 0x132   :  { %v624_v46 = vadd.f32 %v2325_v1, %v554_v19  ;;  %v625_v50 = vadd.f32 %v2325_v1, %v555_v41  ;;  %v656_v13 = vadd.f32 %v2325_v1, %v586_v28  ;;  %v657_v38 = vadd.f32 %v2325_v1, %v587_v15  ;;  %v2888_v19 = vld [vmem:[#allocation16_spill] sm:$0xff] }
 0x133   :  { %v626_v52 = vadd.f32 %v2325_v1, %v556_v63  ;;  %v627_v2 = vadd.f32 %v2325_v1, %v557_v3  ;;  %v658_v10 = vadd.f32 %v2325_v1, %v588_v17  ;;  %v659_v5 = vadd.f32 %v2325_v1, %v589_v14 }
 0x134   :  { %v688_v7 = vmax.f32 %v624_v46, 0.0  ;;  %v689_v6 = vmax.f32 %v625_v50, 0.0  ;;  %v720_v32 = vmax.f32 %v656_v13, 0.0  ;;  %v721_v34 = vmax.f32 %v657_v38, 0.0 }
 0x135   :  { %v690_v60 = vmax.f32 %v626_v52, 0.0  ;;  %v691_v57 = vmax.f32 %v627_v2, 0.0  ;;  %v722_v44 = vmax.f32 %v658_v10, 0.0  ;;  %v723_v58 = vmax.f32 %v659_v5, 0.0 }
 0x136   :  { %v752_v53 = vpack.c.bf16 %v689_v6, %v688_v7  ;;  %v768_v37 = vpack.c.bf16 %v721_v34, %v720_v32  ;;  %v488_v41 = vmul.f32 %v2307_v23, %v2888_v19  ;;  %v489_v28 = vmul.f32 %v2307_v23, %v1887_v4 }
 0x137   :  { %v753_v15 = vpack.c.bf16 %v691_v57, %v690_v60  ;;  %v769_v63 = vpack.c.bf16 %v723_v58, %v722_v44  ;;  %v520_v3 = vmul.f32 %v2307_v23, %v2105_v55  ;;  %v521_v17 = vmul.f32 %v2307_v23, %v2112_v59 }
 0x138   :  { %1311 = vmatprep.mubr.msk.bf16.mxu0 %vm84_vm1, %v752_v53  ;;  %1343 = vmatprep.mubr.msk.bf16.mxu1 %vm84_vm1, %v768_v37  ;;  %v558_v14 = vmul.f32 %v2312_v47, %v488_v41  ;;  %v559_v46 = vmul.f32 %v2312_v47, %v489_v28  ;;  %v490_v50 = vmul.f32 %v2307_v23, %v1893_v8 }
 0x139   :  { %1312 = vmatmul.mubr.msk.bf16.vlgmr.msra.gmra.mrb[0].mxu0 %vm84_vm1, %v753_v15  ;;  %1344 = vmatmul.mubr.msk.bf16.vlgmr.msra.gmra.mrb[0].mxu1 %vm84_vm1, %v769_v63  ;;  %v590_v4 = vmul.f32 %v2312_v47, %v520_v3  ;;  %v591_v55 = vmul.f32 %v2312_v47, %v521_v17  ;;  %v491_v59 = vmul.f32 %v2307_v23, %v1902_v12 }
 0x13a   :  { %v628_v13 = vadd.f32 %v2325_v1, %v558_v14  ;;  %v629_v38 = vadd.f32 %v2325_v1, %v559_v46  ;;  %v560_v52 = vmul.f32 %v2312_v47, %v490_v50  ;;  %v522_v8 = vmul.f32 %v2307_v23, %v2119_v0 }
 0x13b   :  { %v660_v2 = vadd.f32 %v2325_v1, %v590_v4  ;;  %v661_v10 = vadd.f32 %v2325_v1, %v591_v55  ;;  %v561_v5 = vmul.f32 %v2312_v47, %v491_v59  ;;  %v523_v7 = vmul.f32 %v2307_v23, %v2126_v9 }
 0x13c   :  { %v692_v6 = vmax.f32 %v628_v13, 0.0  ;;  %v693_v12 = vmax.f32 %v629_v38, 0.0  ;;  %v630_v32 = vadd.f32 %v2325_v1, %v560_v52  ;;  %v592_v34 = vmul.f32 %v2312_v47, %v522_v8 }
 0x13d   :  { %v724_v60 = vmax.f32 %v660_v2, 0.0  ;;  %v725_v57 = vmax.f32 %v661_v10, 0.0  ;;  %v631_v44 = vadd.f32 %v2325_v1, %v561_v5  ;;  %v593_v0 = vmul.f32 %v2312_v47, %v523_v7 }
 0x13e   :  { %v754_v58 = vpack.c.bf16 %v693_v12, %v692_v6  ;;  %v694_v53 = vmax.f32 %v630_v32, 0.0  ;;  %v662_v37 = vadd.f32 %v2325_v1, %v592_v34  ;;  %v492_v19 = vmul.f32 %v2307_v23, %v1909_v40 }
 0x13f   :  { %v770_v9 = vpack.c.bf16 %v725_v57, %v724_v60  ;;  %v695_v41 = vmax.f32 %v631_v44, 0.0  ;;  %v663_v28 = vadd.f32 %v2325_v1, %v593_v0  ;;  %v493_v15 = vmul.f32 %v2307_v23, %v1916_v18 }
 0x140   :  { %1315 = vmatprep.mubr.msk.bf16.mxu0 %vm84_vm1, %v754_v58  ;;  %v726_v63 = vmax.f32 %v662_v37, 0.0  ;;  %v562_v3 = vmul.f32 %v2312_v47, %v492_v19  ;;  %v524_v17 = vmul.f32 %v2307_v23, %v2133_v16  ;;  %v525_v14 = vmul.f32 %v2307_v23, %v2140_v22 }
 0x141   :  { %1347 = vmatprep.mubr.msk.bf16.mxu1 %vm84_vm1, %v770_v9  ;;  %v755_v40 = vpack.c.bf16 %v695_v41, %v694_v53  ;;  %v727_v46 = vmax.f32 %v663_v28, 0.0  ;;  %v563_v50 = vmul.f32 %v2312_v47, %v493_v15  ;;  %v494_v18 = vmul.f32 %v2307_v23, %v1923_v21 }
 0x142   :  { %v632_v4 = vadd.f32 %v2325_v1, %v562_v3  ;;  %v594_v55 = vmul.f32 %v2312_v47, %v524_v17  ;;  %v595_v59 = vmul.f32 %v2312_v47, %v525_v14  ;;  %v495_v16 = vmul.f32 %v2307_v23, %v1930_v24 }
 0x143   :  { %1316 = vmatmul.mubr.msk.bf16.gmra.mrb[4].mxu0 %vm84_vm1, %v755_v40  ;;  %v771_v22 = vpack.c.bf16 %v727_v46, %v726_v63  ;;  %v633_v13 = vadd.f32 %v2325_v1, %v563_v50  ;;  %v564_v38 = vmul.f32 %v2312_v47, %v494_v18  ;;  %v526_v52 = vmul.f32 %v2307_v23, %v2147_v29 }
 0x144   :  { %v696_v21 = vmax.f32 %v632_v4, 0.0  ;;  %v664_v8 = vadd.f32 %v2325_v1, %v594_v55  ;;  %v665_v2 = vadd.f32 %v2325_v1, %v595_v59  ;;  %v565_v10 = vmul.f32 %v2312_v47, %v495_v16 }
 0x145   :  { %1348 = vmatmul.mubr.msk.bf16.gmra.mrb[4].mxu1 %vm84_vm1, %v771_v22  ;;  %v697_v24 = vmax.f32 %v633_v13, 0.0  ;;  %v634_v5 = vadd.f32 %v2325_v1, %v564_v38  ;;  %v527_v7 = vmul.f32 %v2307_v23, %v2154_v35  ;;  %v596_v6 = vmul.f32 %v2312_v47, %v526_v52 }
 0x146   :  { %v728_v12 = vmax.f32 %v664_v8, 0.0  ;;  %v729_v32 = vmax.f32 %v665_v2, 0.0  ;;  %v635_v29 = vadd.f32 %v2325_v1, %v565_v10  ;;  %v496_v34 = vmul.f32 %v2307_v23, %v1937_v27 }
 0x147   :  { %v756_v60 = vpack.c.bf16 %v697_v24, %v696_v21  ;;  %v698_v57 = vmax.f32 %v634_v5, 0.0  ;;  %v597_v44 = vmul.f32 %v2312_v47, %v527_v7  ;;  %v666_v0 = vadd.f32 %v2325_v1, %v596_v6 }
 0x148   :  { %v772_v58 = vpack.c.bf16 %v729_v32, %v728_v12  ;;  %v699_v53 = vmax.f32 %v635_v29, 0.0  ;;  %v497_v35 = vmul.f32 %v2307_v23, %v1944_v30  ;;  %v566_v37 = vmul.f32 %v2312_v47, %v496_v34 }
 0x149   :  { %1319 = vmatprep.mubr.msk.bf16.mxu0 %vm84_vm1, %v756_v60  ;;  %v667_v19 = vadd.f32 %v2325_v1, %v597_v44  ;;  %v730_v9 = vmax.f32 %v666_v0, 0.0  ;;  %v528_v27 = vmul.f32 %v2307_v23, %v2161_v43  ;;  %v529_v41 = vmul.f32 %v2307_v23, %v2168_v49 }
 0x14a   :  { %1351 = vmatprep.mubr.msk.bf16.mxu1 %vm84_vm1, %v772_v58  ;;  %v757_v28 = vpack.c.bf16 %v699_v53, %v698_v57  ;;  %v567_v15 = vmul.f32 %v2312_v47, %v497_v35  ;;  %v636_v30 = vadd.f32 %v2325_v1, %v566_v37  ;;  %v498_v63 = vmul.f32 %v2307_v23, %v1951_v33 }
 0x14b   :  { %v731_v3 = vmax.f32 %v667_v19, 0.0  ;;  %v598_v17 = vmul.f32 %v2312_v47, %v528_v27  ;;  %v599_v14 = vmul.f32 %v2312_v47, %v529_v41  ;;  %v499_v43 = vmul.f32 %v2307_v23, %v1958_v36 }
 0x14c   :  { %1320 = vmatmul.mubr.msk.bf16.gmra.mrb[8].mxu0 %vm84_vm1, %v757_v28  ;;  %v637_v49 = vadd.f32 %v2325_v1, %v567_v15  ;;  %v700_v40 = vmax.f32 %v636_v30, 0.0  ;;  %v568_v46 = vmul.f32 %v2312_v47, %v498_v63  ;;  %v530_v50 = vmul.f32 %v2307_v23, %v2175_v56 }
 0x14d   :  { %v773_v18 = vpack.c.bf16 %v731_v3, %v730_v9  ;;  %v668_v33 = vadd.f32 %v2325_v1, %v598_v17  ;;  %v669_v4 = vadd.f32 %v2325_v1, %v599_v14  ;;  %v569_v55 = vmul.f32 %v2312_v47, %v499_v43 }
 0x14e   :  { %v701_v59 = vmax.f32 %v637_v49, 0.0  ;;  %v638_v36 = vadd.f32 %v2325_v1, %v568_v46  ;;  %v531_v16 = vmul.f32 %v2307_v23, %v2182_v62  ;;  %v600_v22 = vmul.f32 %v2312_v47, %v530_v50 }
 0x14f   :  { %1352 = vmatmul.mubr.msk.bf16.gmra.mrb[8].mxu1 %vm84_vm1, %v773_v18  ;;  %v732_v13 = vmax.f32 %v668_v33, 0.0  ;;  %v733_v38 = vmax.f32 %v669_v4, 0.0  ;;  %v639_v56 = vadd.f32 %v2325_v1, %v569_v55  ;;  %v500_v52 = vmul.f32 %v2307_v23, %v1965_v39 }
 0x150   :  { %v758_v21 = vpack.c.bf16 %v701_v59, %v700_v40  ;;  %v702_v8 = vmax.f32 %v638_v36, 0.0  ;;  %v601_v2 = vmul.f32 %v2312_v47, %v531_v16  ;;  %v670_v10 = vadd.f32 %v2325_v1, %v600_v22  ;;  %v2889_v59 = vld [vmem:[#allocation17_spill] sm:$0xff] }
 0x151   :  { %v774_v24 = vpack.c.bf16 %v733_v38, %v732_v13  ;;  %v703_v5 = vmax.f32 %v639_v56, 0.0  ;;  %v501_v62 = vmul.f32 %v2307_v23, %v1972_v42  ;;  %v570_v7 = vmul.f32 %v2312_v47, %v500_v52  ;;  %v2890_v38 = vld [vmem:[#allocation18_spill] sm:$0xff] }
 0x152   :  { %1323 = vmatprep.mubr.msk.bf16.mxu0 %vm84_vm1, %v758_v21  ;;  %v671_v6 = vadd.f32 %v2325_v1, %v601_v2  ;;  %v734_v12 = vmax.f32 %v670_v10, 0.0  ;;  %v532_v39 = vmul.f32 %v2307_v23, %v2189_v11  ;;  %v533_v32 = vmul.f32 %v2307_v23, %v2196_v20  ;;  %v2891_v21 = vld [vmem:[#allocation2_spill] sm:$0xff] }
 0x153   :  { %1355 = vmatprep.mubr.msk.bf16.mxu1 %vm84_vm1, %v774_v24  ;;  %v759_v29 = vpack.c.bf16 %v703_v5, %v702_v8  ;;  %v571_v34 = vmul.f32 %v2312_v47, %v501_v62  ;;  %v640_v42 = vadd.f32 %v2325_v1, %v570_v7  ;;  %v502_v60 = vmul.f32 %v2307_v23, %v1979_v45 }
 0x154   :  { %v735_v57 = vmax.f32 %v671_v6, 0.0  ;;  %v602_v44 = vmul.f32 %v2312_v47, %v532_v39  ;;  %v603_v0 = vmul.f32 %v2312_v47, %v533_v32  ;;  %v503_v11 = vmul.f32 %v2307_v23, %v1986_v48  ;;  %v2892_v6 = vld [vmem:[#allocation3_spill] sm:$0xff] }
 0x155   :  { %1324 = vmatmul.mubr.msk.bf16.gmra.mrb[12].mxu0 %vm84_vm1, %v759_v29  ;;  %v641_v20 = vadd.f32 %v2325_v1, %v571_v34  ;;  %v704_v58 = vmax.f32 %v640_v42, 0.0  ;;  %v572_v53 = vmul.f32 %v2312_v47, %v502_v60  ;;  %v534_v35 = vmul.f32 %v2307_v23, %v2203_v31  ;;  %v2893_v42 = vld [vmem:[#allocation19_spill] sm:$0xff] }
 0x156   :  { %v775_v37 = vpack.c.bf16 %v735_v57, %v734_v12  ;;  %v672_v45 = vadd.f32 %v2325_v1, %v602_v44  ;;  %v673_v19 = vadd.f32 %v2325_v1, %v603_v0  ;;  %v573_v9 = vmul.f32 %v2312_v47, %v503_v11 }
 0x157   :  { %v705_v27 = vmax.f32 %v641_v20, 0.0  ;;  %v642_v48 = vadd.f32 %v2325_v1, %v572_v53  ;;  %v535_v41 = vmul.f32 %v2307_v23, %v2210_v26  ;;  %v604_v28 = vmul.f32 %v2312_v47, %v534_v35  ;;  %v2894_v53 = vld [vmem:[#allocation20_spill] sm:$0xff] }
 0x158   :  { %1356 = vmatmul.mubr.msk.bf16.gmra.mrb[12].mxu1 %vm84_vm1, %v775_v37  ;;  %v736_v15 = vmax.f32 %v672_v45, 0.0  ;;  %v737_v30 = vmax.f32 %v673_v19, 0.0  ;;  %v643_v31 = vadd.f32 %v2325_v1, %v573_v9  ;;  %v504_v63 = vmul.f32 %v2307_v23, %v1993_v51  ;;  %v2895_v9 = vld [vmem:[#allocation4_spill] sm:$0xff] }
 0x159   :  { %v760_v3 = vpack.c.bf16 %v705_v27, %v704_v58  ;;  %v706_v17 = vmax.f32 %v642_v48, 0.0  ;;  %v605_v14 = vmul.f32 %v2312_v47, %v535_v41  ;;  %v674_v43 = vadd.f32 %v2325_v1, %v604_v28  ;;  %v2896_v48 = vld [vmem:[#allocation5_spill] sm:$0xff] }
 0x15a   :  { %v776_v49 = vpack.c.bf16 %v737_v30, %v736_v15  ;;  %v707_v40 = vmax.f32 %v643_v31, 0.0  ;;  %v505_v26 = vmul.f32 %v2307_v23, %v2000_v54  ;;  %v574_v46 = vmul.f32 %v2312_v47, %v504_v63  ;;  %v2897_v31 = vld [vmem:[#allocation21_spill] sm:$0xff] }
 0x15b   :  { %1327 = vmatprep.mubr.msk.bf16.mxu0 %vm84_vm1, %v760_v3  ;;  %v675_v50 = vadd.f32 %v2325_v1, %v605_v14  ;;  %v738_v18 = vmax.f32 %v674_v43, 0.0  ;;  %v536_v51 = vmul.f32 %v2307_v23, %v2217_v61  ;;  %v537_v33 = vmul.f32 %v2307_v23, %v2224_v25  ;;  %v2898_v43 = vld [vmem:[#allocation22_spill] sm:$0xff] }
 0x15c   :  { %1359 = vmatprep.mubr.msk.bf16.mxu1 %vm84_vm1, %v776_v49  ;;  %v761_v4 = vpack.c.bf16 %v707_v40, %v706_v17  ;;  %v575_v55 = vmul.f32 %v2312_v47, %v505_v26  ;;  %v644_v54 = vadd.f32 %v2325_v1, %v574_v46  ;;  %v506_v36 = vmul.f32 %v2307_v23, %v2889_v59 }
 0x15d   :  { %v739_v16 = vmax.f32 %v675_v50, 0.0  ;;  %v606_v22 = vmul.f32 %v2312_v47, %v536_v51  ;;  %v607_v13 = vmul.f32 %v2312_v47, %v537_v33  ;;  %v507_v61 = vmul.f32 %v2307_v23, %v2890_v38  ;;  %v2899_v50 = vld [vmem:[#allocation6_spill] sm:$0xff] }
 0x15e   :  { %1328 = vmatmul.mubr.msk.bf16.gmra.mrb[16].mxu0 %vm84_vm1, %v761_v4  ;;  %v645_v25 = vadd.f32 %v2325_v1, %v575_v55  ;;  %v708_v56 = vmax.f32 %v644_v54, 0.0  ;;  %v576_v52 = vmul.f32 %v2312_v47, %v506_v36  ;;  %v538_v8 = vmul.f32 %v2307_v23, %v2891_v21  ;;  %v2900_v36 = vld [vmem:[#allocation7_spill] sm:$0xff] }
 0x15f   :  { %v777_v2 = vpack.c.bf16 %v739_v16, %v738_v18  ;;  %v676_v10 = vadd.f32 %v2325_v1, %v606_v22  ;;  %v677_v24 = vadd.f32 %v2325_v1, %v607_v13  ;;  %v577_v5 = vmul.f32 %v2312_v47, %v507_v61 }
 0x160   :  { %v709_v62 = vmax.f32 %v645_v25, 0.0  ;;  %v646_v7 = vadd.f32 %v2325_v1, %v576_v52  ;;  %v539_v12 = vmul.f32 %v2307_v23, %v2892_v6  ;;  %v608_v39 = vmul.f32 %v2312_v47, %v538_v8  ;;  %v2901_v25 = vld [vmem:[#allocation23_spill] sm:$0xff] }
 0x161   :  { %1360 = vmatmul.mubr.msk.bf16.gmra.mrb[16].mxu1 %vm84_vm1, %v777_v2  ;;  %v740_v32 = vmax.f32 %v676_v10, 0.0  ;;  %v741_v29 = vmax.f32 %v677_v24, 0.0  ;;  %v647_v34 = vadd.f32 %v2325_v1, %v577_v5  ;;  %v508_v60 = vmul.f32 %v2307_v23, %v2893_v42  ;;  %v2902_v5 = vld [vmem:[#allocation24_spill] sm:$0xff] }
 0x162   :  { %v762_v57 = vpack.c.bf16 %v709_v62, %v708_v56  ;;  %v710_v44 = vmax.f32 %v646_v7, 0.0  ;;  %v609_v0 = vmul.f32 %v2312_v47, %v539_v12  ;;  %v678_v11 = vadd.f32 %v2325_v1, %v608_v39  ;;  %v2903_v39 = vld [vmem:[#allocation8_spill] sm:$0xff] }
 0x163   :  { %v778_v20 = vpack.c.bf16 %v741_v29, %v740_v32  ;;  %v711_v58 = vmax.f32 %v647_v34, 0.0  ;;  %v509_v35 = vmul.f32 %v2307_v23, %v2894_v53  ;;  %v578_v37 = vmul.f32 %v2312_v47, %v508_v60  ;;  %v2904_v29 = vld [vmem:[#allocation9_spill] sm:$0xff]  ;;  %v2906_v53 = vld [vmem:[#allocation26_spill] sm:$0xff] }
 0x164   :  { %1331 = vmatprep.mubr.msk.bf16.mxu0 %vm84_vm1, %v762_v57  ;;  %v679_v45 = vadd.f32 %v2325_v1, %v609_v0  ;;  %v742_v19 = vmax.f32 %v678_v11, 0.0  ;;  %v540_v27 = vmul.f32 %v2307_v23, %v2895_v9  ;;  %v541_v41 = vmul.f32 %v2307_v23, %v2896_v48  ;;  %v2907_v9 = vld [vmem:[#allocation10_spill] sm:$0xff] }
 0x165   :  { %1363 = vmatprep.mubr.msk.bf16.mxu1 %vm84_vm1, %v778_v20  ;;  %v763_v28 = vpack.c.bf16 %v711_v58, %v710_v44  ;;  %v579_v15 = vmul.f32 %v2312_v47, %v509_v35  ;;  %v648_v30 = vadd.f32 %v2325_v1, %v578_v37  ;;  %v510_v63 = vmul.f32 %v2307_v23, %v2897_v31  ;;  %v2905_v44 = vld [vmem:[#allocation25_spill] sm:$0xff] }
 0x166   :  { %v743_v3 = vmax.f32 %v679_v45, 0.0  ;;  %v610_v17 = vmul.f32 %v2312_v47, %v540_v27  ;;  %v611_v14 = vmul.f32 %v2312_v47, %v541_v41  ;;  %v511_v49 = vmul.f32 %v2307_v23, %v2898_v43 }
 0x167   :  { %1332 = vmatmul.mubr.msk.bf16.gmra.mrb[20].mxu0 %vm84_vm1, %v763_v28  ;;  %v649_v40 = vadd.f32 %v2325_v1, %v579_v15  ;;  %v712_v26 = vmax.f32 %v648_v30, 0.0  ;;  %v580_v46 = vmul.f32 %v2312_v47, %v510_v63  ;;  %v542_v18 = vmul.f32 %v2307_v23, %v2899_v50  ;;  %v2908_v63 = vld [vmem:[#allocation11_spill] sm:$0xff] }
 0x168   :  { %v779_v51 = vpack.c.bf16 %v743_v3, %v742_v19  ;;  %v680_v33 = vadd.f32 %v2325_v1, %v610_v17  ;;  %v681_v4 = vadd.f32 %v2325_v1, %v611_v14  ;;  %v581_v55 = vmul.f32 %v2312_v47, %v511_v49 }
 0x169   :  { %v713_v54 = vmax.f32 %v649_v40, 0.0  ;;  %v650_v59 = vadd.f32 %v2325_v1, %v580_v46  ;;  %v543_v16 = vmul.f32 %v2307_v23, %v2900_v36  ;;  %v612_v22 = vmul.f32 %v2312_v47, %v542_v18 }
 0x16a   :  { %1364 = vmatmul.mubr.msk.bf16.gmra.mrb[20].mxu1 %vm84_vm1, %v779_v51  ;;  %v744_v13 = vmax.f32 %v680_v33, 0.0  ;;  %v745_v38 = vmax.f32 %v681_v4, 0.0  ;;  %v651_v61 = vadd.f32 %v2325_v1, %v581_v55  ;;  %v512_v56 = vmul.f32 %v2307_v23, %v2901_v25 }
 0x16b   :  { %v764_v52 = vpack.c.bf16 %v713_v54, %v712_v26  ;;  %v714_v21 = vmax.f32 %v650_v59, 0.0  ;;  %v613_v8 = vmul.f32 %v2312_v47, %v543_v16  ;;  %v682_v2 = vadd.f32 %v2325_v1, %v612_v22 }
 0x16c   :  { %v780_v10 = vpack.c.bf16 %v745_v38, %v744_v13  ;;  %v715_v24 = vmax.f32 %v651_v61, 0.0  ;;  %v513_v62 = vmul.f32 %v2307_v23, %v2902_v5  ;;  %v582_v7 = vmul.f32 %v2312_v47, %v512_v56 }
 0x16d   :  { %1335 = vmatprep.mubr.msk.bf16.mxu0 %vm84_vm1, %v764_v52  ;;  %v683_v6 = vadd.f32 %v2325_v1, %v613_v8  ;;  %v746_v12 = vmax.f32 %v682_v2, 0.0  ;;  %v544_v32 = vmul.f32 %v2307_v23, %v2903_v39  ;;  %v545_v34 = vmul.f32 %v2307_v23, %v2904_v29 }
 0x16e   :  { %1367 = vmatprep.mubr.msk.bf16.mxu1 %vm84_vm1, %v780_v10  ;;  %v765_v42 = vpack.c.bf16 %v715_v24, %v714_v21  ;;  %v583_v60 = vmul.f32 %v2312_v47, %v513_v62  ;;  %v652_v57 = vadd.f32 %v2325_v1, %v582_v7  ;;  %v514_v0 = vmul.f32 %v2307_v23, %v2905_v44 }
 0x16f   :  { %v747_v11 = vmax.f32 %v683_v6, 0.0  ;;  %v614_v20 = vmul.f32 %v2312_v47, %v544_v32  ;;  %v615_v58 = vmul.f32 %v2312_v47, %v545_v34  ;;  %v515_v35 = vmul.f32 %v2307_v23, %v2906_v53 }
 0x170   :  { %1336 = vmatmul.mubr.msk.bf16.gmra.mrb[24].mxu0 %vm84_vm1, %v765_v42  ;;  %v653_v37 = vadd.f32 %v2325_v1, %v583_v60  ;;  %v716_v45 = vmax.f32 %v652_v57, 0.0  ;;  %v584_v19 = vmul.f32 %v2312_v47, %v514_v0  ;;  %v546_v27 = vmul.f32 %v2307_v23, %v2907_v9 }
 0x171   :  { %v781_v48 = vpack.c.bf16 %v747_v11, %v746_v12  ;;  %v684_v41 = vadd.f32 %v2325_v1, %v614_v20  ;;  %v685_v28 = vadd.f32 %v2325_v1, %v615_v58  ;;  %v585_v15 = vmul.f32 %v2312_v47, %v515_v35 }
 0x172   :  { %v717_v30 = vmax.f32 %v653_v37, 0.0  ;;  %v654_v31 = vadd.f32 %v2325_v1, %v584_v19  ;;  %v547_v3 = vmul.f32 %v2307_v23, %v2908_v63  ;;  %v616_v17 = vmul.f32 %v2312_v47, %v546_v27 }
 0x173   :  { %1368 = vmatmul.mubr.msk.bf16.gmra.mrb[24].mxu1 %vm84_vm1, %v781_v48  ;;  %v748_v14 = vmax.f32 %v684_v41, 0.0  ;;  %v749_v43 = vmax.f32 %v685_v28, 0.0  ;;  %v655_v49 = vadd.f32 %v2325_v1, %v585_v15 }
 0x174   :  { %v766_v40 = vpack.c.bf16 %v717_v30, %v716_v45  ;;  %v718_v26 = vmax.f32 %v654_v31, 0.0  ;;  %v617_v46 = vmul.f32 %v2312_v47, %v547_v3  ;;  %v686_v50 = vadd.f32 %v2325_v1, %v616_v17 }
 0x175   :  { %v782_v18 = vpack.c.bf16 %v749_v43, %v748_v14  ;;  %v719_v51 = vmax.f32 %v655_v49, 0.0 }
 0x176   :  { %1339 = vmatprep.mubr.msk.bf16.mxu0 %vm84_vm1, %v766_v40  ;;  %v687_v23 = vadd.f32 %v2325_v1, %v617_v46  ;;  %v750_v33 = vmax.f32 %v686_v50, 0.0 }
 0x177   :  { %1371 = vmatprep.mubr.msk.bf16.mxu1 %vm84_vm1, %v782_v18  ;;  %v767_v4 = vpack.c.bf16 %v719_v51, %v718_v26 }
 0x178   :  { %v751_v55 = vmax.f32 %v687_v23, 0.0 }
 0x179   :  { %1340 = vmatmul.mubr.msk.bf16.gmra.mrb[28].mxu0 %vm84_vm1, %v767_v4 }
 0x17a   :  { %v783_v54 = vpack.c.bf16 %v751_v55, %v750_v33 }
 0x17c   :  { %1372 = vmatmul.mubr.msk.bf16.gmra.mrb[28].mxu1 %vm84_vm1, %v783_v54 }
 0x20c   :  { %v1313_v59 = vpop.f32.mrb[0].mxu0  ;;  %v1345_v47 = vpop.f32.mrb[0].mxu1 }
 0x20d   :  { %1176 = vst [vmem:[%s2803_s4 + $0x10] sm:$0xff] %v1313_v59  ;;  %1208 = vst [vmem:[%s2803_s4 + $0x110] sm:$0xff] %v1345_v47  ;;  %v919_v1 = vpop.f32.mrb[1].mxu0  ;;  %v1047_v36 = vpop.f32.mrb[1].mxu1 }
 0x20e   :  { %1174 = vst [vmem:[%s2803_s4] sm:$0xff] %v919_v1  ;;  %1206 = vst [vmem:[%s2803_s4 + $0x100] sm:$0xff] %v1047_v36  ;;  %v1314_v16 = vpop.f32.mrb[2].mxu0  ;;  %v1346_v22 = vpop.f32.mrb[2].mxu1 }
 0x20f   :  { %1177 = vst [vmem:[%s2803_s4 + $0x18] sm:$0xff] %v1314_v16  ;;  %1209 = vst [vmem:[%s2803_s4 + $0x118] sm:$0xff] %v1346_v22  ;;  %v922_v13 = vpop.f32.mrb[3].mxu0  ;;  %v1050_v38 = vpop.f32.mrb[3].mxu1 }
 0x210   :  { %1175 = vst [vmem:[%s2803_s4 + $0x8] sm:$0xff] %v922_v13  ;;  %1207 = vst [vmem:[%s2803_s4 + $0x108] sm:$0xff] %v1050_v38 }
 0x216   :  { %v1317_v61 = vpop.f32.mrb[4].mxu0 }
 0x217   :  { %1180 = vst [vmem:[%s2803_s4 + $0x30] sm:$0xff] %v1317_v61  ;;  %v935_v25 = vpop.f32.mrb[5].mxu0 }
 0x218   :  { %v1349_v56 = vpop.f32.mrb[4].mxu1  ;;  %1178 = vst [vmem:[%s2803_s4 + $0x20] sm:$0xff] %v935_v25  ;;  %v1318_v52 = vpop.f32.mrb[6].mxu0 }
 0x219   :  { %1212 = vst [vmem:[%s2803_s4 + $0x130] sm:$0xff] %v1349_v56  ;;  %v1063_v21 = vpop.f32.mrb[5].mxu1  ;;  %1181 = vst [vmem:[%s2803_s4 + $0x38] sm:$0xff] %v1318_v52  ;;  %v938_v8 = vpop.f32.mrb[7].mxu0 }
 0x21a   :  { %1210 = vst [vmem:[%s2803_s4 + $0x120] sm:$0xff] %v1063_v21  ;;  %v1350_v2 = vpop.f32.mrb[6].mxu1  ;;  %1179 = vst [vmem:[%s2803_s4 + $0x28] sm:$0xff] %v938_v8 }
 0x21b   :  { %1213 = vst [vmem:[%s2803_s4 + $0x138] sm:$0xff] %v1350_v2  ;;  %v1066_v10 = vpop.f32.mrb[7].mxu1 }
 0x21c   :  { %1211 = vst [vmem:[%s2803_s4 + $0x128] sm:$0xff] %v1066_v10 }
 0x21f   :  { %v1321_v24 = vpop.f32.mrb[8].mxu0 }
 0x220   :  { %1184 = vst [vmem:[%s2803_s4 + $0x50] sm:$0xff] %v1321_v24  ;;  %v951_v5 = vpop.f32.mrb[9].mxu0 }
 0x221   :  { %1182 = vst [vmem:[%s2803_s4 + $0x40] sm:$0xff] %v951_v5  ;;  %v1322_v62 = vpop.f32.mrb[10].mxu0 }
 0x222   :  { %v1353_v7 = vpop.f32.mrb[8].mxu1  ;;  %1185 = vst [vmem:[%s2803_s4 + $0x58] sm:$0xff] %v1322_v62  ;;  %v954_v6 = vpop.f32.mrb[11].mxu0 }
 0x223   :  { %1216 = vst [vmem:[%s2803_s4 + $0x150] sm:$0xff] %v1353_v7  ;;  %v1079_v12 = vpop.f32.mrb[9].mxu1  ;;  %1183 = vst [vmem:[%s2803_s4 + $0x48] sm:$0xff] %v954_v6 }
 0x224   :  { %1214 = vst [vmem:[%s2803_s4 + $0x140] sm:$0xff] %v1079_v12  ;;  %v1354_v39 = vpop.f32.mrb[10].mxu1 }
 0x225   :  { %1217 = vst [vmem:[%s2803_s4 + $0x158] sm:$0xff] %v1354_v39  ;;  %v1082_v32 = vpop.f32.mrb[11].mxu1 }
 0x226   :  { %1215 = vst [vmem:[%s2803_s4 + $0x148] sm:$0xff] %v1082_v32 }
 0x228   :  { %v1325_v29 = vpop.f32.mrb[12].mxu0 }
 0x229   :  { %1188 = vst [vmem:[%s2803_s4 + $0x70] sm:$0xff] %v1325_v29  ;;  %v967_v34 = vpop.f32.mrb[13].mxu0 }
 0x22a   :  { %1186 = vst [vmem:[%s2803_s4 + $0x60] sm:$0xff] %v967_v34  ;;  %v1326_v42 = vpop.f32.mrb[14].mxu0 }
 0x22b   :  { %v1357_v60 = vpop.f32.mrb[12].mxu1  ;;  %1189 = vst [vmem:[%s2803_s4 + $0x78] sm:$0xff] %v1326_v42  ;;  %v970_v57 = vpop.f32.mrb[15].mxu0 }
 0x22c   :  { %1220 = vst [vmem:[%s2803_s4 + $0x170] sm:$0xff] %v1357_v60  ;;  %v1095_v44 = vpop.f32.mrb[13].mxu1  ;;  %1187 = vst [vmem:[%s2803_s4 + $0x68] sm:$0xff] %v970_v57 }
 0x22d   :  { %1218 = vst [vmem:[%s2803_s4 + $0x160] sm:$0xff] %v1095_v44  ;;  %v1358_v0 = vpop.f32.mrb[14].mxu1 }
 0x22e   :  { %1221 = vst [vmem:[%s2803_s4 + $0x178] sm:$0xff] %v1358_v0  ;;  %v1098_v11 = vpop.f32.mrb[15].mxu1 }
 0x22f   :  { %1219 = vst [vmem:[%s2803_s4 + $0x168] sm:$0xff] %v1098_v11 }
 0x231   :  { %v1329_v20 = vpop.f32.mrb[16].mxu0 }
 0x232   :  { %1192 = vst [vmem:[%s2803_s4 + $0x90] sm:$0xff] %v1329_v20  ;;  %v983_v58 = vpop.f32.mrb[17].mxu0 }
 0x233   :  { %1190 = vst [vmem:[%s2803_s4 + $0x80] sm:$0xff] %v983_v58  ;;  %v1330_v53 = vpop.f32.mrb[18].mxu0 }
 0x234   :  { %v1361_v35 = vpop.f32.mrb[16].mxu1  ;;  %1193 = vst [vmem:[%s2803_s4 + $0x98] sm:$0xff] %v1330_v53  ;;  %v986_v37 = vpop.f32.mrb[19].mxu0 }
 0x235   :  { %1224 = vst [vmem:[%s2803_s4 + $0x190] sm:$0xff] %v1361_v35  ;;  %v1111_v45 = vpop.f32.mrb[17].mxu1  ;;  %1191 = vst [vmem:[%s2803_s4 + $0x88] sm:$0xff] %v986_v37 }
 0x236   :  { %1222 = vst [vmem:[%s2803_s4 + $0x180] sm:$0xff] %v1111_v45  ;;  %v1362_v19 = vpop.f32.mrb[18].mxu1 }
 0x237   :  { %1225 = vst [vmem:[%s2803_s4 + $0x198] sm:$0xff] %v1362_v19  ;;  %v1114_v9 = vpop.f32.mrb[19].mxu1 }
 0x238   :  { %1223 = vst [vmem:[%s2803_s4 + $0x188] sm:$0xff] %v1114_v9 }
 0x23a   :  { %v1333_v27 = vpop.f32.mrb[20].mxu0 }
 0x23b   :  { %1196 = vst [vmem:[%s2803_s4 + $0xb0] sm:$0xff] %v1333_v27  ;;  %v999_v48 = vpop.f32.mrb[21].mxu0 }
 0x23c   :  { %1194 = vst [vmem:[%s2803_s4 + $0xa0] sm:$0xff] %v999_v48  ;;  %v1334_v41 = vpop.f32.mrb[22].mxu0 }
 0x23d   :  { %v1365_v28 = vpop.f32.mrb[20].mxu1  ;;  %1197 = vst [vmem:[%s2803_s4 + $0xb8] sm:$0xff] %v1334_v41  ;;  %v1002_v15 = vpop.f32.mrb[23].mxu0 }
 0x23e   :  { %1228 = vst [vmem:[%s2803_s4 + $0x1b0] sm:$0xff] %v1365_v28  ;;  %v1127_v30 = vpop.f32.mrb[21].mxu1  ;;  %1195 = vst [vmem:[%s2803_s4 + $0xa8] sm:$0xff] %v1002_v15 }
 0x23f   :  { %1226 = vst [vmem:[%s2803_s4 + $0x1a0] sm:$0xff] %v1127_v30  ;;  %v1366_v31 = vpop.f32.mrb[22].mxu1 }
 0x240   :  { %1229 = vst [vmem:[%s2803_s4 + $0x1b8] sm:$0xff] %v1366_v31  ;;  %v1130_v63 = vpop.f32.mrb[23].mxu1 }
 0x241   :  { %1227 = vst [vmem:[%s2803_s4 + $0x1a8] sm:$0xff] %v1130_v63 }
 0x243   :  { %v1337_v3 = vpop.f32.mrb[24].mxu0 }
 0x244   :  { %1200 = vst [vmem:[%s2803_s4 + $0xd0] sm:$0xff] %v1337_v3  ;;  %v1015_v17 = vpop.f32.mrb[25].mxu0 }
 0x245   :  { %1198 = vst [vmem:[%s2803_s4 + $0xc0] sm:$0xff] %v1015_v17  ;;  %v1338_v14 = vpop.f32.mrb[26].mxu0 }
 0x246   :  { %v1369_v43 = vpop.f32.mrb[24].mxu1  ;;  %1201 = vst [vmem:[%s2803_s4 + $0xd8] sm:$0xff] %v1338_v14  ;;  %v1018_v49 = vpop.f32.mrb[27].mxu0 }
 0x247   :  { %1232 = vst [vmem:[%s2803_s4 + $0x1d0] sm:$0xff] %v1369_v43  ;;  %v1143_v40 = vpop.f32.mrb[25].mxu1  ;;  %1199 = vst [vmem:[%s2803_s4 + $0xc8] sm:$0xff] %v1018_v49 }
 0x248   :  { %1230 = vst [vmem:[%s2803_s4 + $0x1c0] sm:$0xff] %v1143_v40  ;;  %v1370_v26 = vpop.f32.mrb[26].mxu1 }
 0x249   :  { %1233 = vst [vmem:[%s2803_s4 + $0x1d8] sm:$0xff] %v1370_v26  ;;  %v1146_v46 = vpop.f32.mrb[27].mxu1 }
 0x24a   :  { %1231 = vst [vmem:[%s2803_s4 + $0x1c8] sm:$0xff] %v1146_v46 }
 0x24c   :  { %v1341_v50 = vpop.f32.mrb[28].mxu0 }
 0x24d   :  { %1204 = vst [vmem:[%s2803_s4 + $0xf0] sm:$0xff] %v1341_v50  ;;  %v1031_v18 = vpop.f32.mrb[29].mxu0 }
 0x24e   :  { %1202 = vst [vmem:[%s2803_s4 + $0xe0] sm:$0xff] %v1031_v18  ;;  %v1342_v51 = vpop.f32.mrb[30].mxu0 }
 0x24f   :  { %v1373_v23 = vpop.f32.mrb[28].mxu1  ;;  %1205 = vst [vmem:[%s2803_s4 + $0xf8] sm:$0xff] %v1342_v51  ;;  %v1034_v33 = vpop.f32.mrb[31].mxu0 }
 0x250   :  { %1236 = vst [vmem:[%s2803_s4 + $0x1f0] sm:$0xff] %v1373_v23  ;;  %v1159_v4 = vpop.f32.mrb[29].mxu1  ;;  %1203 = vst [vmem:[%s2803_s4 + $0xe8] sm:$0xff] %v1034_v33 }
 0x251   :  { %1234 = vst [vmem:[%s2803_s4 + $0x1e0] sm:$0xff] %v1159_v4  ;;  %v1374_v55 = vpop.f32.mrb[30].mxu1 }
 0x252   :  { %1237 = vst [vmem:[%s2803_s4 + $0x1f8] sm:$0xff] %v1374_v55  ;;  %v1162_v54 = vpop.f32.mrb[31].mxu1 }
 0x253   :  { %1235 = vst [vmem:[%s2803_s4 + $0x1e8] sm:$0xff] %v1162_v54 }

// kernel: tile.8
= control target key start
LH: loop header
LB: loop body
LE: loop exit
PB: predicated region body
PF: predicated region fallthrough
CT: control target
= control target key end

     0   :  { %s22_s0 = inlined_call_operand.vmem [shape: f32[3], index: 0, kind: input, shape index: {}]   ;;  %s23_s1 = inlined_call_operand.vmem [shape: f32[2,3], index: 1, kind: output, shape index: {}]  }
   0x1   :  { %v4_v0 = vld [vmem:[%s22_s0] ss:$0 sm:$0xff] }
   0x2   :  { %5 = vst [vmem:[%s23_s1] sm:$0x3] %v4_v0 }

// kernel: tile.0
= control target key start
LH: loop header
LB: loop body
LE: loop exit
PB: predicated region body
PF: predicated region fallthrough
CT: control target
= control target key end

     0   :  { %vm7_vm0 = vcmask 7168   ;;  %s26_s10 = smov 126   ;;  %s49_s0 = inlined_call_operand.vmem [shape: f32[2,3], index: 0, kind: input, shape index: {}]   ;;  %s50_s1 = inlined_call_operand.vmem [shape: f32[6,1], index: 1, kind: output, shape index: {}]  }
   0x1   :  { %v4_v0 = vld [vmem:[%s49_s0] sm:$0x3]  ;;  %s25_s0 = smov 127  }
   0x2   :  { %5 = vst [vmem:[#allocation0] sm:$0x3] %v4_v0 }
   0x9   :  { %v9_v1 = vld [vmem:[#allocation0] sm:$0x3]  }
   0xa   :  { %v6_v2 = vld [vmem:[#allocation0] sm:$0x3]   ;;  %10 = vrot.lane.b32.xlu0 %v9_v1, %s25_s0 }
   0xb   :  { %8 = vst.msk [vmem:[%s50_s1] ss:$3 sm:$0x3] %vm7_vm0, %v6_v2   ;;  %v15_v3 = vld [vmem:[#allocation0] sm:$0x3]  }
   0xe   :  { %16 = vrot.lane.b32.xlu0 %v15_v3, %s26_s10 }
  0x7c   :  { %v11_v4 = vpop.permute.xlu0 %10  }
  0x7d   :  { %21 = vst.msk [vmem:[%s50_s1 + $0x1] ss:$3 sm:$0x3] %vm7_vm0, %v11_v4  }
  0x80   :  { %v17_v5 = vpop.permute.xlu0 %16  }
  0x81   :  { %22 = vst.msk [vmem:[%s50_s1 + $0x2] ss:$3 sm:$0x3] %vm7_vm0, %v17_v5  }

// kernel: generator_forward.11
= control target key start
LH: loop header
LB: loop body
LE: loop exit
PB: predicated region body
PF: predicated region fallthrough
CT: control target
= control target key end

     0   :  { %v71_v0 = vmov 0   ;;  %s138_s1 = inlined_call_operand.vmem [shape: f32[6,1], index: 1, kind: input, shape index: {}]   ;;  %s139_s0 = inlined_call_operand.vmem [shape: f32[6,1024], index: 0, kind: input, shape index: {}]   ;;  %s140_s2 = inlined_call_operand.vmem [shape: f32[6,1024], index: 2, kind: output, shape index: {}]  }
   0x1   :  { %54 = vset.pattern.permute.xlu0 %v71_v0  ;;  %v19_v1 = vld [vmem:[%s138_s1] sm:$0x3f]  ;;  %v12_v3 = vld [vmem:[%s139_s0 + $0x8] sm:$0x3f]  ;;  %v13_v4 = vld [vmem:[%s139_s0 + $0x10] sm:$0x3f] }
   0x2   :  { %22 = vperm.xlu0 %54, %v19_v1   ;;  %v11_v2 = vld [vmem:[%s139_s0] sm:$0x3f]  ;;  %v14_v5 = vld [vmem:[%s139_s0 + $0x18] sm:$0x3f]  ;;  %v16_v8 = vld [vmem:[%s139_s0 + $0x28] sm:$0x3f] }
   0x3   :  { %v15_v7 = vld [vmem:[%s139_s0 + $0x20] sm:$0x3f]  ;;  %v17_v12 = vld [vmem:[%s139_s0 + $0x30] sm:$0x3f]  ;;  %v18_v14 = vld [vmem:[%s139_s0 + $0x38] sm:$0x3f] }
  0x81   :  { %v23_v6 = vpop.permute.xlu0 %22 }
  0x82   :  { %v25_v9 = vadd.f32 %v23_v6, %v11_v2  ;;  %v26_v10 = vadd.f32 %v23_v6, %v12_v3  ;;  %v27_v11 = vadd.f32 %v23_v6, %v13_v4  ;;  %v28_v13 = vadd.f32 %v23_v6, %v14_v5 }
  0x83   :  { %v29_v15 = vadd.f32 %v23_v6, %v15_v7  ;;  %v30_v16 = vadd.f32 %v23_v6, %v16_v8  ;;  %v31_v17 = vadd.f32 %v23_v6, %v17_v12  ;;  %v32_v18 = vadd.f32 %v23_v6, %v18_v14 }
  0x84   :  { %55 = vtanh.f32 %v25_v9 }
  0x85   :  { %57 = vtanh.f32 %v26_v10 }
  0x86   :  { %59 = vtanh.f32 %v27_v11 }
  0x87   :  { %61 = vtanh.f32 %v28_v13 }
  0x88   :  { %63 = vtanh.f32 %v29_v15 }
  0x89   :  { %65 = vtanh.f32 %v30_v16 }
  0x8a   :  { %67 = vtanh.f32 %v31_v17 }
  0x8b   :  { %69 = vtanh.f32 %v32_v18 }
  0x8e   :  { %v56_v19 = vpop.eup %55 }
  0x8f   :  { %v58_v20 = vpop.eup %57  ;;  %41 = vst [vmem:[%s140_s2] sm:$0x3f] %v56_v19 }
  0x90   :  { %v60_v21 = vpop.eup %59  ;;  %42 = vst [vmem:[%s140_s2 + $0x8] sm:$0x3f] %v58_v20 }
  0x91   :  { %v62_v22 = vpop.eup %61  ;;  %43 = vst [vmem:[%s140_s2 + $0x10] sm:$0x3f] %v60_v21 }
  0x92   :  { %v64_v23 = vpop.eup %63  ;;  %44 = vst [vmem:[%s140_s2 + $0x18] sm:$0x3f] %v62_v22 }
  0x93   :  { %v66_v24 = vpop.eup %65  ;;  %45 = vst [vmem:[%s140_s2 + $0x20] sm:$0x3f] %v64_v23 }
  0x94   :  { %v68_v25 = vpop.eup %67  ;;  %46 = vst [vmem:[%s140_s2 + $0x28] sm:$0x3f] %v66_v24 }
  0x95   :  { %v70_v26 = vpop.eup %69  ;;  %47 = vst [vmem:[%s140_s2 + $0x30] sm:$0x3f] %v68_v25 }
  0x96   :  { %48 = vst [vmem:[%s140_s2 + $0x38] sm:$0x3f] %v70_v26 }

</bundles_post_ra>
